<compile_context>
chip_gen: v7x
topology: tpu7x:2x2x1
jax: 0.10.0
libtpu: 0.0.40
codegen_flags: <defaults>
</compile_context>

<pallas_src>
import functools

import jax
import jax.numpy as jnp
from jax.experimental import pallas as pl
from jax.experimental.pallas import tpu as pltpu

EPS = 1e-5


def _round_up(x, m):
    return (x + m - 1) // m * m


def _proj_tile(hw, target=1024):
    """8-aligned spatial tile with minimal padding (<8 rows/tile), ~target rows."""
    nt = max(1, -(-hw // target))
    tp = _round_up(-(-hw // nt), 8)
    return tp, nt * tp


def _cin_chunk(cp):
    """Contraction-axis chunk (cp is a multiple of 128); capped at 256."""
    return 256 if cp % 256 == 0 else 128


def _vmem_limit(est_bytes):
    """Explicit scoped-VMEM limit: >=32 MiB, capped at v7x's 64 MiB physical."""
    return int(min(64 * 2 ** 20, max(32 * 2 ** 20, est_bytes)))


# --------------------------------------------------------------------------
# Pallas kernels
# --------------------------------------------------------------------------
def _dilated_kernel(*refs, offsets, rows_out, inv_hw, with_pool):
    """3x3 dilated conv + BN + ReLU over the valid output rows of a per-rate
    zero-padded, spatially-flattened image.

    The 9 taps are static row-offset (pl.ds) reads of the resident bf16 block
    (no f32 upcast, no rolls, no im2col); grid axis 1 chunks the input-channel
    contraction with an f32 accumulator scratch.

    When `with_pool`, the whole image-pooling branch (GAP -> 1x1 conv -> BN ->
    ReLU -> projection slice) is fused in: summing the zero-padded block equals
    summing x, and the branch leaves as a per-batch (1, CO) bias `pb` (bilinear
    upsampling from a 1x1 source is a broadcast)."""
    if with_pool:
        (x_ref, w_ref, s_ref, b_ref, wpl_ref, spl_ref, bpl_ref, wpp_ref,
         o_ref, pb_ref, acc_ref, pool_ref) = refs
    else:
        x_ref, w_ref, s_ref, b_ref, o_ref, acc_ref = refs

    k = pl.program_id(1)
    nk = pl.num_programs(1)

    @pl.when(k == 0)
    def _():
        acc_ref[...] = jnp.zeros_like(acc_ref)
        if with_pool:
            pool_ref[...] = jnp.zeros_like(pool_ref)

    acc = acc_ref[...]
    for t, off in enumerate(offsets):                        # static unroll (9)
        xt = x_ref[0, pl.ds(off, rows_out), :]               # (rows_out, ck) bf16
        acc = acc + jnp.dot(xt, w_ref[t], preferred_element_type=jnp.float32)
    acc_ref[...] = acc

    if with_pool:
        xs = jnp.sum(x_ref[0].astype(jnp.float32), axis=0, keepdims=True) * inv_hw
        pool_ref[...] += jnp.dot(xs.astype(jnp.bfloat16), wpl_ref[...],
                                 preferred_element_type=jnp.float32)

    @pl.when(k == nk - 1)
    def _():
        y = jnp.maximum(acc_ref[...] * s_ref[...] + b_ref[...], 0.0)
        o_ref[0] = y.astype(o_ref.dtype)
        if with_pool:
            yp = jnp.maximum(pool_ref[...] * spl_ref[...] + bpl_ref[...], 0.0)
            pb_ref[0] = jnp.dot(yp.astype(jnp.bfloat16), wpp_ref[...],
                                preferred_element_type=jnp.float32)


def _project_kernel(*refs, nrates):
    """Concat-free projection with blocks[0..2] folded in:
        pre = x @ Wx                      (Wx = w0@Wp0 + diag(bn1_s)@Wp1, f32 fold)
            + relu(x) @ Wp2               (blocks[2], computed from the x tile)
            + sum_i z_i @ Wp_{3+i}        (dilated branches)
            + pb                          (fused image-pool branch, per batch)
        out = relu(pre * sproj + bproj')  (bproj' absorbs bn1_shift @ Wp1)
    The (M, Ccat) concat is never materialized; output is bf16."""
    x_ref = refs[0]
    z_refs = refs[1:1 + nrates]
    i = 1 + nrates
    pb_ref, wx_ref, wr_ref = refs[i], refs[i + 1], refs[i + 2]
    i += 3
    if nrates:
        wz_ref = refs[i]
        i += 1
    s_ref, b_ref, o_ref = refs[i], refs[i + 1], refs[i + 2]

    xb = x_ref[0]                                            # (tp, CP) bf16
    acc = jnp.dot(xb, wx_ref[...], preferred_element_type=jnp.float32)
    acc = acc + jnp.dot(jnp.maximum(xb, 0), wr_ref[...],
                        preferred_element_type=jnp.float32)
    for r in range(nrates):
        acc = acc + jnp.dot(z_refs[r][0], wz_ref[r],
                            preferred_element_type=jnp.float32)
    acc = acc + pb_ref[0]
    y = jnp.maximum(acc * s_ref[...] + b_ref[...], 0.0)
    o_ref[0] = y.astype(o_ref.dtype)


# --------------------------------------------------------------------------
# pallas_call wrappers
# --------------------------------------------------------------------------
def _dilated_branch(xpr, wtaps, s, b, pool_args, *, rate, H, W, with_pool):
    N, Lp_pad, CP = xpr.shape
    CO = wtaps.shape[2]
    ck = _cin_chunk(CP)
    Wp = W + 2 * rate
    rows_out = H * Wp                      # valid output rows (padded columns)
    offsets = tuple(ky * rate * Wp + kx * rate
                    for ky in range(3) for kx in range(3))
    kernel = functools.partial(_dilated_kernel, offsets=offsets,
                               rows_out=rows_out, inv_hw=1.0 / (H * W),
                               with_pool=with_pool)
    in_specs = [
        pl.BlockSpec((1, Lp_pad, ck), lambda n, k: (n, 0, k)),
        pl.BlockSpec((9, ck, CO), lambda n, k: (0, k, 0)),
        pl.BlockSpec((1, CO), lambda n, k: (0, 0)),
        pl.BlockSpec((1, CO), lambda n, k: (0, 0)),
    ]
    inputs = [xpr, wtaps, s, b]
    out_shape = [jax.ShapeDtypeStruct((N, rows_out, CO), jnp.bfloat16)]
    out_specs = [pl.BlockSpec((1, rows_out, CO), lambda n, k: (n, 0, 0))]
    scratch = [pltpu.VMEM((rows_out, CO), jnp.float32)]
    if with_pool:
        wpool, spool, bpool, wpp = pool_args
        in_specs += [pl.BlockSpec((ck, CO), lambda n, k: (k, 0)),
                     pl.BlockSpec((1, CO), lambda n, k: (0, 0)),
                     pl.BlockSpec((1, CO), lambda n, k: (0, 0)),
                     pl.BlockSpec((CO, CO), lambda n, k: (0, 0))]
        inputs += [wpool, spool, bpool, wpp]
        out_shape.append(jax.ShapeDtypeStruct((N, 1, CO), jnp.float32))
        out_specs.append(pl.BlockSpec((1, 1, CO), lambda n, k: (n, 0, 0)))
        scratch.append(pltpu.VMEM((1, CO), jnp.float32))
    est = (2 * Lp_pad * ck * 2             # double-buffered input chunk
           + 2 * 9 * ck * CO * 2           # double-buffered weight taps
           + rows_out * CO * 4             # f32 accumulator
           + 2 * rows_out * CO * 2         # resident output
           + (2 << 20))
    # TODO(synk): add a halo'd spatial-tile grid axis (parallel) so both v7x
    # TensorCores work on this branch when N == 1 and the W+2*rate column
    # padding can be trimmed in-kernel.
    out = pl.pallas_call(
        kernel,
        out_shape=tuple(out_shape),
        grid_spec=pltpu.PrefetchScalarGridSpec(
            num_scalar_prefetch=0, grid=(N, CP // ck),
            in_specs=in_specs, out_specs=out_specs, scratch_shapes=scratch),
        compiler_params=pltpu.CompilerParams(
            dimension_semantics=("parallel", "arbitrary"),
            vmem_limit_bytes=_vmem_limit(est)),
    )(*inputs)
    if with_pool:
        return out
    return out[0]


def _project(x3, zs, pb, wx, wr, wz, s, b, *, tp):
    N, HWp, CP = x3.shape
    CO = wx.shape[1]
    R = len(zs)
    kernel = functools.partial(_project_kernel, nrates=R)
    xz_spec = pl.BlockSpec((1, tp, CP), lambda n, p: (n, p, 0))
    in_specs = ([xz_spec] * (1 + R) +
                [pl.BlockSpec((1, 1, CO), lambda n, p: (n, 0, 0)),
                 pl.BlockSpec((CP, CO), lambda n, p: (0, 0)),
                 pl.BlockSpec((CP, CO), lambda n, p: (0, 0))] +
                ([pl.BlockSpec((R, CP, CO), lambda n, p: (0, 0, 0))] if R else []) +
                [pl.BlockSpec((1, CO), lambda n, p: (0, 0)),
                 pl.BlockSpec((1, CO), lambda n, p: (0, 0))])
    inputs = [x3, *zs, pb, wx, wr] + ([wz] if R else []) + [s, b]
    est = (2 * (1 + R) * tp * CP * 2       # double-buffered x / z tiles
           + 2 * tp * CO * 2               # double-buffered output tile
           + 2 * (2 + R) * CP * CO * 2     # resident weights
           + (2 << 20))
    return pl.pallas_call(
        kernel,
        out_shape=jax.ShapeDtypeStruct((N, HWp, CO), jnp.bfloat16),
        grid_spec=pltpu.PrefetchScalarGridSpec(
            num_scalar_prefetch=0, grid=(N, HWp // tp),
            in_specs=in_specs,
            out_specs=pl.BlockSpec((1, tp, CO), lambda n, p: (n, p, 0))),
        compiler_params=pltpu.CompilerParams(
            dimension_semantics=("parallel", "parallel"),
            vmem_limit_bytes=_vmem_limit(est)),
    )(*inputs)


# --------------------------------------------------------------------------
# Parameters
# --------------------------------------------------------------------------
def _fold_bn(gamma, beta, mean, var):
    scale = gamma / jnp.sqrt(var + EPS)
    shift = beta - mean * scale
    return scale, shift


def init_params(key, in_channels, out_channels, atrous_rates):
    # The reference forward applies BatchNorm2d(out_channels) and ReLU directly
    # to x, which only type-checks when in_channels == out_channels.
    assert in_channels == out_channels, "reference forward requires Cin == Cout"
    C = out_channels
    r = len(atrous_rates)
    keys = iter(jax.random.split(key, 8 + 2 * r))

    def conv_w(k, cin, cout, kh=1, kw=1):
        fan_in = cin * kh * kw
        return jax.random.normal(k, (kh, kw, cin, cout), jnp.float32) / jnp.sqrt(fan_in)

    def bn(k, c):
        k1, k2, k3, k4 = jax.random.split(k, 4)
        gamma = jax.random.uniform(k1, (c,), minval=0.5, maxval=1.5)
        beta = 0.1 * jax.random.normal(k2, (c,))
        mean = 0.1 * jax.random.normal(k3, (c,))
        var = jax.random.uniform(k4, (c,), minval=0.5, maxval=1.5)
        return _fold_bn(gamma, beta, mean, var)

    p = {}
    p['w0'] = conv_w(next(keys), in_channels, C)[0, 0]              # (Cin, C)
    p['bn1_scale'], p['bn1_shift'] = bn(next(keys), C)              # blocks[1] BN(x)
    for i, _rate in enumerate(atrous_rates):
        p[f'wd{i}'] = conv_w(next(keys), in_channels, C, 3, 3)      # (3,3,Cin,C)
        p[f'bnd{i}_scale'], p[f'bnd{i}_shift'] = bn(next(keys), C)
    p['wpool'] = conv_w(next(keys), in_channels, C)[0, 0]
    p['bnpool_scale'], p['bnpool_shift'] = bn(next(keys), C)
    ccat = (4 + r) * C          # real concatenated width (see TODO at top)
    p['wproj'] = conv_w(next(keys), ccat, C)[0, 0]                  # (Ccat, C)
    p['bnproj_scale'], p['bnproj_shift'] = bn(next(keys), C)
    return p


# --------------------------------------------------------------------------
# Forward
# --------------------------------------------------------------------------
def aspp_forward(x_nchw, params, atrous_rates):
    N, Cin, H, W = x_nchw.shape
    C = params['w0'].shape[1]
    assert Cin == C, "reference forward requires Cin == Cout"
    R = len(atrous_rates)
    CP = _round_up(C, 128)                      # lane-padded channel width
    HW = H * W
    tp, HWp = _proj_tile(HW)

    # ---- fold + pack parameters (fold in f32, then pad channels to CP, bf16)
    def padw(w):                                # (cin, cout) -> (CP, CP) bf16
        return jnp.pad(w, ((0, CP - w.shape[0]), (0, CP - w.shape[1]))
                       ).astype(jnp.bfloat16)

    def padv(v):                                # (C,) -> (1, CP) f32
        return jnp.pad(v, (0, CP - v.shape[0])).reshape(1, CP).astype(jnp.float32)

    wproj = params['wproj']                                     # ((4+R)*C, C) f32
    wps = [wproj[j * C:(j + 1) * C] for j in range(4 + R)]
    # blocks[0] (conv1x1) and blocks[1] (BN) fold into one x-weight + a bias;
    # blocks[2] (ReLU) keeps its own projection slice (applied in-kernel).
    wx_f = params['w0'] @ wps[0] + params['bn1_scale'][:, None] * wps[1]
    c1 = params['bn1_shift'] @ wps[1]                           # (C,)
    wx = padw(wx_f)
    wrelu = padw(wps[2])
    wz = jnp.stack([padw(wps[3 + i]) for i in range(R)], 0) if R else None
    wpp = padw(wps[3 + R])                                      # pooled-branch slice
    wpool = padw(params['wpool'])
    spool, bpool = padv(params['bnpool_scale']), padv(params['bnpool_shift'])
    sproj = padv(params['bnproj_scale'])
    bproj = padv(params['bnproj_shift'] + c1 * params['bnproj_scale'])
    wdil, sdil, bdil = [], [], []
    for i in range(R):
        wd = jnp.pad(params[f'wd{i}'],
                     ((0, 0), (0, 0), (0, CP - Cin), (0, CP - C)))
        wdil.append(wd.reshape(9, CP, CP).astype(jnp.bfloat16))
        sdil.append(padv(params[f'bnd{i}_scale']))
        bdil.append(padv(params[f'bnd{i}_shift']))

    # ---- input layout: NCHW -> NHWC, channels zero-padded to CP, bf16
    x_nhwc = jnp.transpose(x_nchw, (0, 2, 3, 1))
    x_c = jnp.pad(x_nhwc, ((0, 0), (0, 0), (0, 0), (0, CP - Cin))
                  ).astype(jnp.bfloat16)                        # (N, H, W, CP)
    x3 = x_c.reshape(N, HW, CP)
    if HWp != HW:
        x3 = jnp.pad(x3, ((0, 0), (0, HWp - HW), (0, 0)))

    # ---- dilated branches (image-pool branch fused into the first one)
    zs, pb = [], None
    for i, rate in enumerate(atrous_rates):
        Hp, Wp = H + 2 * rate, W + 2 * rate
        Lp = Hp * Wp
        Lp_pad = _round_up(Lp + 2 * rate, 8)    # keeps the last tap slice in-bounds
        xpr = jnp.pad(x_c, ((0, 0), (rate, rate), (rate, rate), (0, 0))
                      ).reshape(N, Lp, CP)
        xpr = jnp.pad(xpr, ((0, 0), (0, Lp_pad - Lp), (0, 0)))
        with_pool = (i == 0)
        res = _dilated_branch(xpr, wdil[i], sdil[i], bdil[i],
                              (wpool, spool, bpool, wpp) if with_pool else None,
                              rate=rate, H=H, W=W, with_pool=with_pool)
        z3 = res[0] if with_pool else res
        if with_pool:
            pb = res[1]                                        # (N, 1, CP) f32
        # TODO(synk): the kernel still computes the W+2*rate padded columns;
        # emitting valid columns directly would also remove this slice.
        z = z3.reshape(N, H, Wp, CP)[:, :, :W, :].reshape(N, HW, CP)
        if HWp != HW:
            z = jnp.pad(z, ((0, 0), (0, HWp - HW), (0, 0)))
        zs.append(z)

    if pb is None:                    # no atrous rates: plain-JAX image-pool branch
        pooled = jnp.mean(x_nhwc, axis=(1, 2))                  # (N, Cin) f32
        yp = jnp.maximum((pooled @ params['wpool']) * params['bnpool_scale']
                         + params['bnpool_shift'], 0.0)
        pbm = yp @ wps[3 + R]                                   # (N, C)
        pb = jnp.pad(pbm, ((0, 0), (0, CP - C)))[:, None, :].astype(jnp.float32)

    # ---- projection (concat + 1x1 conv + BN + ReLU; concat never materialized,
    #      blocks[0..2] folded in, pooled branch enters as a per-batch bias)
    out3 = _project(x3, zs, pb, wx, wrelu, wz, sproj, bproj, tp=tp)   # bf16
    out = out3[:, :HW, :C].reshape(N, H, W, C).astype(jnp.float32)
    return jnp.transpose(out, (0, 3, 1, 2))                     # back to NCHW


if __name__ == "__main__":
    key = jax.random.PRNGKey(0)
    kx, kp = jax.random.split(key)
    N, C, H, W = 2, 4, 16, 16
    atrous_rates = (2, 4)

    x = jax.random.normal(kx, (N, C, H, W), jnp.float32)
    params = init_params(kp, C, C, atrous_rates)

    fwd = jax.jit(functools.partial(aspp_forward, atrous_rates=atrous_rates))
    out = jax.block_until_ready(fwd(x, params))
    assert out.shape == (N, C, H, W)
    assert bool(jnp.all(jnp.isfinite(out)))
    print("KERNEL_OK")
</pallas_src>

<mosaic_0001>
module attributes {stable_mosaic.version = 11 : i64} {
  func.func @_dilated_kernel(%arg0: i32, %arg1: i32, %arg2: memref<1x408x128xbf16, #tpu.memory_space<vmem>>, %arg3: memref<9x128x128xbf16, #tpu.memory_space<vmem>>, %arg4: memref<1x128xf32, #tpu.memory_space<vmem>>, %arg5: memref<1x128xf32, #tpu.memory_space<vmem>>, %arg6: memref<128x128xbf16, #tpu.memory_space<vmem>>, %arg7: memref<1x128xf32, #tpu.memory_space<vmem>>, %arg8: memref<1x128xf32, #tpu.memory_space<vmem>>, %arg9: memref<128x128xbf16, #tpu.memory_space<vmem>>, %arg10: memref<1x320x128xbf16, #tpu.memory_space<vmem>>, %arg11: memref<1x1x128xf32, #tpu.memory_space<vmem>>, %arg12: memref<320x128xf32, #tpu.memory_space<vmem>>, %arg13: memref<1x128xf32, #tpu.memory_space<vmem>>) attributes {dimension_semantics = [#tpu.dimension_semantics<parallel>, #tpu.dimension_semantics<arbitrary>], iteration_bounds = array<i64: 2, 1>, scalar_prefetch = 0 : i64, scratch_operands = 2 : i64, tpu.core_type = #tpu.core_type<tc>, window_params = [{transform_indices = @transform_0, window_bounds = array<i64: 1, 408, 128>}, {transform_indices = @transform_1, window_bounds = array<i64: 9, 128, 128>}, {pipeline_mode = #tpu.pipeline_mode<synchronous>, transform_indices = @transform_2, window_bounds = array<i64: 1, 128>}, {pipeline_mode = #tpu.pipeline_mode<synchronous>, transform_indices = @transform_3, window_bounds = array<i64: 1, 128>}, {transform_indices = @transform_4, window_bounds = array<i64: 128, 128>}, {pipeline_mode = #tpu.pipeline_mode<synchronous>, transform_indices = @transform_5, window_bounds = array<i64: 1, 128>}, {pipeline_mode = #tpu.pipeline_mode<synchronous>, transform_indices = @transform_6, window_bounds = array<i64: 1, 128>}, {pipeline_mode = #tpu.pipeline_mode<synchronous>, transform_indices = @transform_7, window_bounds = array<i64: 128, 128>}, {transform_indices = @transform_8, window_bounds = array<i64: 1, 320, 128>}, {transform_indices = @transform_9, window_bounds = array<i64: 1, 1, 128>}]} {
    %c0_i32 = arith.constant 0 : i32
    %0 = arith.cmpi eq, %arg1, %c0_i32 : i32
    %1 = arith.extui %0 : i1 to i32
    %c0_i32_0 = arith.constant 0 : i32
    %2 = arith.cmpi ne, %1, %c0_i32_0 : i32
    scf.if %2 {
      %cst_66 = arith.constant 0.000000e+00 : f32
      %75 = vector.broadcast %cst_66 : f32 to vector<320x128xf32>
      %c0_67 = arith.constant 0 : index
      %c0_68 = arith.constant 0 : index
      %76 = vector.load %arg12[%c0_67, %c0_68] : memref<320x128xf32, #tpu.memory_space<vmem>>, vector<320x128xf32>
      tpu.vector_store %arg12[%c0_67, %c0_68], %75 {strides = array<i32>} : memref<320x128xf32, #tpu.memory_space<vmem>>, vector<320x128xf32>,
      %cst_69 = arith.constant 0.000000e+00 : f32
      %77 = vector.broadcast %cst_69 : f32 to vector<1x128xf32>
      %c0_70 = arith.constant 0 : index
      %c0_71 = arith.constant 0 : index
      %78 = vector.load %arg13[%c0_70, %c0_71] : memref<1x128xf32, #tpu.memory_space<vmem>>, vector<1x128xf32>
      tpu.vector_store %arg13[%c0_70, %c0_71], %77 {strides = array<i32>} : memref<1x128xf32, #tpu.memory_space<vmem>>, vector<1x128xf32>,
    } else {
    }
    %c0 = arith.constant 0 : index
    %c0_1 = arith.constant 0 : index
    %3 = vector.load %arg12[%c0, %c0_1] : memref<320x128xf32, #tpu.memory_space<vmem>>, vector<320x128xf32>
    %c0_2 = arith.constant 0 : index
    %c0_3 = arith.constant 0 : index
    %c0_4 = arith.constant 0 : index
    %4 = vector.load %arg2[%c0_2, %c0_3, %c0_4] : memref<1x408x128xbf16, #tpu.memory_space<vmem>>, vector<1x320x128xbf16>
    %5 = vector.shape_cast %4 : vector<1x320x128xbf16> to vector<320x128xbf16>
    %c0_5 = arith.constant 0 : index
    %c0_6 = arith.constant 0 : index
    %c0_7 = arith.constant 0 : index
    %6 = vector.load %arg3[%c0_5, %c0_6, %c0_7] : memref<9x128x128xbf16, #tpu.memory_space<vmem>>, vector<1x128x128xbf16>
    %7 = vector.shape_cast %6 : vector<1x128x128xbf16> to vector<128x128xbf16>
    %cst = arith.constant dense<0.000000e+00> : vector<320x128xf32>
    %8 = tpu.matmul %5, %7, %cst {dimension_numbers = #tpu.dot_dimension_numbers<[1], [0], [0], [1], [0, 0, 1, 1], [], []>} : vector<320x128xbf16>, vector<128x128xbf16>, vector<320x128xf32> -> vector<320x128xf32>
    %9 = arith.addf %3, %8 : vector<320x128xf32>
    %c0_8 = arith.constant 0 : index
    %c2 = arith.constant 2 : index
    %c0_9 = arith.constant 0 : index
    %10 = vector.load %arg2[%c0_8, %c2, %c0_9] : memref<1x408x128xbf16, #tpu.memory_space<vmem>>, vector<1x320x128xbf16>
    %11 = vector.shape_cast %10 : vector<1x320x128xbf16> to vector<320x128xbf16>
    %c1 = arith.constant 1 : index
    %c0_10 = arith.constant 0 : index
    %c0_11 = arith.constant 0 : index
    %12 = vector.load %arg3[%c1, %c0_10, %c0_11] : memref<9x128x128xbf16, #tpu.memory_space<vmem>>, vector<1x128x128xbf16>
    %13 = vector.shape_cast %12 : vector<1x128x128xbf16> to vector<128x128xbf16>
    %cst_12 = arith.constant dense<0.000000e+00> : vector<320x128xf32>
    %14 = tpu.matmul %11, %13, %cst_12 {dimension_numbers = #tpu.dot_dimension_numbers<[1], [0], [0], [1], [0, 0, 1, 1], [], []>} : vector<320x128xbf16>, vector<128x128xbf16>, vector<320x128xf32> -> vector<320x128xf32>
    %15 = arith.addf %9, %14 : vector<320x128xf32>
    %c0_13 = arith.constant 0 : index
    %c4 = arith.constant 4 : index
    %c0_14 = arith.constant 0 : index
    %16 = vector.load %arg2[%c0_13, %c4, %c0_14] : memref<1x408x128xbf16, #tpu.memory_space<vmem>>, vector<1x320x128xbf16>
    %17 = vector.shape_cast %16 : vector<1x320x128xbf16> to vector<320x128xbf16>
    %c2_15 = arith.constant 2 : index
    %c0_16 = arith.constant 0 : index
    %c0_17 = arith.constant 0 : index
    %18 = vector.load %arg3[%c2_15, %c0_16, %c0_17] : memref<9x128x128xbf16, #tpu.memory_space<vmem>>, vector<1x128x128xbf16>
    %19 = vector.shape_cast %18 : vector<1x128x128xbf16> to vector<128x128xbf16>
    %cst_18 = arith.constant dense<0.000000e+00> : vector<320x128xf32>
    %20 = tpu.matmul %17, %19, %cst_18 {dimension_numbers = #tpu.dot_dimension_numbers<[1], [0], [0], [1], [0, 0, 1, 1], [], []>} : vector<320x128xbf16>, vector<128x128xbf16>, vector<320x128xf32> -> vector<320x128xf32>
    %21 = arith.addf %15, %20 : vector<320x128xf32>
    %c0_19 = arith.constant 0 : index
    %c40 = arith.constant 40 : index
    %c0_20 = arith.constant 0 : index
    %22 = vector.load %arg2[%c0_19, %c40, %c0_20] : memref<1x408x128xbf16, #tpu.memory_space<vmem>>, vector<1x320x128xbf16>
    %23 = vector.shape_cast %22 : vector<1x320x128xbf16> to vector<320x128xbf16>
    %c3 = arith.constant 3 : index
    %c0_21 = arith.constant 0 : index
    %c0_22 = arith.constant 0 : index
    %24 = vector.load %arg3[%c3, %c0_21, %c0_22] : memref<9x128x128xbf16, #tpu.memory_space<vmem>>, vector<1x128x128xbf16>
    %25 = vector.shape_cast %24 : vector<1x128x128xbf16> to vector<128x128xbf16>
    %cst_23 = arith.constant dense<0.000000e+00> : vector<320x128xf32>
    %26 = tpu.matmul %23, %25, %cst_23 {dimension_numbers = #tpu.dot_dimension_numbers<[1], [0], [0], [1], [0, 0, 1, 1], [], []>} : vector<320x128xbf16>, vector<128x128xbf16>, vector<320x128xf32> -> vector<320x128xf32>
    %27 = arith.addf %21, %26 : vector<320x128xf32>
    %c0_24 = arith.constant 0 : index
    %c42 = arith.constant 42 : index
    %c0_25 = arith.constant 0 : index
    %28 = vector.load %arg2[%c0_24, %c42, %c0_25] : memref<1x408x128xbf16, #tpu.memory_space<vmem>>, vector<1x320x128xbf16>
    %29 = vector.shape_cast %28 : vector<1x320x128xbf16> to vector<320x128xbf16>
    %c4_26 = arith.constant 4 : index
    %c0_27 = arith.constant 0 : index
    %c0_28 = arith.constant 0 : index
    %30 = vector.load %arg3[%c4_26, %c0_27, %c0_28] : memref<9x128x128xbf16, #tpu.memory_space<vmem>>, vector<1x128x128xbf16>
    %31 = vector.shape_cast %30 : vector<1x128x128xbf16> to vector<128x128xbf16>
    %cst_29 = arith.constant dense<0.000000e+00> : vector<320x128xf32>
    %32 = tpu.matmul %29, %31, %cst_29 {dimension_numbers = #tpu.dot_dimension_numbers<[1], [0], [0], [1], [0, 0, 1, 1], [], []>} : vector<320x128xbf16>, vector<128x128xbf16>, vector<320x128xf32> -> vector<320x128xf32>
    %33 = arith.addf %27, %32 : vector<320x128xf32>
    %c0_30 = arith.constant 0 : index
    %c44 = arith.constant 44 : index
    %c0_31 = arith.constant 0 : index
    %34 = vector.load %arg2[%c0_30, %c44, %c0_31] : memref<1x408x128xbf16, #tpu.memory_space<vmem>>, vector<1x320x128xbf16>
    %35 = vector.shape_cast %34 : vector<1x320x128xbf16> to vector<320x128xbf16>
    %c5 = arith.constant 5 : index
    %c0_32 = arith.constant 0 : index
    %c0_33 = arith.constant 0 : index
    %36 = vector.load %arg3[%c5, %c0_32, %c0_33] : memref<9x128x128xbf16, #tpu.memory_space<vmem>>, vector<1x128x128xbf16>
    %37 = vector.shape_cast %36 : vector<1x128x128xbf16> to vector<128x128xbf16>
    %cst_34 = arith.constant dense<0.000000e+00> : vector<320x128xf32>
    %38 = tpu.matmul %35, %37, %cst_34 {dimension_numbers = #tpu.dot_dimension_numbers<[1], [0], [0], [1], [0, 0, 1, 1], [], []>} : vector<320x128xbf16>, vector<128x128xbf16>, vector<320x128xf32> -> vector<320x128xf32>
    %39 = arith.addf %33, %38 : vector<320x128xf32>
    %c0_35 = arith.constant 0 : index
    %c80 = arith.constant 80 : index
    %c0_36 = arith.constant 0 : index
    %40 = vector.load %arg2[%c0_35, %c80, %c0_36] : memref<1x408x128xbf16, #tpu.memory_space<vmem>>, vector<1x320x128xbf16>
    %41 = vector.shape_cast %40 : vector<1x320x128xbf16> to vector<320x128xbf16>
    %c6 = arith.constant 6 : index
    %c0_37 = arith.constant 0 : index
    %c0_38 = arith.constant 0 : index
    %42 = vector.load %arg3[%c6, %c0_37, %c0_38] : memref<9x128x128xbf16, #tpu.memory_space<vmem>>, vector<1x128x128xbf16>
    %43 = vector.shape_cast %42 : vector<1x128x128xbf16> to vector<128x128xbf16>
    %cst_39 = arith.constant dense<0.000000e+00> : vector<320x128xf32>
    %44 = tpu.matmul %41, %43, %cst_39 {dimension_numbers = #tpu.dot_dimension_numbers<[1], [0], [0], [1], [0, 0, 1, 1], [], []>} : vector<320x128xbf16>, vector<128x128xbf16>, vector<320x128xf32> -> vector<320x128xf32>
    %45 = arith.addf %39, %44 : vector<320x128xf32>
    %c0_40 = arith.constant 0 : index
    %c82 = arith.constant 82 : index
    %c0_41 = arith.constant 0 : index
    %46 = vector.load %arg2[%c0_40, %c82, %c0_41] : memref<1x408x128xbf16, #tpu.memory_space<vmem>>, vector<1x320x128xbf16>
    %47 = vector.shape_cast %46 : vector<1x320x128xbf16> to vector<320x128xbf16>
    %c7 = arith.constant 7 : index
    %c0_42 = arith.constant 0 : index
    %c0_43 = arith.constant 0 : index
    %48 = vector.load %arg3[%c7, %c0_42, %c0_43] : memref<9x128x128xbf16, #tpu.memory_space<vmem>>, vector<1x128x128xbf16>
    %49 = vector.shape_cast %48 : vector<1x128x128xbf16> to vector<128x128xbf16>
    %cst_44 = arith.constant dense<0.000000e+00> : vector<320x128xf32>
    %50 = tpu.matmul %47, %49, %cst_44 {dimension_numbers = #tpu.dot_dimension_numbers<[1], [0], [0], [1], [0, 0, 1, 1], [], []>} : vector<320x128xbf16>, vector<128x128xbf16>, vector<320x128xf32> -> vector<320x128xf32>
    %51 = arith.addf %45, %50 : vector<320x128xf32>
    %c0_45 = arith.constant 0 : index
    %c84 = arith.constant 84 : index
    %c0_46 = arith.constant 0 : index
    %52 = vector.load %arg2[%c0_45, %c84, %c0_46] : memref<1x408x128xbf16, #tpu.memory_space<vmem>>, vector<1x320x128xbf16>
    %53 = vector.shape_cast %52 : vector<1x320x128xbf16> to vector<320x128xbf16>
    %c8 = arith.constant 8 : index
    %c0_47 = arith.constant 0 : index
    %c0_48 = arith.constant 0 : index
    %54 = vector.load %arg3[%c8, %c0_47, %c0_48] : memref<9x128x128xbf16, #tpu.memory_space<vmem>>, vector<1x128x128xbf16>
    %55 = vector.shape_cast %54 : vector<1x128x128xbf16> to vector<128x128xbf16>
    %cst_49 = arith.constant dense<0.000000e+00> : vector<320x128xf32>
    %56 = tpu.matmul %53, %55, %cst_49 {dimension_numbers = #tpu.dot_dimension_numbers<[1], [0], [0], [1], [0, 0, 1, 1], [], []>} : vector<320x128xbf16>, vector<128x128xbf16>, vector<320x128xf32> -> vector<320x128xf32>
    %57 = arith.addf %51, %56 : vector<320x128xf32>
    %c0_50 = arith.constant 0 : index
    %c0_51 = arith.constant 0 : index
    %58 = vector.load %arg12[%c0_50, %c0_51] : memref<320x128xf32, #tpu.memory_space<vmem>>, vector<320x128xf32>
    tpu.vector_store %arg12[%c0_50, %c0_51], %57 {strides = array<i32>} : memref<320x128xf32, #tpu.memory_space<vmem>>, vector<320x128xf32>,
    %c0_52 = arith.constant 0 : index
    %c0_53 = arith.constant 0 : index
    %c0_54 = arith.constant 0 : index
    %59 = vector.load %arg2[%c0_52, %c0_53, %c0_54] : memref<1x408x128xbf16, #tpu.memory_space<vmem>>, vector<1x408x128xbf16>
    %60 = vector.shape_cast %59 : vector<1x408x128xbf16> to vector<408x128xbf16>
    %61 = arith.extf %60 : vector<408x128xbf16> to vector<408x128xf32>
    %cst_55 = arith.constant dense<0.000000e+00> : vector<128xf32>
    %62 = vector.multi_reduction <add>, %61, %cst_55 [0] : vector<408x128xf32> to vector<128xf32>
    %63 = vector.shape_cast %62 : vector<128xf32> to vector<1x128xf32>
    %cst_56 = arith.constant 3.906250e-03 : f32
    %64 = vector.broadcast %cst_56 : f32 to vector<1x128xf32>
    %65 = arith.mulf %63, %64 : vector<1x128xf32>
    %c0_57 = arith.constant 0 : index
    %c0_58 = arith.constant 0 : index
    %66 = vector.load %arg13[%c0_57, %c0_58] : memref<1x128xf32, #tpu.memory_space<vmem>>, vector<1x128xf32>
    %67 = arith.truncf %65 : vector<1x128xf32> to vector<1x128xbf16>
    %c0_59 = arith.constant 0 : index
    %c0_60 = arith.constant 0 : index
    %68 = vector.load %arg6[%c0_59, %c0_60] : memref<128x128xbf16, #tpu.memory_space<vmem>>, vector<128x128xbf16>
    %cst_61 = arith.constant dense<0.000000e+00> : vector<1x128xf32>
    %69 = tpu.matmul %67, %68, %cst_61 {dimension_numbers = #tpu.dot_dimension_numbers<[1], [0], [0], [1], [0, 0, 1, 1], [], []>} : vector<1x128xbf16>, vector<128x128xbf16>, vector<1x128xf32> -> vector<1x128xf32>
    %70 = arith.addf %66, %69 : vector<1x128xf32>
    %c0_62 = arith.constant 0 : index
    %c0_63 = arith.constant 0 : index
    %71 = vector.load %arg13[%c0_62, %c0_63] : memref<1x128xf32, #tpu.memory_space<vmem>>, vector<1x128xf32>
    tpu.vector_store %arg13[%c0_62, %c0_63], %70 {strides = array<i32>} : memref<1x128xf32, #tpu.memory_space<vmem>>, vector<1x128xf32>,
    %c0_i32_64 = arith.constant 0 : i32
    %72 = arith.cmpi eq, %arg1, %c0_i32_64 : i32
    %73 = arith.extui %72 : i1 to i32
    %c0_i32_65 = arith.constant 0 : i32
    %74 = arith.cmpi ne, %73, %c0_i32_65 : i32
    scf.if %74 {
      %c0_66 = arith.constant 0 : index
      %c0_67 = arith.constant 0 : index
      %75 = vector.load %arg12[%c0_66, %c0_67] : memref<320x128xf32, #tpu.memory_space<vmem>>, vector<320x128xf32>
      %c0_68 = arith.constant 0 : index
      %c0_69 = arith.constant 0 : index
      %76 = vector.load %arg4[%c0_68, %c0_69] : memref<1x128xf32, #tpu.memory_space<vmem>>, vector<1x128xf32>
      %77 = vector.broadcast %76 : vector<1x128xf32> to vector<320x128xf32>
      %78 = arith.mulf %75, %77 : vector<320x128xf32>
      %c0_70 = arith.constant 0 : index
      %c0_71 = arith.constant 0 : index
      %79 = vector.load %arg5[%c0_70, %c0_71] : memref<1x128xf32, #tpu.memory_space<vmem>>, vector<1x128xf32>
      %80 = vector.broadcast %79 : vector<1x128xf32> to vector<320x128xf32>
      %81 = arith.addf %78, %80 : vector<320x128xf32>
      %cst_72 = arith.constant 0.000000e+00 : f32
      %82 = vector.broadcast %cst_72 : f32 to vector<320x128xf32>
      %83 = arith.maximumf %81, %82 : vector<320x128xf32>
      %84 = arith.truncf %83 : vector<320x128xf32> to vector<320x128xbf16>
      %c0_73 = arith.constant 0 : index
      %c0_74 = arith.constant 0 : index
      %c0_75 = arith.constant 0 : index
      %85 = vector.load %arg10[%c0_73, %c0_74, %c0_75] : memref<1x320x128xbf16, #tpu.memory_space<vmem>>, vector<1x320x128xbf16>
      %86 = vector.shape_cast %85 : vector<1x320x128xbf16> to vector<320x128xbf16>
      %87 = vector.shape_cast %84 : vector<320x128xbf16> to vector<1x320x128xbf16>
      tpu.vector_store %arg10[%c0_73, %c0_74, %c0_75], %87 {strides = array<i32>} : memref<1x320x128xbf16, #tpu.memory_space<vmem>>, vector<1x320x128xbf16>,
      %c0_76 = arith.constant 0 : index
      %c0_77 = arith.constant 0 : index
      %88 = vector.load %arg13[%c0_76, %c0_77] : memref<1x128xf32, #tpu.memory_space<vmem>>, vector<1x128xf32>
      %c0_78 = arith.constant 0 : index
      %c0_79 = arith.constant 0 : index
      %89 = vector.load %arg7[%c0_78, %c0_79] : memref<1x128xf32, #tpu.memory_space<vmem>>, vector<1x128xf32>
      %90 = arith.mulf %88, %89 : vector<1x128xf32>
      %c0_80 = arith.constant 0 : index
      %c0_81 = arith.constant 0 : index
      %91 = vector.load %arg8[%c0_80, %c0_81] : memref<1x128xf32, #tpu.memory_space<vmem>>, vector<1x128xf32>
      %92 = arith.addf %90, %91 : vector<1x128xf32>
      %cst_82 = arith.constant 0.000000e+00 : f32
      %93 = vector.broadcast %cst_82 : f32 to vector<1x128xf32>
      %94 = arith.maximumf %92, %93 : vector<1x128xf32>
      %95 = arith.truncf %94 : vector<1x128xf32> to vector<1x128xbf16>
      %c0_83 = arith.constant 0 : index
      %c0_84 = arith.constant 0 : index
      %96 = vector.load %arg9[%c0_83, %c0_84] : memref<128x128xbf16, #tpu.memory_space<vmem>>, vector<128x128xbf16>
      %cst_85 = arith.constant dense<0.000000e+00> : vector<1x128xf32>
      %97 = tpu.matmul %95, %96, %cst_85 {dimension_numbers = #tpu.dot_dimension_numbers<[1], [0], [0], [1], [0, 0, 1, 1], [], []>} : vector<1x128xbf16>, vector<128x128xbf16>, vector<1x128xf32> -> vector<1x128xf32>
      %c0_86 = arith.constant 0 : index
      %c0_87 = arith.constant 0 : index
      %c0_88 = arith.constant 0 : index
      %98 = vector.load %arg11[%c0_86, %c0_87, %c0_88] : memref<1x1x128xf32, #tpu.memory_space<vmem>>, vector<1x1x128xf32>
      %99 = vector.shape_cast %98 : vector<1x1x128xf32> to vector<1x128xf32>
      %100 = vector.shape_cast %97 : vector<1x128xf32> to vector<1x1x128xf32>
      tpu.vector_store %arg11[%c0_86, %c0_87, %c0_88], %100 {strides = array<i32>} : memref<1x1x128xf32, #tpu.memory_space<vmem>>, vector<1x1x128xf32>,
    } else {
    }
    return
  }
  func.func @transform_0(%arg0: i32, %arg1: i32) -> (i32, i32, i32) {
    %c0_i32 = arith.constant 0 : i32
    %c0_i32_0 = arith.constant 0 : i32
    return %arg0, %c0_i32, %arg1 : i32, i32, i32
  }
  func.func @transform_1(%arg0: i32, %arg1: i32) -> (i32, i32, i32) {
    %c0_i32 = arith.constant 0 : i32
    %c0_i32_0 = arith.constant 0 : i32
    %c0_i32_1 = arith.constant 0 : i32
    return %c0_i32, %arg1, %c0_i32_0 : i32, i32, i32
  }
  func.func @transform_2(%arg0: i32, %arg1: i32) -> (i32, i32) {
    %c0_i32 = arith.constant 0 : i32
    %c0_i32_0 = arith.constant 0 : i32
    %c0_i32_1 = arith.constant 0 : i32
    return %c0_i32, %c0_i32_0 : i32, i32
  }
  func.func @transform_3(%arg0: i32, %arg1: i32) -> (i32, i32) {
    %c0_i32 = arith.constant 0 : i32
    %c0_i32_0 = arith.constant 0 : i32
    %c0_i32_1 = arith.constant 0 : i32
    return %c0_i32, %c0_i32_0 : i32, i32
  }
  func.func @transform_4(%arg0: i32, %arg1: i32) -> (i32, i32) {
    %c0_i32 = arith.constant 0 : i32
    %c0_i32_0 = arith.constant 0 : i32
    return %arg1, %c0_i32 : i32, i32
  }
  func.func @transform_5(%arg0: i32, %arg1: i32) -> (i32, i32) {
    %c0_i32 = arith.constant 0 : i32
    %c0_i32_0 = arith.constant 0 : i32
    %c0_i32_1 = arith.constant 0 : i32
    return %c0_i32, %c0_i32_0 : i32, i32
  }
  func.func @transform_6(%arg0: i32, %arg1: i32) -> (i32, i32) {
    %c0_i32 = arith.constant 0 : i32
    %c0_i32_0 = arith.constant 0 : i32
    %c0_i32_1 = arith.constant 0 : i32
    return %c0_i32, %c0_i32_0 : i32, i32
  }
  func.func @transform_7(%arg0: i32, %arg1: i32) -> (i32, i32) {
    %c0_i32 = arith.constant 0 : i32
    %c0_i32_0 = arith.constant 0 : i32
    %c0_i32_1 = arith.constant 0 : i32
    return %c0_i32, %c0_i32_0 : i32, i32
  }
  func.func @transform_8(%arg0: i32, %arg1: i32) -> (i32, i32, i32) {
    %c0_i32 = arith.constant 0 : i32
    %c0_i32_0 = arith.constant 0 : i32
    %c0_i32_1 = arith.constant 0 : i32
    return %arg0, %c0_i32, %c0_i32_0 : i32, i32, i32
  }
  func.func @transform_9(%arg0: i32, %arg1: i32) -> (i32, i32, i32) {
    %c0_i32 = arith.constant 0 : i32
    %c0_i32_0 = arith.constant 0 : i32
    %c0_i32_1 = arith.constant 0 : i32
    return %arg0, %c0_i32, %c0_i32_0 : i32, i32, i32
  }
}

module attributes {stable_mosaic.version = 11 : i64} {
  func.func @_dilated_kernel(%arg0: i32, %arg1: i32, %arg2: memref<1x584x128xbf16, #tpu.memory_space<vmem>>, %arg3: memref<9x128x128xbf16, #tpu.memory_space<vmem>>, %arg4: memref<1x128xf32, #tpu.memory_space<vmem>>, %arg5: memref<1x128xf32, #tpu.memory_space<vmem>>, %arg6: memref<1x384x128xbf16, #tpu.memory_space<vmem>>, %arg7: memref<384x128xf32, #tpu.memory_space<vmem>>) attributes {dimension_semantics = [#tpu.dimension_semantics<parallel>, #tpu.dimension_semantics<arbitrary>], iteration_bounds = array<i64: 2, 1>, scalar_prefetch = 0 : i64, scratch_operands = 1 : i64, tpu.core_type = #tpu.core_type<tc>, window_params = [{transform_indices = @transform_0, window_bounds = array<i64: 1, 584, 128>}, {transform_indices = @transform_1, window_bounds = array<i64: 9, 128, 128>}, {pipeline_mode = #tpu.pipeline_mode<synchronous>, transform_indices = @transform_2, window_bounds = array<i64: 1, 128>}, {pipeline_mode = #tpu.pipeline_mode<synchronous>, transform_indices = @transform_3, window_bounds = array<i64: 1, 128>}, {transform_indices = @transform_4, window_bounds = array<i64: 1, 384, 128>}]} {
    %c0_i32 = arith.constant 0 : i32
    %0 = arith.cmpi eq, %arg1, %c0_i32 : i32
    %1 = arith.extui %0 : i1 to i32
    %c0_i32_0 = arith.constant 0 : i32
    %2 = arith.cmpi ne, %1, %c0_i32_0 : i32
    scf.if %2 {
      %cst_54 = arith.constant 0.000000e+00 : f32
      %62 = vector.broadcast %cst_54 : f32 to vector<384x128xf32>
      %c0_55 = arith.constant 0 : index
      %c0_56 = arith.constant 0 : index
      %63 = vector.load %arg7[%c0_55, %c0_56] : memref<384x128xf32, #tpu.memory_space<vmem>>, vector<384x128xf32>
      tpu.vector_store %arg7[%c0_55, %c0_56], %62 {strides = array<i32>} : memref<384x128xf32, #tpu.memory_space<vmem>>, vector<384x128xf32>,
    } else {
    }
    %c0 = arith.constant 0 : index
    %c0_1 = arith.constant 0 : index
    %3 = vector.load %arg7[%c0, %c0_1] : memref<384x128xf32, #tpu.memory_space<vmem>>, vector<384x128xf32>
    %c0_2 = arith.constant 0 : index
    %c0_3 = arith.constant 0 : index
    %c0_4 = arith.constant 0 : index
    %4 = vector.load %arg2[%c0_2, %c0_3, %c0_4] : memref<1x584x128xbf16, #tpu.memory_space<vmem>>, vector<1x384x128xbf16>
    %5 = vector.shape_cast %4 : vector<1x384x128xbf16> to vector<384x128xbf16>
    %c0_5 = arith.constant 0 : index
    %c0_6 = arith.constant 0 : index
    %c0_7 = arith.constant 0 : index
    %6 = vector.load %arg3[%c0_5, %c0_6, %c0_7] : memref<9x128x128xbf16, #tpu.memory_space<vmem>>, vector<1x128x128xbf16>
    %7 = vector.shape_cast %6 : vector<1x128x128xbf16> to vector<128x128xbf16>
    %cst = arith.constant dense<0.000000e+00> : vector<384x128xf32>
    %8 = tpu.matmul %5, %7, %cst {dimension_numbers = #tpu.dot_dimension_numbers<[1], [0], [0], [1], [0, 0, 1, 1], [], []>} : vector<384x128xbf16>, vector<128x128xbf16>, vector<384x128xf32> -> vector<384x128xf32>
    %9 = arith.addf %3, %8 : vector<384x128xf32>
    %c0_8 = arith.constant 0 : index
    %c4 = arith.constant 4 : index
    %c0_9 = arith.constant 0 : index
    %10 = vector.load %arg2[%c0_8, %c4, %c0_9] : memref<1x584x128xbf16, #tpu.memory_space<vmem>>, vector<1x384x128xbf16>
    %11 = vector.shape_cast %10 : vector<1x384x128xbf16> to vector<384x128xbf16>
    %c1 = arith.constant 1 : index
    %c0_10 = arith.constant 0 : index
    %c0_11 = arith.constant 0 : index
    %12 = vector.load %arg3[%c1, %c0_10, %c0_11] : memref<9x128x128xbf16, #tpu.memory_space<vmem>>, vector<1x128x128xbf16>
    %13 = vector.shape_cast %12 : vector<1x128x128xbf16> to vector<128x128xbf16>
    %cst_12 = arith.constant dense<0.000000e+00> : vector<384x128xf32>
    %14 = tpu.matmul %11, %13, %cst_12 {dimension_numbers = #tpu.dot_dimension_numbers<[1], [0], [0], [1], [0, 0, 1, 1], [], []>} : vector<384x128xbf16>, vector<128x128xbf16>, vector<384x128xf32> -> vector<384x128xf32>
    %15 = arith.addf %9, %14 : vector<384x128xf32>
    %c0_13 = arith.constant 0 : index
    %c8 = arith.constant 8 : index
    %c0_14 = arith.constant 0 : index
    %16 = vector.load %arg2[%c0_13, %c8, %c0_14] : memref<1x584x128xbf16, #tpu.memory_space<vmem>>, vector<1x384x128xbf16>
    %17 = vector.shape_cast %16 : vector<1x384x128xbf16> to vector<384x128xbf16>
    %c2 = arith.constant 2 : index
    %c0_15 = arith.constant 0 : index
    %c0_16 = arith.constant 0 : index
    %18 = vector.load %arg3[%c2, %c0_15, %c0_16] : memref<9x128x128xbf16, #tpu.memory_space<vmem>>, vector<1x128x128xbf16>
    %19 = vector.shape_cast %18 : vector<1x128x128xbf16> to vector<128x128xbf16>
    %cst_17 = arith.constant dense<0.000000e+00> : vector<384x128xf32>
    %20 = tpu.matmul %17, %19, %cst_17 {dimension_numbers = #tpu.dot_dimension_numbers<[1], [0], [0], [1], [0, 0, 1, 1], [], []>} : vector<384x128xbf16>, vector<128x128xbf16>, vector<384x128xf32> -> vector<384x128xf32>
    %21 = arith.addf %15, %20 : vector<384x128xf32>
    %c0_18 = arith.constant 0 : index
    %c96 = arith.constant 96 : index
    %c0_19 = arith.constant 0 : index
    %22 = vector.load %arg2[%c0_18, %c96, %c0_19] : memref<1x584x128xbf16, #tpu.memory_space<vmem>>, vector<1x384x128xbf16>
    %23 = vector.shape_cast %22 : vector<1x384x128xbf16> to vector<384x128xbf16>
    %c3 = arith.constant 3 : index
    %c0_20 = arith.constant 0 : index
    %c0_21 = arith.constant 0 : index
    %24 = vector.load %arg3[%c3, %c0_20, %c0_21] : memref<9x128x128xbf16, #tpu.memory_space<vmem>>, vector<1x128x128xbf16>
    %25 = vector.shape_cast %24 : vector<1x128x128xbf16> to vector<128x128xbf16>
    %cst_22 = arith.constant dense<0.000000e+00> : vector<384x128xf32>
    %26 = tpu.matmul %23, %25, %cst_22 {dimension_numbers = #tpu.dot_dimension_numbers<[1], [0], [0], [1], [0, 0, 1, 1], [], []>} : vector<384x128xbf16>, vector<128x128xbf16>, vector<384x128xf32> -> vector<384x128xf32>
    %27 = arith.addf %21, %26 : vector<384x128xf32>
    %c0_23 = arith.constant 0 : index
    %c100 = arith.constant 100 : index
    %c0_24 = arith.constant 0 : index
    %28 = vector.load %arg2[%c0_23, %c100, %c0_24] : memref<1x584x128xbf16, #tpu.memory_space<vmem>>, vector<1x384x128xbf16>
    %29 = vector.shape_cast %28 : vector<1x384x128xbf16> to vector<384x128xbf16>
    %c4_25 = arith.constant 4 : index
    %c0_26 = arith.constant 0 : index
    %c0_27 = arith.constant 0 : index
    %30 = vector.load %arg3[%c4_25, %c0_26, %c0_27] : memref<9x128x128xbf16, #tpu.memory_space<vmem>>, vector<1x128x128xbf16>
    %31 = vector.shape_cast %30 : vector<1x128x128xbf16> to vector<128x128xbf16>
    %cst_28 = arith.constant dense<0.000000e+00> : vector<384x128xf32>
    %32 = tpu.matmul %29, %31, %cst_28 {dimension_numbers = #tpu.dot_dimension_numbers<[1], [0], [0], [1], [0, 0, 1, 1], [], []>} : vector<384x128xbf16>, vector<128x128xbf16>, vector<384x128xf32> -> vector<384x128xf32>
    %33 = arith.addf %27, %32 : vector<384x128xf32>
    %c0_29 = arith.constant 0 : index
    %c104 = arith.constant 104 : index
    %c0_30 = arith.constant 0 : index
    %34 = vector.load %arg2[%c0_29, %c104, %c0_30] : memref<1x584x128xbf16, #tpu.memory_space<vmem>>, vector<1x384x128xbf16>
    %35 = vector.shape_cast %34 : vector<1x384x128xbf16> to vector<384x128xbf16>
    %c5 = arith.constant 5 : index
    %c0_31 = arith.constant 0 : index
    %c0_32 = arith.constant 0 : index
    %36 = vector.load %arg3[%c5, %c0_31, %c0_32] : memref<9x128x128xbf16, #tpu.memory_space<vmem>>, vector<1x128x128xbf16>
    %37 = vector.shape_cast %36 : vector<1x128x128xbf16> to vector<128x128xbf16>
    %cst_33 = arith.constant dense<0.000000e+00> : vector<384x128xf32>
    %38 = tpu.matmul %35, %37, %cst_33 {dimension_numbers = #tpu.dot_dimension_numbers<[1], [0], [0], [1], [0, 0, 1, 1], [], []>} : vector<384x128xbf16>, vector<128x128xbf16>, vector<384x128xf32> -> vector<384x128xf32>
    %39 = arith.addf %33, %38 : vector<384x128xf32>
    %c0_34 = arith.constant 0 : index
    %c192 = arith.constant 192 : index
    %c0_35 = arith.constant 0 : index
    %40 = vector.load %arg2[%c0_34, %c192, %c0_35] : memref<1x584x128xbf16, #tpu.memory_space<vmem>>, vector<1x384x128xbf16>
    %41 = vector.shape_cast %40 : vector<1x384x128xbf16> to vector<384x128xbf16>
    %c6 = arith.constant 6 : index
    %c0_36 = arith.constant 0 : index
    %c0_37 = arith.constant 0 : index
    %42 = vector.load %arg3[%c6, %c0_36, %c0_37] : memref<9x128x128xbf16, #tpu.memory_space<vmem>>, vector<1x128x128xbf16>
    %43 = vector.shape_cast %42 : vector<1x128x128xbf16> to vector<128x128xbf16>
    %cst_38 = arith.constant dense<0.000000e+00> : vector<384x128xf32>
    %44 = tpu.matmul %41, %43, %cst_38 {dimension_numbers = #tpu.dot_dimension_numbers<[1], [0], [0], [1], [0, 0, 1, 1], [], []>} : vector<384x128xbf16>, vector<128x128xbf16>, vector<384x128xf32> -> vector<384x128xf32>
    %45 = arith.addf %39, %44 : vector<384x128xf32>
    %c0_39 = arith.constant 0 : index
    %c196 = arith.constant 196 : index
    %c0_40 = arith.constant 0 : index
    %46 = vector.load %arg2[%c0_39, %c196, %c0_40] : memref<1x584x128xbf16, #tpu.memory_space<vmem>>, vector<1x384x128xbf16>
    %47 = vector.shape_cast %46 : vector<1x384x128xbf16> to vector<384x128xbf16>
    %c7 = arith.constant 7 : index
    %c0_41 = arith.constant 0 : index
    %c0_42 = arith.constant 0 : index
    %48 = vector.load %arg3[%c7, %c0_41, %c0_42] : memref<9x128x128xbf16, #tpu.memory_space<vmem>>, vector<1x128x128xbf16>
    %49 = vector.shape_cast %48 : vector<1x128x128xbf16> to vector<128x128xbf16>
    %cst_43 = arith.constant dense<0.000000e+00> : vector<384x128xf32>
    %50 = tpu.matmul %47, %49, %cst_43 {dimension_numbers = #tpu.dot_dimension_numbers<[1], [0], [0], [1], [0, 0, 1, 1], [], []>} : vector<384x128xbf16>, vector<128x128xbf16>, vector<384x128xf32> -> vector<384x128xf32>
    %51 = arith.addf %45, %50 : vector<384x128xf32>
    %c0_44 = arith.constant 0 : index
    %c200 = arith.constant 200 : index
    %c0_45 = arith.constant 0 : index
    %52 = vector.load %arg2[%c0_44, %c200, %c0_45] : memref<1x584x128xbf16, #tpu.memory_space<vmem>>, vector<1x384x128xbf16>
    %53 = vector.shape_cast %52 : vector<1x384x128xbf16> to vector<384x128xbf16>
    %c8_46 = arith.constant 8 : index
    %c0_47 = arith.constant 0 : index
    %c0_48 = arith.constant 0 : index
    %54 = vector.load %arg3[%c8_46, %c0_47, %c0_48] : memref<9x128x128xbf16, #tpu.memory_space<vmem>>, vector<1x128x128xbf16>
    %55 = vector.shape_cast %54 : vector<1x128x128xbf16> to vector<128x128xbf16>
    %cst_49 = arith.constant dense<0.000000e+00> : vector<384x128xf32>
    %56 = tpu.matmul %53, %55, %cst_49 {dimension_numbers = #tpu.dot_dimension_numbers<[1], [0], [0], [1], [0, 0, 1, 1], [], []>} : vector<384x128xbf16>, vector<128x128xbf16>, vector<384x128xf32> -> vector<384x128xf32>
    %57 = arith.addf %51, %56 : vector<384x128xf32>
    %c0_50 = arith.constant 0 : index
    %c0_51 = arith.constant 0 : index
    %58 = vector.load %arg7[%c0_50, %c0_51] : memref<384x128xf32, #tpu.memory_space<vmem>>, vector<384x128xf32>
    tpu.vector_store %arg7[%c0_50, %c0_51], %57 {strides = array<i32>} : memref<384x128xf32, #tpu.memory_space<vmem>>, vector<384x128xf32>,
    %c0_i32_52 = arith.constant 0 : i32
    %59 = arith.cmpi eq, %arg1, %c0_i32_52 : i32
    %60 = arith.extui %59 : i1 to i32
    %c0_i32_53 = arith.constant 0 : i32
    %61 = arith.cmpi ne, %60, %c0_i32_53 : i32
    scf.if %61 {
      %c0_54 = arith.constant 0 : index
      %c0_55 = arith.constant 0 : index
      %62 = vector.load %arg7[%c0_54, %c0_55] : memref<384x128xf32, #tpu.memory_space<vmem>>, vector<384x128xf32>
      %c0_56 = arith.constant 0 : index
      %c0_57 = arith.constant 0 : index
      %63 = vector.load %arg4[%c0_56, %c0_57] : memref<1x128xf32, #tpu.memory_space<vmem>>, vector<1x128xf32>
      %64 = vector.broadcast %63 : vector<1x128xf32> to vector<384x128xf32>
      %65 = arith.mulf %62, %64 : vector<384x128xf32>
      %c0_58 = arith.constant 0 : index
      %c0_59 = arith.constant 0 : index
      %66 = vector.load %arg5[%c0_58, %c0_59] : memref<1x128xf32, #tpu.memory_space<vmem>>, vector<1x128xf32>
      %67 = vector.broadcast %66 : vector<1x128xf32> to vector<384x128xf32>
      %68 = arith.addf %65, %67 : vector<384x128xf32>
      %cst_60 = arith.constant 0.000000e+00 : f32
      %69 = vector.broadcast %cst_60 : f32 to vector<384x128xf32>
      %70 = arith.maximumf %68, %69 : vector<384x128xf32>
      %71 = arith.truncf %70 : vector<384x128xf32> to vector<384x128xbf16>
      %c0_61 = arith.constant 0 : index
      %c0_62 = arith.constant 0 : index
      %c0_63 = arith.constant 0 : index
      %72 = vector.load %arg6[%c0_61, %c0_62, %c0_63] : memref<1x384x128xbf16, #tpu.memory_space<vmem>>, vector<1x384x128xbf16>
      %73 = vector.shape_cast %72 : vector<1x384x128xbf16> to vector<384x128xbf16>
      %74 = vector.shape_cast %71 : vector<384x128xbf16> to vector<1x384x128xbf16>
      tpu.vector_store %arg6[%c0_61, %c0_62, %c0_63], %74 {strides = array<i32>} : memref<1x384x128xbf16, #tpu.memory_space<vmem>>, vector<1x384x128xbf16>,
    } else {
    }
    return
  }
  func.func @transform_0(%arg0: i32, %arg1: i32) -> (i32, i32, i32) {
    %c0_i32 = arith.constant 0 : i32
    %c0_i32_0 = arith.constant 0 : i32
    return %arg0, %c0_i32, %arg1 : i32, i32, i32
  }
  func.func @transform_1(%arg0: i32, %arg1: i32) -> (i32, i32, i32) {
    %c0_i32 = arith.constant 0 : i32
    %c0_i32_0 = arith.constant 0 : i32
    %c0_i32_1 = arith.constant 0 : i32
    return %c0_i32, %arg1, %c0_i32_0 : i32, i32, i32
  }
  func.func @transform_2(%arg0: i32, %arg1: i32) -> (i32, i32) {
    %c0_i32 = arith.constant 0 : i32
    %c0_i32_0 = arith.constant 0 : i32
    %c0_i32_1 = arith.constant 0 : i32
    return %c0_i32, %c0_i32_0 : i32, i32
  }
  func.func @transform_3(%arg0: i32, %arg1: i32) -> (i32, i32) {
    %c0_i32 = arith.constant 0 : i32
    %c0_i32_0 = arith.constant 0 : i32
    %c0_i32_1 = arith.constant 0 : i32
    return %c0_i32, %c0_i32_0 : i32, i32
  }
  func.func @transform_4(%arg0: i32, %arg1: i32) -> (i32, i32, i32) {
    %c0_i32 = arith.constant 0 : i32
    %c0_i32_0 = arith.constant 0 : i32
    %c0_i32_1 = arith.constant 0 : i32
    return %arg0, %c0_i32, %c0_i32_0 : i32, i32, i32
  }
}

module attributes {stable_mosaic.version = 11 : i64} {
  func.func @_project_kernel(%arg0: i32, %arg1: i32, %arg2: memref<1x256x128xbf16, #tpu.memory_space<vmem>>, %arg3: memref<1x256x128xbf16, #tpu.memory_space<vmem>>, %arg4: memref<1x256x128xbf16, #tpu.memory_space<vmem>>, %arg5: memref<1x1x128xf32, #tpu.memory_space<vmem>>, %arg6: memref<128x128xbf16, #tpu.memory_space<vmem>>, %arg7: memref<128x128xbf16, #tpu.memory_space<vmem>>, %arg8: memref<2x128x128xbf16, #tpu.memory_space<vmem>>, %arg9: memref<1x128xf32, #tpu.memory_space<vmem>>, %arg10: memref<1x128xf32, #tpu.memory_space<vmem>>, %arg11: memref<1x256x128xbf16, #tpu.memory_space<vmem>>) attributes {dimension_semantics = [#tpu.dimension_semantics<parallel>, #tpu.dimension_semantics<parallel>], iteration_bounds = array<i64: 2, 1>, scalar_prefetch = 0 : i64, scratch_operands = 0 : i64, tpu.core_type = #tpu.core_type<tc>, window_params = [{transform_indices = @transform_0, window_bounds = array<i64: 1, 256, 128>}, {transform_indices = @transform_1, window_bounds = array<i64: 1, 256, 128>}, {transform_indices = @transform_2, window_bounds = array<i64: 1, 256, 128>}, {transform_indices = @transform_3, window_bounds = array<i64: 1, 1, 128>}, {pipeline_mode = #tpu.pipeline_mode<synchronous>, transform_indices = @transform_4, window_bounds = array<i64: 128, 128>}, {pipeline_mode = #tpu.pipeline_mode<synchronous>, transform_indices = @transform_5, window_bounds = array<i64: 128, 128>}, {pipeline_mode = #tpu.pipeline_mode<synchronous>, transform_indices = @transform_6, window_bounds = array<i64: 2, 128, 128>}, {pipeline_mode = #tpu.pipeline_mode<synchronous>, transform_indices = @transform_7, window_bounds = array<i64: 1, 128>}, {pipeline_mode = #tpu.pipeline_mode<synchronous>, transform_indices = @transform_8, window_bounds = array<i64: 1, 128>}, {transform_indices = @transform_9, window_bounds = array<i64: 1, 256, 128>}]} {
    %c0 = arith.constant 0 : index
    %c0_0 = arith.constant 0 : index
    %c0_1 = arith.constant 0 : index
    %0 = vector.load %arg2[%c0, %c0_0, %c0_1] : memref<1x256x128xbf16, #tpu.memory_space<vmem>>, vector<1x256x128xbf16>
    %1 = vector.shape_cast %0 : vector<1x256x128xbf16> to vector<256x128xbf16>
    %c0_2 = arith.constant 0 : index
    %c0_3 = arith.constant 0 : index
    %2 = vector.load %arg6[%c0_2, %c0_3] : memref<128x128xbf16, #tpu.memory_space<vmem>>, vector<128x128xbf16>
    %cst = arith.constant dense<0.000000e+00> : vector<256x128xf32>
    %3 = tpu.matmul %1, %2, %cst {dimension_numbers = #tpu.dot_dimension_numbers<[1], [0], [0], [1], [0, 0, 1, 1], [], []>} : vector<256x128xbf16>, vector<128x128xbf16>, vector<256x128xf32> -> vector<256x128xf32>
    %cst_4 = arith.constant 0.000000e+00 : bf16
    %4 = vector.broadcast %cst_4 : bf16 to vector<256x128xbf16>
    %5 = arith.maximumf %1, %4 : vector<256x128xbf16>
    %c0_5 = arith.constant 0 : index
    %c0_6 = arith.constant 0 : index
    %6 = vector.load %arg7[%c0_5, %c0_6] : memref<128x128xbf16, #tpu.memory_space<vmem>>, vector<128x128xbf16>
    %cst_7 = arith.constant dense<0.000000e+00> : vector<256x128xf32>
    %7 = tpu.matmul %5, %6, %cst_7 {dimension_numbers = #tpu.dot_dimension_numbers<[1], [0], [0], [1], [0, 0, 1, 1], [], []>} : vector<256x128xbf16>, vector<128x128xbf16>, vector<256x128xf32> -> vector<256x128xf32>
    %8 = arith.addf %3, %7 : vector<256x128xf32>
    %c0_8 = arith.constant 0 : index
    %c0_9 = arith.constant 0 : index
    %c0_10 = arith.constant 0 : index
    %9 = vector.load %arg3[%c0_8, %c0_9, %c0_10] : memref<1x256x128xbf16, #tpu.memory_space<vmem>>, vector<1x256x128xbf16>
    %10 = vector.shape_cast %9 : vector<1x256x128xbf16> to vector<256x128xbf16>
    %c0_11 = arith.constant 0 : index
    %c0_12 = arith.constant 0 : index
    %c0_13 = arith.constant 0 : index
    %11 = vector.load %arg8[%c0_11, %c0_12, %c0_13] : memref<2x128x128xbf16, #tpu.memory_space<vmem>>, vector<1x128x128xbf16>
    %12 = vector.shape_cast %11 : vector<1x128x128xbf16> to vector<128x128xbf16>
    %cst_14 = arith.constant dense<0.000000e+00> : vector<256x128xf32>
    %13 = tpu.matmul %10, %12, %cst_14 {dimension_numbers = #tpu.dot_dimension_numbers<[1], [0], [0], [1], [0, 0, 1, 1], [], []>} : vector<256x128xbf16>, vector<128x128xbf16>, vector<256x128xf32> -> vector<256x128xf32>
    %14 = arith.addf %8, %13 : vector<256x128xf32>
    %c0_15 = arith.constant 0 : index
    %c0_16 = arith.constant 0 : index
    %c0_17 = arith.constant 0 : index
    %15 = vector.load %arg4[%c0_15, %c0_16, %c0_17] : memref<1x256x128xbf16, #tpu.memory_space<vmem>>, vector<1x256x128xbf16>
    %16 = vector.shape_cast %15 : vector<1x256x128xbf16> to vector<256x128xbf16>
    %c1 = arith.constant 1 : index
    %c0_18 = arith.constant 0 : index
    %c0_19 = arith.constant 0 : index
    %17 = vector.load %arg8[%c1, %c0_18, %c0_19] : memref<2x128x128xbf16, #tpu.memory_space<vmem>>, vector<1x128x128xbf16>
    %18 = vector.shape_cast %17 : vector<1x128x128xbf16> to vector<128x128xbf16>
    %cst_20 = arith.constant dense<0.000000e+00> : vector<256x128xf32>
    %19 = tpu.matmul %16, %18, %cst_20 {dimension_numbers = #tpu.dot_dimension_numbers<[1], [0], [0], [1], [0, 0, 1, 1], [], []>} : vector<256x128xbf16>, vector<128x128xbf16>, vector<256x128xf32> -> vector<256x128xf32>
    %20 = arith.addf %14, %19 : vector<256x128xf32>
    %c0_21 = arith.constant 0 : index
    %c0_22 = arith.constant 0 : index
    %c0_23 = arith.constant 0 : index
    %21 = vector.load %arg5[%c0_21, %c0_22, %c0_23] : memref<1x1x128xf32, #tpu.memory_space<vmem>>, vector<1x1x128xf32>
    %22 = vector.shape_cast %21 : vector<1x1x128xf32> to vector<1x128xf32>
    %23 = vector.broadcast %22 : vector<1x128xf32> to vector<256x128xf32>
    %24 = arith.addf %20, %23 : vector<256x128xf32>
    %c0_24 = arith.constant 0 : index
    %c0_25 = arith.constant 0 : index
    %25 = vector.load %arg9[%c0_24, %c0_25] : memref<1x128xf32, #tpu.memory_space<vmem>>, vector<1x128xf32>
    %26 = vector.broadcast %25 : vector<1x128xf32> to vector<256x128xf32>
    %27 = arith.mulf %24, %26 : vector<256x128xf32>
    %c0_26 = arith.constant 0 : index
    %c0_27 = arith.constant 0 : index
    %28 = vector.load %arg10[%c0_26, %c0_27] : memref<1x128xf32, #tpu.memory_space<vmem>>, vector<1x128xf32>
    %29 = vector.broadcast %28 : vector<1x128xf32> to vector<256x128xf32>
    %30 = arith.addf %27, %29 : vector<256x128xf32>
    %cst_28 = arith.constant 0.000000e+00 : f32
    %31 = vector.broadcast %cst_28 : f32 to vector<256x128xf32>
    %32 = arith.maximumf %30, %31 : vector<256x128xf32>
    %33 = arith.truncf %32 : vector<256x128xf32> to vector<256x128xbf16>
    %c0_29 = arith.constant 0 : index
    %c0_30 = arith.constant 0 : index
    %c0_31 = arith.constant 0 : index
    %34 = vector.load %arg11[%c0_29, %c0_30, %c0_31] : memref<1x256x128xbf16, #tpu.memory_space<vmem>>, vector<1x256x128xbf16>
    %35 = vector.shape_cast %34 : vector<1x256x128xbf16> to vector<256x128xbf16>
    %36 = vector.shape_cast %33 : vector<256x128xbf16> to vector<1x256x128xbf16>
    tpu.vector_store %arg11[%c0_29, %c0_30, %c0_31], %36 {strides = array<i32>} : memref<1x256x128xbf16, #tpu.memory_space<vmem>>, vector<1x256x128xbf16>,
    return
  }
  func.func @transform_0(%arg0: i32, %arg1: i32) -> (i32, i32, i32) {
    %c0_i32 = arith.constant 0 : i32
    %c0_i32_0 = arith.constant 0 : i32
    return %arg0, %arg1, %c0_i32 : i32, i32, i32
  }
  func.func @transform_1(%arg0: i32, %arg1: i32) -> (i32, i32, i32) {
    %c0_i32 = arith.constant 0 : i32
    %c0_i32_0 = arith.constant 0 : i32
    return %arg0, %arg1, %c0_i32 : i32, i32, i32
  }
  func.func @transform_2(%arg0: i32, %arg1: i32) -> (i32, i32, i32) {
    %c0_i32 = arith.constant 0 : i32
    %c0_i32_0 = arith.constant 0 : i32
    return %arg0, %arg1, %c0_i32 : i32, i32, i32
  }
  func.func @transform_3(%arg0: i32, %arg1: i32) -> (i32, i32, i32) {
    %c0_i32 = arith.constant 0 : i32
    %c0_i32_0 = arith.constant 0 : i32
    %c0_i32_1 = arith.constant 0 : i32
    return %arg0, %c0_i32, %c0_i32_0 : i32, i32, i32
  }
  func.func @transform_4(%arg0: i32, %arg1: i32) -> (i32, i32) {
    %c0_i32 = arith.constant 0 : i32
    %c0_i32_0 = arith.constant 0 : i32
    %c0_i32_1 = arith.constant 0 : i32
    return %c0_i32, %c0_i32_0 : i32, i32
  }
  func.func @transform_5(%arg0: i32, %arg1: i32) -> (i32, i32) {
    %c0_i32 = arith.constant 0 : i32
    %c0_i32_0 = arith.constant 0 : i32
    %c0_i32_1 = arith.constant 0 : i32
    return %c0_i32, %c0_i32_0 : i32, i32
  }
  func.func @transform_6(%arg0: i32, %arg1: i32) -> (i32, i32, i32) {
    %c0_i32 = arith.constant 0 : i32
    %c0_i32_0 = arith.constant 0 : i32
    %c0_i32_1 = arith.constant 0 : i32
    %c0_i32_2 = arith.constant 0 : i32
    return %c0_i32, %c0_i32_0, %c0_i32_1 : i32, i32, i32
  }
  func.func @transform_7(%arg0: i32, %arg1: i32) -> (i32, i32) {
    %c0_i32 = arith.constant 0 : i32
    %c0_i32_0 = arith.constant 0 : i32
    %c0_i32_1 = arith.constant 0 : i32
    return %c0_i32, %c0_i32_0 : i32, i32
  }
  func.func @transform_8(%arg0: i32, %arg1: i32) -> (i32, i32) {
    %c0_i32 = arith.constant 0 : i32
    %c0_i32_0 = arith.constant 0 : i32
    %c0_i32_1 = arith.constant 0 : i32
    return %c0_i32, %c0_i32_0 : i32, i32
  }
  func.func @transform_9(%arg0: i32, %arg1: i32) -> (i32, i32, i32) {
    %c0_i32 = arith.constant 0 : i32
    %c0_i32_0 = arith.constant 0 : i32
    return %arg0, %arg1, %c0_i32 : i32, i32, i32
  }
}

</mosaic_0001>

<bundles_post_ra>
// kernel: aspp_forward.3
= control target key start
LH: loop header
LB: loop body
LE: loop exit
PB: predicated region body
PF: predicated region fallthrough
CT: control target
= control target key end

     0   :  { %s7537_s30 = smov 0   ;;  %s7539_s10 = smov 0   ;;  %s8737_s0 = inlined_call_operand.vmem [shape: bf16[2,408,128], index: 0, kind: input, shape index: {}]   ;;  %s8738_s1 = inlined_call_operand.vmem [shape: bf16[9,128,128], index: 1, kind: input, shape index: {}]   ;;  %s8739_s2 = inlined_call_operand.vmem [shape: f32[1,128], index: 2, kind: input, shape index: {}]   ;;  %s8740_s3 = inlined_call_operand.vmem [shape: f32[1,128], index: 3, kind: input, shape index: {}]   ;;  %s8741_s4 = inlined_call_operand.vmem [shape: bf16[128,128], index: 4, kind: input, shape index: {}]   ;;  %s8742_s5 = inlined_call_operand.vmem [shape: f32[1,128], index: 5, kind: input, shape index: {}]   ;;  %s8743_s6 = inlined_call_operand.vmem [shape: f32[1,128], index: 6, kind: input, shape index: {}]   ;;  %s8744_s7 = inlined_call_operand.vmem [shape: bf16[128,128], index: 7, kind: input, shape index: {}]   ;;  %s8745_s8 = inlined_call_operand.vmem [shape: bf16[2,320,128], index: 8, kind: output, shape index: {0}]   ;;  %s8746_s9 = inlined_call_operand.vmem [shape: f32[2,1,128], index: 9, kind: output, shape index: {1}]  }
   0x1   :  { %s7541_s11 = smov 0  }
   0x2 LB: > { %s32_s12 = sadd.s32 1, %s7479_s10  ;;  %p5407_p0 = scmp.ge.s32.totalorder %s7483_s11, 1  ;;  %s7483_s11 = sphi %s7541_s11, %s20_s11   ;;  %s7479_s10 = sphi %s7539_s10, %s8748_s10   ;;  %s7475_s30 = sphi %s7537_s30, %s8747_s30  }
   0x3   : > { %p34_p1 = scmp.ge.s32.totalorder %s32_s12, 2  ;;  %p329_p2 = scmp.lt.s32.totalorder %s7483_s11, 3 }
   0x5   : > { %s8750_s12 = smov (%p34_p1, %s32_s12), 0  ;;  %p330_p3 = pnand %p5407_p0, %p329_p2 }
   0x6   : > { %v7244_v0 = vld [vmem:[%s8738_s1] sm:$0xff] (!%p330_p3)   ;;  %v7246_v2 = vld [vmem:[%s8738_s1 + $0x8] sm:$0xff] (!%p330_p3)   ;;  %p381_p4 = scmp.lt.s32.totalorder (!%p330_p3), %s7475_s30, 1  ;;  %v7248_v4 = vld [vmem:[%s8738_s1 + $0x10] sm:$0xff] (!%p330_p3)   ;;  %vm1113_vm0 = vcmask (!%p330_p3), 1046528   ;;  %vm1481_vm1 = vcmask (!%p330_p3), 1045504  }
   0x7   : > { %333 = sbr.rel (%p330_p3) target bundleno = 804 (0x324), region = 52  ;;  %v7245_v1 = vld [vmem:[%s8738_s1 + $0x100] sm:$0xff] (!%p330_p3)   ;;  %6352 = vmatprep.subr.bf16.mxu1 (!%p330_p3), %v7244_v0  ;;  %v7247_v3 = vld [vmem:[%s8738_s1 + $0x108] sm:$0xff] (!%p330_p3)   ;;  %v7249_v5 = vld [vmem:[%s8738_s1 + $0x110] sm:$0xff] (!%p330_p3)   ;;  %vm7486_vm2 = vmmov (!%p330_p3), 0  }
   0x8   : > { %6576 = vmatprep.subr.bf16.mxu0 (!%p330_p3), %v7245_v1  ;;  %6353 = vmatpush3.bf16.msra.mxu1 (!%p330_p3), %v7244_v0  ;;  %v7250_v6 = vld [vmem:[%s8738_s1 + $0x18] sm:$0xff] (!%p330_p3)   ;;  %v7252_v8 = vld [vmem:[%s8738_s1 + $0x20] sm:$0xff] (!%p330_p3)   ;;  %v7254_v10 = vld [vmem:[%s8738_s1 + $0x28] sm:$0xff] (!%p330_p3)  }
   0x9   : > { %6577 = vmatpush3.bf16.msra.mxu0 (!%p330_p3), %v7245_v1  ;;  %6354 = vmatprep.subr.bf16.mxu1 (!%p330_p3), %v7246_v2  ;;  %v7251_v7 = vld [vmem:[%s8738_s1 + $0x118] sm:$0xff] (!%p330_p3)   ;;  %v7253_v9 = vld [vmem:[%s8738_s1 + $0x120] sm:$0xff] (!%p330_p3)   ;;  %v7255_v11 = vld [vmem:[%s8738_s1 + $0x128] sm:$0xff] (!%p330_p3)  }
   0xa   : > { %6578 = vmatprep.subr.bf16.mxu0 (!%p330_p3), %v7247_v3  ;;  %v7256_v17 = vld [vmem:[%s8738_s1 + $0x30] sm:$0xff] (!%p330_p3)   ;;  %v7258_v23 = vld [vmem:[%s8738_s1 + $0x38] sm:$0xff] (!%p330_p3)   ;;  %v7264_v31 = vld [vmem:[%s8738_s1 + $0x40] sm:$0xff] (!%p330_p3)  }
   0xb   : > { %v7257_v18 = vld [vmem:[%s8738_s1 + $0x130] sm:$0xff] (!%p330_p3)   ;;  %v7259_v27 = vld [vmem:[%s8738_s1 + $0x138] sm:$0xff] (!%p330_p3)   ;;  %v7270_v44 = vld [vmem:[%s8738_s1 + $0x48] sm:$0xff] (!%p330_p3)  }
   0xc   : > { %6355 = vmatpush3.bf16.msra.mxu1 (!%p330_p3), %v7246_v2  ;;  %v7275_v49 = vld [vmem:[%s8738_s1 + $0x50] sm:$0xff] (!%p330_p3)   ;;  %v7280_v60 = vld [vmem:[%s8738_s1 + $0x58] sm:$0xff] (!%p330_p3)  }
   0xd   : > { %6579 = vmatpush3.bf16.msra.mxu0 (!%p330_p3), %v7247_v3  ;;  %6356 = vmatprep.subr.bf16.mxu1 (!%p330_p3), %v7248_v4 }
   0xe   : > { %s8752_s30 = smov (!%p381_p4, %s7475_s30), 1  ;;  %6580 = vmatprep.subr.bf16.mxu0 %v7249_v5 }
   0xf   : > { %s7216_s29 = smul.u32 204, %s8752_s30  ;;  %s408_s28 = scalar_lea.vmem %s8746_s9, %s8752_s30 }
  0x10   : > { %6357 = vmatpush3.bf16.msra.mxu1 %v7248_v4  ;;  %s7217_s18 = smul.u32 160, %s8752_s30 }
  0x11   : > { %6581 = vmatpush3.bf16.msra.mxu0 %v7249_v5  ;;  %6358 = vmatprep.subr.bf16.mxu1 %v7250_v6  ;;  %s7594_s21 = scalar_lea.vmem %s8737_s0, %s7216_s29 }
  0x12   : > { %6582 = vmatprep.subr.bf16.mxu0 %v7251_v7  ;;  %v7260_v12 = vld [vmem:[%s7594_s21] sm:$0xff]   ;;  %v2282_v13 = vld [vmem:[%s7594_s21 + $0x14] sm:$0xe]  ;;  %v7602_v14 = vld [vmem:[%s7594_s21 + $0x18] sm:$0xf]  ;;  %s8595_s25 = scalar_lea.vmem %s8745_s8, %s7217_s18 }
  0x13   : > { %6368 = vmatprep.mubr.bf16.mxu1 %v7260_v12  ;;  %v5569_v15 = vcombine.low %v2282_v13, %v7602_v14  ;;  %v7606_v16 = vld [vmem:[%s7594_s21 + $0x1c] sm:$0xff]   ;;  %v7265_v22 = vld [vmem:[%s7594_s21 + $0x24] sm:$0xff]   ;;  %v7267_v25 = vld [vmem:[%s7594_s21 + $0x2c] sm:$0xff]  }
  0x14   : > { %6359 = vmatpush3.bf16.msra.mxu1 %v7250_v6  ;;  %v2444_v20 = vrot.slane %v7606_v16, 1  ;;  %v2811_v24 = vrot.slane %v7606_v16, 2  ;;  %v2813_v26 = vrot.slane %v7265_v22, 2  ;;  %v7269_v28 = vld [vmem:[%s7594_s21 + $0x34] sm:$0xff]   ;;  %v2815_v30 = vrot.slane %v7267_v25, 2  ;;  %v7272_v36 = vld [vmem:[%s7594_s21 + $0x3c] sm:$0xff]  }
  0x15   : > { %6583 = vmatpush3.bf16.msra.mxu0 %v7251_v7  ;;  %6360 = vmatprep.subr.bf16.mxu1 %v7252_v8  ;;  %v2443_v19 = vrot.slane %v5569_v15, 1  ;;  %v2446_v32 = vrot.slane %v7265_v22, 1  ;;  %v2817_v34 = vrot.slane %v7269_v28, 2  ;;  %v2448_v35 = vrot.slane %v7267_v25, 1  ;;  %v7263_v37 = vld [vmem:[%s7594_s21 + $0x8] sm:$0xff]   ;;  %v7266_v42 = vld [vmem:[%s7594_s21 + $0x10] sm:$0xff]  }
  0x16   : > { %6584 = vmatprep.subr.bf16.mxu0 %v7253_v9  ;;  %v7629_v29 = vsel %vm1481_vm1, %v2811_v24, %v2813_v26  ;;  %v7635_v33 = vsel %vm1481_vm1, %v2813_v26, %v2815_v30  ;;  %v7274_v39 = vld [vmem:[%s7594_s21 + $0x44] sm:$0xff]   ;;  %v2819_v40 = vrot.slane %v7272_v36, 2  ;;  %v7653_v47 = vld [vmem:[%s7594_s21 + $0x4c] sm:$0xff]   ;;  %v2450_v48 = vrot.slane %v7269_v28, 1  ;;  %v7662_v51 = vld [vmem:[%s7594_s21 + $0x54] sm:$0xff]  }
  0x17   : > { %v2445_v21 = vsel %vm1113_vm0, %v2443_v19, %v2444_v20  ;;  %v7640_v38 = vsel %vm1481_vm1, %v2815_v30, %v2817_v34  ;;  %v2447_v41 = vsel %vm1113_vm0, %v2444_v20, %v2446_v32  ;;  %v2449_v43 = vsel %vm1113_vm0, %v2446_v32, %v2448_v35  ;;  %v7268_v53 = vld [vmem:[%s7594_s21 + $0x18] sm:$0xff]   ;;  %v7271_v55 = vld [vmem:[%s7594_s21 + $0x20] sm:$0xff]   ;;  %v7687_v1 = vld [vmem:[%s7594_s21 + $0x6c] sm:$0xff]  }
  0x18   : > { %6361 = vmatpush3.bf16.msra.mxu1 %v7252_v8  ;;  %6592 = vmatprep.mubr.bf16.mxu0 %v2445_v21  ;;  %v7650_v45 = vsel %vm1481_vm1, %v2817_v34, %v2819_v40  ;;  %v2821_v46 = vrot.slane %v7274_v39, 2  ;;  %v2823_v52 = vrot.slane %v7653_v47, 2  ;;  %v2452_v54 = vrot.slane %v7272_v36, 1  ;;  %v7672_v58 = vld [vmem:[%s7594_s21 + $0x5c] sm:$0xff]   ;;  %v7683_v63 = vld [vmem:[%s7594_s21 + $0x64] sm:$0xff]  }
  0x19   : > { %6585 = vmatpush3.bf16.msra.mxu0 %v7253_v9  ;;  %6362 = vmatprep.subr.bf16.mxu1 %v7254_v10  ;;  %v2825_v57 = vrot.slane %v7662_v51, 2  ;;  %v2451_v59 = vsel %vm1113_vm0, %v2448_v35, %v2450_v48  ;;  %v2827_v0 = vrot.slane %v7672_v58, 2  ;;  %v2829_v3 = vrot.slane %v7683_v63, 2  ;;  %v7273_v4 = vld [vmem:[%s7594_s21 + $0x28] sm:$0xff]   ;;  %v7288_v7 = vld [vmem:[%s8738_s1 + $0x60] sm:$0xff]   ;;  %v7278_v30 = vld [vmem:[%s7594_s21 + $0x38] sm:$0xff]  }
  0x1a   : > { %6586 = vmatprep.subr.bf16.mxu0 %v7255_v11  ;;  %v7659_v50 = vsel %vm1481_vm1, %v2819_v40, %v2821_v46  ;;  %v7668_v56 = vsel %vm1481_vm1, %v2821_v46, %v2823_v52  ;;  %v2453_v62 = vsel %vm1113_vm0, %v2450_v48, %v2452_v54  ;;  %v2454_v5 = vrot.slane %v7274_v39, 1  ;;  %v7711_v15 = vld [vmem:[%s7594_s21 + $0x7c] sm:$0xff]   ;;  %v7716_v19 = vld [vmem:[%s7594_s21 + $0x84] sm:$0xff]   ;;  %v7743_v35 = vld [vmem:[%s7594_s21 + $0x8c] sm:$0xff]  }
  0x1b   : > { %v7679_v61 = vsel %vm1481_vm1, %v2823_v52, %v2825_v57  ;;  %v7690_v2 = vsel %vm1481_vm1, %v2825_v57, %v2827_v0  ;;  %v2456_v6 = vrot.slane %v7653_v47, 1  ;;  %v7699_v8 = vsel %vm1481_vm1, %v2827_v0, %v2829_v3  ;;  %v7294_v20 = vld [vmem:[%s8738_s1 + $0x140] sm:$0xff]   ;;  %v7295_v25 = vld [vmem:[%s8738_s1 + $0x68] sm:$0xff]   ;;  %v7301_v40 = vld [vmem:[%s8738_s1 + $0x150] sm:$0xff]  }
  0x1c   : > { %6363 = vmatpush3.bf16.msra.mxu1 %v7254_v10  ;;  %v2831_v9 = vrot.slane %v7687_v1, 2  ;;  %v7703_v10 = vld [vmem:[%s7594_s21 + $0x74] sm:$0xff]   ;;  %v2455_v13 = vsel %vm1113_vm0, %v2452_v54, %v2454_v5  ;;  %v2835_v22 = vrot.slane %v7711_v15, 2  ;;  %v7296_v26 = vld [vmem:[%s8738_s1 + $0x148] sm:$0xff]   ;;  %v2837_v28 = vrot.slane %v7716_v19, 2  ;;  %v7281_v32 = vld [vmem:[%s7594_s21 + $0x40] sm:$0xff]  }
  0x1d   : > { %6587 = vmatpush3.bf16.msra.mxu0 %v7255_v11  ;;  %6364 = vmatprep.subr.bf16.mxu1 %v7256_v17  ;;  %v7276_v11 = vld [vmem:[%s7594_s21 + $0x30] sm:$0xff]   ;;  %v7283_v47 = vld [vmem:[%s7594_s21 + $0x48] sm:$0xff]   ;;  %v2462_v48 = vrot.slane %v7683_v63, 1  ;;  %v7308_v57 = vld [vmem:[%s8738_s1 + $0x160] sm:$0xff]  }
  0x1e   : > { %6588 = vmatprep.subr.bf16.mxu0 %v7257_v18  ;;  %v7707_v12 = vsel %vm1481_vm1, %v2829_v3, %v2831_v9  ;;  %v7740_v34 = vsel %vm1481_vm1, %v2835_v22, %v2837_v28  ;;  %v7775_v54 = vld [vmem:[%s7594_s21 + $0xa4] sm:$0xff]   ;;  %v7845_v16 = vld [vmem:[%s7594_s21 + $0x18] sm:$0xff]  }
  0x1f   : > { %v2845_v63 = vrot.slane %v7775_v54, 2  ;;  %v7309_v0 = vld [vmem:[%s8738_s1 + $0x168] sm:$0xff]  }
  0x20   : > { %6365 = vmatpush3.bf16.msra.mxu1 %v7256_v17  ;;  %v2833_v17 = vrot.slane %v7703_v10, 2 }
  0x21   : > { %6589 = vmatpush3.bf16.msra.mxu0 %v7257_v18  ;;  %6366 = vmatprep.subr.bf16.mxu1 %v7258_v23  ;;  %v2457_v18 = vsel %vm1113_vm0, %v2454_v5, %v2456_v6  ;;  %v7799_v5 = vld [vmem:[%s7594_s21 + $0xac] sm:$0xff]  }
  0x22   : > { %6590 = vmatprep.subr.bf16.mxu0 %v7259_v27  ;;  %v7722_v21 = vsel %vm1481_vm1, %v2831_v9, %v2833_v17  ;;  %v2847_v9 = vrot.slane %v7799_v5, 2 }
  0x24   : > { %6367 = vmatpush3.bf16.msra.mxu1 %v7258_v23  ;;  %v2458_v23 = vrot.slane %v7662_v51, 1  ;;  %v2464_v51 = vrot.slane %v7687_v1, 1  ;;  %v2466_v1 = vrot.slane %v7703_v10, 1 }
  0x25   : > { %6591 = vmatpush3.bf16.msra.mxu0 %v7259_v27  ;;  %6408 = vmatprep.subr.bf16.mxu1 %v7264_v31  ;;  %v7733_v27 = vsel %vm1481_vm1, %v2833_v17, %v2835_v22  ;;  %v2785_v17 = vld [vmem:[%s7594_s21 + $0x14] sm:$0xc]  ;;  %v7292_v22 = vld [vmem:[%s7594_s21 + $0x68] sm:$0xff]  }
  0x26   : > { %6632 = vmatprep.subr.bf16.mxu0 %v7294_v20  ;;  %v2459_v36 = vsel %vm1113_vm0, %v2456_v6, %v2458_v23  ;;  %v7287_v6 = vld [vmem:[%s7594_s21 + $0x58] sm:$0xff]   ;;  %v2467_v10 = vsel %vm1113_vm0, %v2464_v51, %v2466_v1 }
  0x27   : > { %6369 = vmatmul.mubr.bf16.vlgmr.msra.gmra.mrb[0].mxu1 %v7263_v37  ;;  %v7747_v37 = vld [vmem:[%s7594_s21 + $0x94] sm:$0xff]  }
  0x28   : > { %6593 = vmatmul.mubr.bf16.vlgmr.msra.gmra.mrb[0].mxu0 %v2447_v41  ;;  %6409 = vmatpush3.bf16.msra.mxu1 %v7264_v31  ;;  %v2460_v31 = vrot.slane %v7672_v58, 1  ;;  %v2839_v41 = vrot.slane %v7743_v35, 2  ;;  %v2841_v46 = vrot.slane %v7747_v37, 2 }
  0x29   : > { %6372 = vmatprep.mubr.bf16.mxu1 %v7266_v42  ;;  %6596 = vmatprep.mubr.bf16.mxu0 %v2449_v43  ;;  %v7302_v42 = vld [vmem:[%s8738_s1 + $0x70] sm:$0xff]   ;;  %v7303_v43 = vld [vmem:[%s8738_s1 + $0x158] sm:$0xff]  }
  0x2a   : > { %6410 = vmatprep.subr.bf16.mxu1 %v7270_v44  ;;  %6633 = vmatpush3.bf16.msra.mxu0 %v7294_v20  ;;  %v2461_v39 = vsel %vm1113_vm0, %v2458_v23, %v2460_v31  ;;  %v7769_v52 = vsel %vm1481_vm1, %v2839_v41, %v2841_v46  ;;  %v5614_v20 = vcombine.low %v2785_v17, %v7602_v14  ;;  %v2470_v23 = vrot.slane %v7716_v19, 1  ;;  %v7838_v19 = vld [vmem:[%s7594_s21 + $0x10] sm:$0xff]  }
  0x2b   : > { %6634 = vmatprep.subr.bf16.mxu0 %v7296_v26 }
  0x2c   : > { %6411 = vmatpush3.bf16.msra.mxu1 %v7270_v44  ;;  %v7761_v44 = vsel %vm1481_vm1, %v2837_v28, %v2839_v41  ;;  %v7828_v28 = vld [vmem:[%s7594_s21 + $0x8] sm:$0xff]   ;;  %v1487_v41 = vrot.slane %v7845_v16, 2 }
  0x2d   : > { %6412 = vmatprep.subr.bf16.mxu1 %v7275_v49 }
  0x2e   : > { %6635 = vmatpush3.bf16.msra.mxu0 %v7296_v26  ;;  %v7825_v26 = vld [vmem:[%s8738_s1 + $0x80] sm:$0xff]  }
  0x2f   : > { %6373 = vmatmul.mubr.bf16.gmra.mrb[4].mxu1 %v7268_v53  ;;  %6636 = vmatprep.subr.bf16.mxu0 %v7301_v40  ;;  %v7772_v53 = vld [vmem:[%s7594_s21 + $0x9c] sm:$0xff]  }
  0x30   : > { %6597 = vmatmul.mubr.bf16.gmra.mrb[4].mxu0 %v2451_v59  ;;  %6376 = vmatprep.mubr.bf16.mxu1 %v7271_v55  ;;  %v2463_v55 = vsel %vm1113_vm0, %v2460_v31, %v2462_v48  ;;  %v2843_v58 = vrot.slane %v7772_v53, 2  ;;  %v2465_v59 = vsel %vm1113_vm0, %v2462_v48, %v2464_v51  ;;  %v7297_v31 = vld [vmem:[%s7594_s21 + $0x70] sm:$0xff]   ;;  %v7304_v48 = vld [vmem:[%s7594_s21 + $0x80] sm:$0xff]  }
  0x31   : > { %6600 = vmatprep.mubr.bf16.mxu0 %v2453_v62  ;;  %6413 = vmatpush3.bf16.msra.mxu1 %v7275_v49  ;;  %v7285_v49 = vld [vmem:[%s7594_s21 + $0x50] sm:$0xff]  }
  0x32   : > { %6414 = vmatprep.subr.bf16.mxu1 %v7280_v60  ;;  %6637 = vmatpush3.bf16.msra.mxu0 %v7301_v40  ;;  %v7787_v62 = vsel %vm1481_vm1, %v2841_v46, %v2843_v58  ;;  %v7795_v3 = vsel %vm1481_vm1, %v2843_v58, %v2845_v63  ;;  %v2474_v40 = vrot.slane %v7747_v37, 1  ;;  %v7299_v46 = vld [vmem:[%s7594_s21 + $0x78] sm:$0xff]   ;;  %v7872_v58 = vld [vmem:[%s7594_s21 + $0x28] sm:$0xff]  }
  0x33   : > { %6638 = vmatprep.subr.bf16.mxu0 %v7303_v43 }
  0x35   : > { %6415 = vmatpush3.bf16.msra.mxu1 %v7280_v60  ;;  %v7310_v60 = vld [vmem:[%s8738_s1 + $0x78] sm:$0xff]  }
  0x36   : > { %6416 = vmatprep.subr.bf16.mxu1 %v7288_v7  ;;  %6639 = vmatpush3.bf16.msra.mxu0 %v7303_v43  ;;  %v7856_v43 = vld [vmem:[%s7594_s21 + $0x20] sm:$0xff]  }
  0x37   : > { %6377 = vmatmul.mubr.bf16.gmra.mrb[8].mxu1 %v7273_v4  ;;  %6640 = vmatprep.subr.bf16.mxu0 %v7308_v57  ;;  %v2468_v4 = vrot.slane %v7711_v15, 1  ;;  %v7812_v15 = vsel %vm1481_vm1, %v2845_v63, %v2847_v9  ;;  %v7306_v63 = vld [vmem:[%s7594_s21 + $0x88] sm:$0xff]  }
  0x38   : > { %6601 = vmatmul.mubr.bf16.gmra.mrb[8].mxu0 %v2455_v13  ;;  %6380 = vmatprep.mubr.bf16.mxu1 %v7276_v11  ;;  %v7315_v11 = vld [vmem:[%s8738_s1 + $0x170] sm:$0xff]  }
  0x39   : > { %6604 = vmatprep.mubr.bf16.mxu0 %v2457_v18  ;;  %6417 = vmatpush3.bf16.msra.mxu1 %v7288_v7  ;;  %v7290_v7 = vld [vmem:[%s7594_s21 + $0x60] sm:$0xff]   ;;  %v2469_v13 = vsel %vm1113_vm0, %v2466_v1, %v2468_v4  ;;  %v7316_v18 = vld [vmem:[%s8738_s1 + $0x178] sm:$0xff]   ;;  %v1491_v1 = vrot.slane %v7872_v58, 2 }
  0x3a   : > { %6418 = vmatprep.subr.bf16.mxu1 %v7295_v25  ;;  %6641 = vmatpush3.bf16.msra.mxu0 %v7308_v57  ;;  %v2478_v57 = vrot.slane %v7775_v54, 1  ;;  %v7888_v54 = vld [vmem:[%s8738_s1 + $0x180] sm:$0xff]  }
  0x3b   : > { %6642 = vmatprep.subr.bf16.mxu0 %v7309_v0 }
  0x3d   : > { %6419 = vmatpush3.bf16.msra.mxu1 %v7295_v25  ;;  %v2472_v25 = vrot.slane %v7743_v35, 1  ;;  %v2471_v35 = vsel %vm1113_vm0, %v2468_v4, %v2470_v23  ;;  %v7311_v4 = vld [vmem:[%s7594_s21 + $0x90] sm:$0xff]  }
  0x3e   : > { %6420 = vmatprep.subr.bf16.mxu1 %v7302_v42  ;;  %6643 = vmatpush3.bf16.msra.mxu0 %v7309_v0  ;;  %v7880_v0 = vld [vmem:[%s7594_s21 + $0x30] sm:$0xff]  }
  0x3f   : > { %6381 = vmatmul.mubr.bf16.gmra.mrb[12].mxu1 %v7278_v30  ;;  %6644 = vmatprep.subr.bf16.mxu0 %v7315_v11  ;;  %v2810_v30 = vrot.slane %v5614_v20, 2  ;;  %v2475_v37 = vsel %vm1113_vm0, %v2472_v25, %v2474_v40  ;;  %v1493_v17 = vrot.slane %v7880_v0, 2 }
  0x40   : > { %6605 = vmatmul.mubr.bf16.gmra.mrb[12].mxu0 %v2459_v36  ;;  %6384 = vmatprep.mubr.bf16.mxu1 %v7281_v32  ;;  %v1483_v32 = vrot.slane %v7828_v28, 2  ;;  %v2473_v36 = vsel %vm1113_vm0, %v2470_v23, %v2472_v25 }
  0x41   : > { %6608 = vmatprep.mubr.bf16.mxu0 %v2461_v39  ;;  %6421 = vmatpush3.bf16.msra.mxu1 %v7302_v42  ;;  %v7835_v14 = vsel %vm1481_vm1, %v2810_v30, %v2811_v24  ;;  %v1485_v39 = vrot.slane %v7838_v19, 2  ;;  %v2476_v42 = vrot.slane %v7772_v53, 1  ;;  %v7906_v25 = vsel %vm1481_vm1, %v1491_v1, %v1493_v17 }
  0x42   : > { %6422 = vmatprep.subr.bf16.mxu1 %v7310_v60  ;;  %6645 = vmatpush3.bf16.msra.mxu0 %v7315_v11 }
  0x43   : > { %6646 = vmatprep.subr.bf16.mxu0 %v7316_v18  ;;  %v7850_v24 = vsel %vm1481_vm1, %v1483_v32, %v1485_v39  ;;  %v2477_v51 = vsel %vm1113_vm0, %v2474_v40, %v2476_v42  ;;  %v7917_v40 = vld [vmem:[%s7594_s21 + $0x50] sm:$0xff]  }
  0x45   : > { %6423 = vmatpush3.bf16.msra.mxu1 %v7310_v60  ;;  %v7876_v60 = vld [vmem:[%s7594_s21 + $0x4] sm:$0xf] }
  0x46   : > { %6464 = vmatprep.subr.bf16.mxu1 %v7825_v26  ;;  %6647 = vmatpush3.bf16.msra.mxu0 %v7316_v18  ;;  %v2479_v18 = vsel %vm1113_vm0, %v2476_v42, %v2478_v57  ;;  %v7923_v42 = vld [vmem:[%s7594_s21 + $0x58] sm:$0xff]  }
  0x47   : > { %6385 = vmatmul.mubr.bf16.gmra.mrb[16].mxu1 %v7283_v47  ;;  %v7860_v47 = vsel %vm1481_vm1, %v1485_v39, %v1487_v41  ;;  %6688 = vmatprep.subr.bf16.mxu0 %v7888_v54  ;;  %v1115_v39 = vrot.slane %v7828_v28, 1 }
  0x48   : > { %6609 = vmatmul.mubr.bf16.gmra.mrb[16].mxu0 %v2463_v55  ;;  %6388 = vmatprep.mubr.bf16.mxu1 %v7285_v49  ;;  %v1489_v49 = vrot.slane %v7856_v43, 2  ;;  %v952_v55 = vld [vmem:[%s7594_s21] sm:$0xe] }
  0x49   : > { %6612 = vmatprep.mubr.bf16.mxu0 %v2465_v59  ;;  %v7314_v59 = vld [vmem:[%s7594_s21 + $0xb4] ss:$0 sps:$4 sm:$0x11]  }
  0x4a   : > { %v7868_v53 = vsel %vm1481_vm1, %v1487_v41, %v1489_v49  ;;  %v7895_v11 = vsel %vm1481_vm1, %v1489_v49, %v1491_v1  ;;  %v2482_v23 = vrot.slane %v7314_v59, 1  ;;  %v7313_v49 = vld [vmem:[%s7594_s21 + $0x98] sm:$0xff]  }
  0x4f   : > { %6389 = vmatmul.mubr.bf16.gmra.mrb[20].mxu1 %v7287_v6  ;;  %v2480_v6 = vrot.slane %v7799_v5, 1 }
  0x50   : > { %6613 = vmatmul.mubr.bf16.gmra.mrb[20].mxu0 %v2467_v10  ;;  %6392 = vmatprep.mubr.bf16.mxu1 %v7290_v7  ;;  %v5454_v7 = vcombine.low %v952_v55, %v7876_v60  ;;  %v7892_v10 = vld [vmem:[%s7594_s21 + $0x38] sm:$0xff]   ;;  %v7933_v55 = vld [vmem:[%s7594_s21 + $0x60] sm:$0xff]  }
  0x51   : > { %6616 = vmatprep.mubr.bf16.mxu0 %v2469_v13  ;;  %v7898_v13 = vld [vmem:[%s7594_s21 + $0x40] sm:$0xff]   ;;  %v1495_v20 = vrot.slane %v7892_v10, 2  ;;  %v2483_v59 = vsel %vm1113_vm0, %v2480_v6, %v2482_v23 }
  0x52   : > { %v1497_v30 = vrot.slane %v7898_v13, 2 }
  0x54   : > { %v7920_v41 = vsel %vm1481_vm1, %v1495_v20, %v1497_v30 }
  0x57   : > { %6393 = vmatmul.mubr.bf16.gmra.mrb[24].mxu1 %v7292_v22  ;;  %v2481_v22 = vsel %vm1113_vm0, %v2478_v57, %v2480_v6  ;;  %v1119_v6 = vrot.slane %v7845_v16, 1 }
  0x58   : > { %6617 = vmatmul.mubr.bf16.gmra.mrb[24].mxu0 %v2471_v35  ;;  %6396 = vmatprep.mubr.bf16.mxu1 %v7297_v31  ;;  %v1114_v31 = vrot.slane %v5454_v7, 1  ;;  %v7910_v35 = vld [vmem:[%s7594_s21 + $0x48] sm:$0xff]   ;;  %v1117_v7 = vrot.slane %v7838_v19, 1 }
  0x59   : > { %6620 = vmatprep.mubr.bf16.mxu0 %v2473_v36  ;;  %v7913_v36 = vsel %vm1481_vm1, %v1493_v17, %v1495_v20  ;;  %v1121_v20 = vrot.slane %v7856_v43, 1  ;;  %v7324_v19 = vld [vmem:[%s8738_s1 + $0x88] sm:$0xff]   ;;  %v7969_v43 = vld [vmem:[%s7594_s21 + $0x78] sm:$0xff]  }
  0x5a   : > { %v1118_v23 = vsel %vm1113_vm0, %v1115_v39, %v1117_v7 }
  0x5f   : > { %6397 = vmatmul.mubr.bf16.gmra.mrb[28].mxu1 %v7299_v46  ;;  %v1499_v46 = vrot.slane %v7910_v35, 2 }
  0x60   : > { %6621 = vmatmul.mubr.bf16.gmra.mrb[28].mxu0 %v2475_v37  ;;  %6400 = vmatprep.mubr.bf16.mxu1 %v7304_v48  ;;  %v1501_v48 = vrot.slane %v7917_v40, 2 }
  0x61   : > { %6624 = vmatprep.mubr.bf16.mxu0 %v2477_v51  ;;  %v7929_v37 = vsel %vm1481_vm1, %v1497_v30, %v1499_v46  ;;  %v1503_v51 = vrot.slane %v7923_v42, 2  ;;  %v1456_v30 = vld [vmem:[%s7594_s21] sm:$0xc] }
  0x62   : > { %v7936_v57 = vsel %vm1481_vm1, %v1499_v46, %v1501_v48  ;;  %v1120_v46 = vsel %vm1113_vm0, %v1117_v7, %v1119_v6  ;;  %v7327_v7 = vld [vmem:[%s8738_s1 + $0x90] sm:$0xff]  }
  0x63   : > { %v7941_v1 = vsel %vm1481_vm1, %v1501_v48, %v1503_v51 }
  0x67   : > { %6401 = vmatmul.mubr.bf16.gmra.mrb[32].mxu1 %v7306_v63  ;;  %v1116_v63 = vsel %vm1113_vm0, %v1114_v31, %v1115_v39  ;;  %v7340_v31 = vld [vmem:[%s8738_s1 + $0x188] sm:$0xff]   ;;  %v7973_v39 = vld [vmem:[%s7594_s21 + $0x80] sm:$0xff]  }
  0x68   : > { %6625 = vmatmul.mubr.bf16.gmra.mrb[32].mxu0 %v2479_v18  ;;  %6404 = vmatprep.mubr.bf16.mxu1 %v7311_v4  ;;  %v1505_v4 = vrot.slane %v7933_v55, 2  ;;  %v7951_v18 = vld [vmem:[%s7594_s21 + $0x68] sm:$0xff]  }
  0x69   : > { %6628 = vmatprep.mubr.bf16.mxu0 %v2481_v22  ;;  %v7955_v22 = vld [vmem:[%s7594_s21 + $0x70] sm:$0xff]   ;;  %v1507_v16 = vrot.slane %v7951_v18, 2 }
  0x6a   : > { %v7946_v17 = vsel %vm1481_vm1, %v1503_v51, %v1505_v4  ;;  %v1509_v48 = vrot.slane %v7955_v22, 2 }
  0x6b   : > { %v7976_v51 = vsel %vm1481_vm1, %v1505_v4, %v1507_v16  ;;  %v7330_v4 = vld [vmem:[%s8738_s1 + $0x98] sm:$0xff]  }
  0x6f   : > { %6405 = vmatmul.mubr.bf16.gmra.mrb[36].mxu1 %v7313_v49 }
  0x70   : > { %6629 = vmatmul.mubr.bf16.gmra.mrb[36].mxu0 %v2483_v59  ;;  %6424 = vmatprep.mubr.bf16.mxu1 %v1116_v63  ;;  %v7982_v59 = vsel %vm1481_vm1, %v1507_v16, %v1509_v48  ;;  %v1511_v63 = vrot.slane %v7969_v43, 2  ;;  %v7335_v16 = vld [vmem:[%s8738_s1 + $0xa0] sm:$0xff]  }
  0x71   : > { %6648 = vmatprep.mubr.bf16.mxu0 %v7835_v14  ;;  %v5499_v14 = vcombine.low %v1456_v30, %v7876_v60  ;;  %v1123_v60 = vrot.slane %v7872_v58, 1  ;;  %v8014_v30 = vld [vmem:[%s7594_s21 + $0x88] sm:$0xff]  }
  0x72   : > { %v7997_v58 = vsel %vm1481_vm1, %v1509_v48, %v1511_v63  ;;  %v7339_v48 = vld [vmem:[%s8738_s1 + $0xa8] sm:$0xff]  }
  0x73   : > { %v1482_v49 = vrot.slane %v5499_v14, 2  ;;  %v8017_v14 = vld [vmem:[%s7594_s21 + $0x90] sm:$0xff]  }
  0x77   : > { %6425 = vmatmul.mubr.bf16.vlgmr.msra.gmra.mrb[0].mxu1 %v1118_v23  ;;  %v7345_v23 = vld [vmem:[%s8738_s1 + $0x198] sm:$0xff]  }
  0x78   : > { %6649 = vmatmul.mubr.bf16.vlgmr.msra.gmra.mrb[0].mxu0 %v7629_v29  ;;  %6465 = vmatpush3.bf16.msra.mxu1 %v7825_v26  ;;  %v7992_v29 = vsel %vm1481_vm1, %v1482_v49, %v1483_v32  ;;  %v1513_v26 = vrot.slane %v7973_v39, 2  ;;  %v1122_v32 = vsel %vm1113_vm0, %v1119_v6, %v1121_v20  ;;  %v1125_v6 = vrot.slane %v7880_v0, 1  ;;  %v8043_v49 = vld [vmem:[%s7594_s21 + $0x98] sm:$0xff]  }
  0x79   : > { %6428 = vmatprep.mubr.bf16.mxu1 %v1120_v46  ;;  %6652 = vmatprep.mubr.bf16.mxu0 %v7635_v33  ;;  %v7343_v33 = vld [vmem:[%s8738_s1 + $0x190] sm:$0xff]  }
  0x7a   : > { %6466 = vmatprep.subr.bf16.mxu1 %v7324_v19  ;;  %6689 = vmatpush3.bf16.msra.mxu0 %v7888_v54  ;;  %v8003_v28 = vsel %vm1481_vm1, %v1511_v63, %v1513_v26  ;;  %v1124_v54 = vsel %vm1113_vm0, %v1121_v20, %v1123_v60  ;;  %v1127_v20 = vrot.slane %v7892_v10, 1  ;;  %v1126_v10 = vsel %vm1113_vm0, %v1123_v60, %v1125_v6  ;;  %v7349_v63 = vld [vmem:[%s8738_s1 + $0x1a8] sm:$0xff]  }
  0x7b   : > { %6690 = vmatprep.subr.bf16.mxu0 %v7340_v31  ;;  %v1129_v60 = vrot.slane %v7898_v13, 1  ;;  %v7354_v13 = vld [vmem:[%s8738_s1 + $0x1b0] sm:$0xff]  }
  0x7c   : > { %6467 = vmatpush3.bf16.msra.mxu1 %v7324_v19  ;;  %v1515_v19 = vrot.slane %v8014_v30, 2  ;;  %v1128_v46 = vsel %vm1113_vm0, %v1125_v6, %v1127_v20  ;;  %v8079_v6 = vld [vmem:[%s8738_s1 + $0xc0] sm:$0xff]  }
  0x7d   : > { %6468 = vmatprep.subr.bf16.mxu1 %v7327_v7 }
  0x7e   : > { %6691 = vmatpush3.bf16.msra.mxu0 %v7340_v31  ;;  %v1517_v31 = vrot.slane %v8017_v14, 2 }
  0x7f   : > { %6429 = vmatmul.mubr.bf16.gmra.mrb[4].mxu1 %v1122_v32  ;;  %6692 = vmatprep.subr.bf16.mxu0 %v7343_v33  ;;  %v7350_v32 = vld [vmem:[%s8738_s1 + $0xb8] sm:$0xff]  }
  0x80   : > { %6653 = vmatmul.mubr.bf16.gmra.mrb[4].mxu0 %v7640_v38  ;;  %6432 = vmatprep.mubr.bf16.mxu1 %v1124_v54  ;;  %v8029_v38 = vsel %vm1481_vm1, %v1513_v26, %v1515_v19  ;;  %v8035_v0 = vsel %vm1481_vm1, %v1515_v19, %v1517_v31  ;;  %v1131_v26 = vrot.slane %v7910_v35, 1  ;;  %v1133_v54 = vrot.slane %v7917_v40, 1 }
  0x81   : > { %6656 = vmatprep.mubr.bf16.mxu0 %v7650_v45  ;;  %6469 = vmatpush3.bf16.msra.mxu1 %v7327_v7  ;;  %v7348_v45 = vld [vmem:[%s8738_s1 + $0x1a0] sm:$0xff]   ;;  %v1519_v7 = vrot.slane %v8043_v49, 2  ;;  %v1139_v19 = vrot.slane %v7951_v18, 1 }
  0x82   : > { %6470 = vmatprep.subr.bf16.mxu1 %v7330_v4  ;;  %6693 = vmatpush3.bf16.msra.mxu0 %v7343_v33  ;;  %v7344_v33 = vld [vmem:[%s8738_s1 + $0xb0] sm:$0xff]   ;;  %v1132_v35 = vsel %vm1113_vm0, %v1129_v60, %v1131_v26  ;;  %v1134_v40 = vsel %vm1113_vm0, %v1131_v26, %v1133_v54 }
  0x83   : > { %6694 = vmatprep.subr.bf16.mxu0 %v7345_v23 }
  0x85   : > { %6471 = vmatpush3.bf16.msra.mxu1 %v7330_v4  ;;  %v7355_v4 = vld [vmem:[%s8738_s1 + $0x1b8] sm:$0xff]  }
  0x86   : > { %6472 = vmatprep.subr.bf16.mxu1 %v7335_v16  ;;  %6695 = vmatpush3.bf16.msra.mxu0 %v7345_v23  ;;  %v1135_v23 = vrot.slane %v7923_v42, 1  ;;  %v1137_v42 = vrot.slane %v7933_v55, 1 }
  0x87   : > { %6433 = vmatmul.mubr.bf16.gmra.mrb[8].mxu1 %v1126_v10  ;;  %6696 = vmatprep.subr.bf16.mxu0 %v7348_v45 }
  0x88   : > { %6657 = vmatmul.mubr.bf16.gmra.mrb[8].mxu0 %v7659_v50  ;;  %6436 = vmatprep.mubr.bf16.mxu1 %v1128_v46  ;;  %v8059_v50 = vsel %vm1481_vm1, %v1517_v31, %v1519_v7  ;;  %v1138_v31 = vsel %vm1113_vm0, %v1135_v23, %v1137_v42 }
  0x89   : > { %6660 = vmatprep.mubr.bf16.mxu0 %v7668_v56  ;;  %6473 = vmatpush3.bf16.msra.mxu1 %v7335_v16  ;;  %v1130_v56 = vsel %vm1113_vm0, %v1127_v20, %v1129_v60  ;;  %v7485_v20 = vmov 0.0   ;;  %v1140_v16 = vsel %vm1113_vm0, %v1137_v42, %v1139_v19 }
  0x8a   : > { %6474 = vmatprep.subr.bf16.mxu1 %v7339_v48  ;;  %6697 = vmatpush3.bf16.msra.mxu0 %v7348_v45  ;;  %454 = vst [vmem:[#allocation3] sm:$0x1] %v7485_v20  ;;  %v1145_v45 = vrot.slane %v7973_v39, 1 }
  0x8b   : > { %6698 = vmatprep.subr.bf16.mxu0 %v7349_v63 }
  0x8d   : > { %6475 = vmatpush3.bf16.msra.mxu1 %v7339_v48  ;;  %v6039_v48 = vld [vmem:[%s7594_s21 + $0x8] sm:$0xff]  }
  0x8e   : > { %6476 = vmatprep.subr.bf16.mxu1 %v7344_v33  ;;  %6699 = vmatpush3.bf16.msra.mxu0 %v7349_v63  ;;  %v7353_v63 = vld [vmem:[%s7594_s21 + $0xb4] ss:$0 sps:$4 sm:$0x33]   ;;  %v5845_v60 = vunpack.c.l.bf16 %v6039_v48  ;;  %v5846_v26 = vunpack.c.h.bf16 %v6039_v48 }
  0x8f   : > { %6437 = vmatmul.mubr.bf16.gmra.mrb[12].mxu1 %v1130_v56  ;;  %6700 = vmatprep.subr.bf16.mxu0 %v7354_v13 }
  0x90   : > { %6661 = vmatmul.mubr.bf16.gmra.mrb[12].mxu0 %v7679_v61  ;;  %6440 = vmatprep.mubr.bf16.mxu1 %v1132_v35  ;;  %v8084_v61 = vld [vmem:[%s8738_s1 + $0x1c0] sm:$0xff]  }
  0x91   : > { %6664 = vmatprep.mubr.bf16.mxu0 %v7690_v2  ;;  %6477 = vmatpush3.bf16.msra.mxu1 %v7344_v33  ;;  %v1136_v2 = vsel %vm1113_vm0, %v1133_v54, %v1135_v23  ;;  %v6041_v23 = vld [vmem:[%s7594_s21 + $0x18] sm:$0xff]  }
  0x92   : > { %6478 = vmatprep.subr.bf16.mxu1 %v7350_v32  ;;  %6701 = vmatpush3.bf16.msra.mxu0 %v7354_v13  ;;  %v5854_v42 = vunpack.c.h.bf16 %v6041_v23 }
  0x93   : > { %6702 = vmatprep.subr.bf16.mxu0 %v7355_v4 }
  0x95   : > { %6479 = vmatpush3.bf16.msra.mxu1 %v7350_v32 }
  0x96   : > { %6703 = vmatpush3.bf16.msra.mxu0 %v7355_v4  ;;  %6520 = vmatprep.subr.bf16.mxu1 %v8079_v6  ;;  %v2849_v4 = vrot.slane %v7353_v63, 2 }
  0x97   : > { %6441 = vmatmul.mubr.bf16.gmra.mrb[16].mxu1 %v1134_v40  ;;  %6744 = vmatprep.subr.bf16.mxu0 %v8084_v61  ;;  %v7357_v40 = vld [vmem:[%s7594_s21 + $0x28] sm:$0xff]  }
  0x98   : > { %6665 = vmatmul.mubr.bf16.gmra.mrb[16].mxu0 %v7699_v8  ;;  %6444 = vmatprep.mubr.bf16.mxu1 %v1136_v2  ;;  %v1141_v8 = vrot.slane %v7955_v22, 1  ;;  %v5853_v2 = vunpack.c.l.bf16 %v6041_v23  ;;  %v7367_v23 = vld [vmem:[%s7594_s21 + $0x60] sm:$0xff]  }
  0x99   : > { %6668 = vmatprep.mubr.bf16.mxu0 %v7707_v12  ;;  %v1143_v12 = vrot.slane %v7969_v43, 1  ;;  %v5840_v43 = vld [vmem:[%s7594_s21] sm:$0xff]  }
  0x9a   : > { %v1142_v55 = vsel %vm1113_vm0, %v1139_v19, %v1141_v8  ;;  %v5841_v10 = vunpack.c.l.bf16 %v5840_v43  ;;  %v5842_v46 = vunpack.c.h.bf16 %v5840_v43  ;;  %v7378_v43 = vld [vmem:[%s8738_s1 + $0x1c8] sm:$0xff]  }
  0x9b   : > { %v1144_v18 = vsel %vm1113_vm0, %v1141_v8, %v1143_v12 }
  0x9c   : > { %v4622_v39 = vadd.f32 %v5842_v46, %v5841_v10  ;;  %v6044_v46 = vld [vmem:[%s7594_s21 + $0x30] sm:$0xff]  }
  0x9d   : > { %v5866_v48 = vunpack.c.h.bf16 %v6044_v46 }
  0x9e   : > { %v4623_v56 = vadd.f32 %v5845_v60, %v4622_v39  ;;  %v5865_v39 = vunpack.c.l.bf16 %v6044_v46  ;;  %v6045_v60 = vld [vmem:[%s7594_s21 + $0x38] sm:$0xff]  }
  0x9f   : > { %6445 = vmatmul.mubr.bf16.gmra.mrb[20].mxu1 %v1138_v31 }
  0xa0   : > { %6669 = vmatmul.mubr.bf16.gmra.mrb[20].mxu0 %v7722_v21  ;;  %6448 = vmatprep.mubr.bf16.mxu1 %v1140_v16  ;;  %v1147_v21 = vrot.slane %v8014_v30, 1  ;;  %v7352_v30 = vld [vmem:[%s7594_s21 + $0xa0] ss:$0 sps:$4 sm:$0x11]  }
  0xa1   : > { %6672 = vmatprep.mubr.bf16.mxu0 %v7733_v27  ;;  %v1146_v27 = vsel %vm1113_vm0, %v1143_v12, %v1145_v45  ;;  %v1153_v32 = vrot.slane %v7352_v30, 1  ;;  %v6042_v16 = vld [vmem:[%s7594_s21 + $0x20] sm:$0xff]  }
  0xa2   : > { %v1148_v22 = vsel %vm1113_vm0, %v1145_v45, %v1147_v21  ;;  %v5857_v12 = vunpack.c.l.bf16 %v6042_v16  ;;  %v7359_v45 = vld [vmem:[%s7594_s21 + $0x30] sm:$0xff]  }
  0xa7   : > { %6449 = vmatmul.mubr.bf16.gmra.mrb[24].mxu1 %v1142_v55 }
  0xa8   : > { %6673 = vmatmul.mubr.bf16.gmra.mrb[24].mxu0 %v7740_v34  ;;  %6452 = vmatprep.mubr.bf16.mxu1 %v1144_v18  ;;  %v1149_v34 = vrot.slane %v8017_v14, 1  ;;  %v4624_v14 = vadd.f32 %v5846_v26, %v4623_v56  ;;  %v7372_v26 = vld [vmem:[%s8738_s1 + $0xe0] sm:$0xff]   ;;  %v7366_v56 = vld [vmem:[%s7594_s21 + $0x58] sm:$0xff]  }
  0xa9   : > { %6676 = vmatprep.mubr.bf16.mxu0 %v7761_v44  ;;  %v1151_v44 = vrot.slane %v8043_v49, 1 }
  0xaa   : > { %v1150_v33 = vsel %vm1113_vm0, %v1147_v21, %v1149_v34  ;;  %v6043_v21 = vld [vmem:[%s7594_s21 + $0x28] sm:$0xff]  }
  0xab   : > { %v1152_v13 = vsel %vm1113_vm0, %v1149_v34, %v1151_v44  ;;  %v1154_v31 = vsel %vm1113_vm0, %v1151_v44, %v1153_v32  ;;  %v5862_v10 = vunpack.c.h.bf16 %v6043_v21  ;;  %v7365_v34 = vld [vmem:[%s8738_s1 + $0xd0] sm:$0xff]   ;;  %v7361_v44 = vld [vmem:[%s7594_s21 + $0x40] sm:$0xff]  }
  0xaf   : > { %6453 = vmatmul.mubr.bf16.gmra.mrb[28].mxu1 %v1146_v27  ;;  %v7360_v27 = vld [vmem:[%s7594_s21 + $0x38] sm:$0xff]  }
  0xb0   : > { %6677 = vmatmul.mubr.bf16.gmra.mrb[28].mxu0 %v7769_v52  ;;  %6456 = vmatprep.mubr.bf16.mxu1 %v1148_v22  ;;  %v6040_v52 = vld [vmem:[%s7594_s21 + $0x10] sm:$0xff]   ;;  %v5861_v22 = vunpack.c.l.bf16 %v6043_v21 }
  0xb1   : > { %6680 = vmatprep.mubr.bf16.mxu0 %v7787_v62  ;;  %v5849_v35 = vunpack.c.l.bf16 %v6040_v52  ;;  %v5850_v62 = vunpack.c.h.bf16 %v6040_v52  ;;  %v7364_v52 = vld [vmem:[%s7594_s21 + $0x50] sm:$0xff]  }
  0xb3   : > { %v4625_v54 = vadd.f32 %v5849_v35, %v4624_v14  ;;  %v7377_v35 = vld [vmem:[%s8738_s1 + $0xe8] sm:$0xff]   ;;  %v5870_v14 = vunpack.c.h.bf16 %v6045_v60 }
  0xb5   : > { %v4626_v19 = vadd.f32 %v5850_v62, %v4625_v54  ;;  %v7387_v62 = vld [vmem:[%s8738_s1 + $0x1e8] sm:$0xff]  }
  0xb6   : > { %v6047_v54 = vld [vmem:[%s7594_s21 + $0x48] sm:$0xff]  }
  0xb7   : > { %6457 = vmatmul.mubr.bf16.gmra.mrb[32].mxu1 %v1150_v33  ;;  %v4627_v8 = vadd.f32 %v5853_v2, %v4626_v19  ;;  %v7369_v19 = vld [vmem:[%s7594_s21 + $0x68] sm:$0xff]  }
  0xb8   : > { %6681 = vmatmul.mubr.bf16.gmra.mrb[32].mxu0 %v7795_v3  ;;  %6460 = vmatprep.mubr.bf16.mxu1 %v1152_v13  ;;  %v2850_v3 = vsel %vm1481_vm1, %v2847_v9, %v2849_v4  ;;  %v7362_v9 = vld [vmem:[%s8738_s1 + $0xc8] sm:$0xff]   ;;  %v7386_v13 = vld [vmem:[%s8738_s1 + $0x1e0] sm:$0xff]  }
  0xb9   : > { %6684 = vmatprep.mubr.bf16.mxu0 %v7812_v15  ;;  %v5858_v15 = vunpack.c.h.bf16 %v6042_v16  ;;  %v4628_v55 = vadd.f32 %v5854_v42, %v4627_v8  ;;  %v6048_v16 = vld [vmem:[%s7594_s21 + $0x50] sm:$0xff]   ;;  %v7393_v8 = vld [vmem:[%s8738_s1 + $0x1f8] sm:$0xff]  }
  0xba   : > { %v5882_v21 = vunpack.c.h.bf16 %v6048_v16 }
  0xbb   : > { %v4629_v18 = vadd.f32 %v5857_v12, %v4628_v55  ;;  %v5878_v12 = vunpack.c.h.bf16 %v6047_v54  ;;  %v5881_v55 = vunpack.c.l.bf16 %v6048_v16  ;;  %v6056_v16 = vld [vmem:[%s7594_s21 + $0x90] sm:$0xff]  }
  0xbd   : > { %v4630_v5 = vadd.f32 %v5858_v15, %v4629_v18 }
  0xbf   : > { %6461 = vmatmul.mubr.bf16.gmra.mrb[36].mxu1 %v1154_v31  ;;  %v5877_v31 = vunpack.c.l.bf16 %v6047_v54  ;;  %v7380_v54 = vld [vmem:[%s7594_s21 + $0xa0] sm:$0xff]  }
  0xc0   : > { %6685 = vmatmul.mubr.bf16.gmra.mrb[36].mxu0 %v2850_v3  ;;  %6480 = vmatprep.mubr.bf16.mxu1 %v7992_v29  ;;  %v4631_v29 = vadd.f32 %v5861_v22, %v4630_v5  ;;  %v7370_v22 = vld [vmem:[%s7594_s21 + $0x70] sm:$0xff]  }
  0xc1   : > { %6704 = vmatprep.mubr.bf16.mxu0 %v7357_v40  ;;  %v7382_v40 = vld [vmem:[%s8738_s1 + $0xf0] sm:$0xff]  }
  0xc2   : > { %v4632_v30 = vadd.f32 %v5862_v10, %v4631_v29 }
  0xc4   : > { %v4633_v63 = vadd.f32 %v5865_v39, %v4632_v30 }
  0xc6   : > { %v4634_v33 = vadd.f32 %v5866_v48, %v4633_v63  ;;  %v7374_v48 = vld [vmem:[%s7594_s21 + $0x88] sm:$0xff]   ;;  %v6052_v63 = vld [vmem:[%s7594_s21 + $0x70] sm:$0xff]  }
  0xc7   : > { %6481 = vmatmul.mubr.bf16.vlgmr.msra.gmra.mrb[0].mxu1 %v7850_v24  ;;  %v7381_v24 = vld [vmem:[%s8738_s1 + $0x1d0] sm:$0xff]  }
  0xc8   : > { %6705 = vmatmul.mubr.bf16.vlgmr.msra.gmra.mrb[0].mxu0 %v7359_v45  ;;  %6521 = vmatpush3.bf16.msra.mxu1 %v8079_v6  ;;  %v7363_v6 = vld [vmem:[%s7594_s21 + $0x48] sm:$0xff]   ;;  %v6049_v45 = vld [vmem:[%s7594_s21 + $0x58] sm:$0xff]  }
  0xc9   : > { %6484 = vmatprep.mubr.bf16.mxu1 %v7860_v47  ;;  %6708 = vmatprep.mubr.bf16.mxu0 %v7360_v27  ;;  %v7368_v47 = vld [vmem:[%s8738_s1 + $0xd8] sm:$0xff]   ;;  %v5885_v5 = vunpack.c.l.bf16 %v6049_v45  ;;  %v5886_v10 = vunpack.c.h.bf16 %v6049_v45 }
  0xca   : > { %6522 = vmatprep.subr.bf16.mxu1 %v7362_v9  ;;  %6745 = vmatpush3.bf16.msra.mxu0 %v8084_v61  ;;  %v7383_v61 = vld [vmem:[%s8738_s1 + $0x1d8] sm:$0xff]  }
  0xcb   : > { %6746 = vmatprep.subr.bf16.mxu0 %v7378_v43 }
  0xcc   : > { %6523 = vmatpush3.bf16.msra.mxu1 %v7362_v9  ;;  %v7371_v9 = vld [vmem:[%s7594_s21 + $0x78] sm:$0xff]  }
  0xcd   : > { %6524 = vmatprep.subr.bf16.mxu1 %v7365_v34 }
  0xce   : > { %6747 = vmatpush3.bf16.msra.mxu0 %v7378_v43  ;;  %v6050_v43 = vld [vmem:[%s7594_s21 + $0x60] sm:$0xff]  }
  0xcf   : > { %6485 = vmatmul.mubr.bf16.gmra.mrb[4].mxu1 %v7868_v53  ;;  %6748 = vmatprep.subr.bf16.mxu0 %v7381_v24  ;;  %v5869_v53 = vunpack.c.l.bf16 %v6045_v60  ;;  %v5889_v29 = vunpack.c.l.bf16 %v6050_v43  ;;  %v5890_v39 = vunpack.c.h.bf16 %v6050_v43  ;;  %v8252_v43 = vld [vmem:[%s7594_s21 + $0x40] sm:$0xff]  }
  0xd0   : > { %6709 = vmatmul.mubr.bf16.gmra.mrb[4].mxu0 %v7361_v44  ;;  %6488 = vmatprep.mubr.bf16.mxu1 %v7895_v11  ;;  %v6046_v11 = vld [vmem:[%s7594_s21 + $0x40] sm:$0xff]   ;;  %v6051_v44 = vld [vmem:[%s7594_s21 + $0x68] sm:$0xff]  }
  0xd1   : > { %6712 = vmatprep.mubr.bf16.mxu0 %v7363_v6  ;;  %6525 = vmatpush3.bf16.msra.mxu1 %v7365_v34  ;;  %v4635_v32 = vadd.f32 %v5869_v53, %v4634_v33  ;;  %v5873_v4 = vunpack.c.l.bf16 %v6046_v11  ;;  %v5874_v2 = vunpack.c.h.bf16 %v6046_v11  ;;  %v5893_v6 = vunpack.c.l.bf16 %v6051_v44  ;;  %v7379_v11 = vld [vmem:[%s7594_s21 + $0x98] sm:$0xff]  }
  0xd2   : > { %6526 = vmatprep.subr.bf16.mxu1 %v7368_v47  ;;  %6749 = vmatpush3.bf16.msra.mxu0 %v7381_v24  ;;  %v7373_v24 = vld [vmem:[%s7594_s21 + $0x80] sm:$0xff]   ;;  %v5898_v53 = vunpack.c.h.bf16 %v6052_v63 }
  0xd3   : > { %6750 = vmatprep.subr.bf16.mxu0 %v7383_v61  ;;  %v4636_v42 = vadd.f32 %v5870_v14, %v4635_v32 }
  0xd5   : > { %6527 = vmatpush3.bf16.msra.mxu1 %v7368_v47  ;;  %v4637_v3 = vadd.f32 %v5873_v4, %v4636_v42  ;;  %v3610_v42 = vld [vmem:[%s7594_s21 + $0x28] sm:$0xe] }
  0xd6   : > { %6528 = vmatprep.subr.bf16.mxu1 %v7372_v26  ;;  %6751 = vmatpush3.bf16.msra.mxu0 %v7383_v61 }
  0xd7   : > { %6489 = vmatmul.mubr.bf16.gmra.mrb[8].mxu1 %v7906_v25  ;;  %6752 = vmatprep.subr.bf16.mxu0 %v7386_v13  ;;  %v7392_v25 = vld [vmem:[%s8738_s1 + $0x1f0] sm:$0xff]   ;;  %v4638_v15 = vadd.f32 %v5874_v2, %v4637_v3  ;;  %v7384_v2 = vld [vmem:[%s7594_s21 + $0xa8] sm:$0xff]   ;;  %v7390_v3 = vld [vmem:[%s7594_s21 + $0xa0] ss:$0 sps:$4 sm:$0x33]  }
  0xd8   : > { %6713 = vmatmul.mubr.bf16.gmra.mrb[8].mxu0 %v7364_v52  ;;  %6492 = vmatprep.mubr.bf16.mxu1 %v7913_v36  ;;  %v7388_v36 = vld [vmem:[%s8738_s1 + $0xf8] sm:$0xff]  }
  0xd9   : > { %6716 = vmatprep.mubr.bf16.mxu0 %v7366_v56  ;;  %6529 = vmatpush3.bf16.msra.mxu1 %v7372_v26  ;;  %v4639_v18 = vadd.f32 %v5877_v31, %v4638_v15  ;;  %v6053_v26 = vld [vmem:[%s7594_s21 + $0x78] sm:$0xff]   ;;  %v7385_v31 = vld [vmem:[%s7594_s21 + $0xb0] sm:$0xff]  }
  0xda   : > { %6530 = vmatprep.subr.bf16.mxu1 %v7377_v35  ;;  %6753 = vmatpush3.bf16.msra.mxu0 %v7386_v13  ;;  %v7375_v13 = vld [vmem:[%s7594_s21 + $0x90] sm:$0xff]   ;;  %v5901_v52 = vunpack.c.l.bf16 %v6053_v26 }
  0xdb   : > { %6754 = vmatprep.subr.bf16.mxu0 %v7387_v62  ;;  %v4640_v27 = vadd.f32 %v5878_v12, %v4639_v18 }
  0xdd   : > { %6531 = vmatpush3.bf16.msra.mxu1 %v7377_v35  ;;  %v6054_v35 = vld [vmem:[%s7594_s21 + $0x80] sm:$0xff]  }
  0xde   : > { %6532 = vmatprep.subr.bf16.mxu1 %v7382_v40  ;;  %6755 = vmatpush3.bf16.msra.mxu0 %v7387_v62  ;;  %v5902_v62 = vunpack.c.h.bf16 %v6053_v26  ;;  %v5906_v4 = vunpack.c.h.bf16 %v6054_v35 }
  0xdf   : > { %6493 = vmatmul.mubr.bf16.gmra.mrb[12].mxu1 %v7920_v41  ;;  %6756 = vmatprep.subr.bf16.mxu0 %v7392_v25  ;;  %v8200_v41 = vld [vmem:[%s8738_s1 + $0x200] sm:$0xff]  }
  0xe0   : > { %6717 = vmatmul.mubr.bf16.gmra.mrb[12].mxu0 %v7367_v23  ;;  %6496 = vmatprep.mubr.bf16.mxu1 %v7929_v37  ;;  %v4641_v37 = vadd.f32 %v5881_v55, %v4640_v27  ;;  %v6055_v23 = vld [vmem:[%s7594_s21 + $0x88] sm:$0xff]   ;;  %v1521_v55 = vrot.slane %v7390_v3, 2 }
  0xe1   : > { %6720 = vmatprep.mubr.bf16.mxu0 %v7369_v19  ;;  %6533 = vmatpush3.bf16.msra.mxu1 %v7382_v40  ;;  %v8228_v19 = vld [vmem:[%s7594_s21 + $0x2c] sm:$0xf] }
  0xe2   : > { %6534 = vmatprep.subr.bf16.mxu1 %v7388_v36  ;;  %6757 = vmatpush3.bf16.msra.mxu0 %v7392_v25  ;;  %v4642_v46 = vadd.f32 %v5882_v21, %v4641_v37  ;;  %v5910_v25 = vunpack.c.h.bf16 %v6055_v23  ;;  %v5684_v12 = vcombine.low %v3610_v42, %v8228_v19  ;;  %v5914_v21 = vunpack.c.h.bf16 %v6056_v16  ;;  %v6057_v37 = vld [vmem:[%s7594_s21 + $0x98] sm:$0xff]  }
  0xe3   : > { %6758 = vmatprep.subr.bf16.mxu0 %v7393_v8 }
  0xe4   : > { %v4643_v34 = vadd.f32 %v5885_v5, %v4642_v46  ;;  %v3771_v18 = vrot.slane %v5684_v12, 1  ;;  %v7391_v5 = vld [vmem:[%s7594_s21 + $0xc0] sm:$0xff]  }
  0xe5   : > { %6535 = vmatpush3.bf16.msra.mxu1 %v7388_v36 }
  0xe6   : > { %6759 = vmatpush3.bf16.msra.mxu0 %v7393_v8  ;;  %6856 = vmatprep.subr.bf16.mxu1 %v7485_v20  ;;  %v4644_v30 = vadd.f32 %v5886_v10, %v4643_v34  ;;  %v7389_v8 = vld [vmem:[%s7594_s21 + $0xb8] sm:$0xff]   ;;  %v5917_v10 = vunpack.c.l.bf16 %v6057_v37  ;;  %v5918_v34 = vunpack.c.h.bf16 %v6057_v37 }
  0xe7   : > { %6497 = vmatmul.mubr.bf16.gmra.mrb[16].mxu1 %v7936_v57  ;;  %6800 = vmatprep.subr.bf16.mxu0 %v8200_v41  ;;  %v5894_v57 = vunpack.c.h.bf16 %v6051_v44 }
  0xe8   : > { %6721 = vmatmul.mubr.bf16.gmra.mrb[16].mxu0 %v7370_v22  ;;  %6500 = vmatprep.mubr.bf16.mxu1 %v7941_v1  ;;  %v4645_v47 = vadd.f32 %v5889_v29, %v4644_v30  ;;  %v5897_v1 = vunpack.c.l.bf16 %v6052_v63  ;;  %v1522_v22 = vsel %vm1481_vm1, %v1519_v7, %v1521_v55  ;;  %v3776_v7 = vrot.slane %v8252_v43, 1  ;;  %v7397_v29 = vld [vmem:[%s7594_s21 + $0x1c] sm:$0xff]   ;;  %v8268_v63 = vld [vmem:[%s7594_s21 + $0x50] sm:$0xff]  }
  0xe9   : > { %6724 = vmatprep.mubr.bf16.mxu0 %v7371_v9  ;;  %v8248_v9 = vld [vmem:[%s7594_s21 + $0x38] sm:$0xff]   ;;  %v6058_v30 = vld [vmem:[%s7594_s21 + $0xa0] sm:$0xff]  }
  0xea   : > { %v4646_v61 = vadd.f32 %v5890_v39, %v4645_v47  ;;  %v3774_v49 = vrot.slane %v8248_v9, 1  ;;  %v7399_v39 = vld [vmem:[%s8741_s4] sm:$0xff]   ;;  %v8264_v47 = vld [vmem:[%s7594_s21 + $0x48] sm:$0xff]  }
  0xeb   : > { %v3778_v26 = vrot.slane %v8264_v47, 1 }
  0xec   : > { %v4647_v60 = vadd.f32 %v5893_v6, %v4646_v61  ;;  %v7400_v6 = vld [vmem:[%s7594_s21 + $0x24] sm:$0xff]   ;;  %v5921_v61 = vunpack.c.l.bf16 %v6058_v30 }
  0xee   : > { %v4648_v33 = vadd.f32 %v5894_v57, %v4647_v60  ;;  %v7430_v57 = vld [vmem:[%s8738_s1 + $0x208] sm:$0xff]  }
  0xef   : > { %6501 = vmatmul.mubr.bf16.gmra.mrb[20].mxu1 %v7946_v17  ;;  %v5905_v17 = vunpack.c.l.bf16 %v6054_v35  ;;  %v7404_v60 = vld [vmem:[%s8741_s4 + $0x8] sm:$0xff]  }
  0xf0   : > { %6725 = vmatmul.mubr.bf16.gmra.mrb[20].mxu0 %v7373_v24  ;;  %6504 = vmatprep.mubr.bf16.mxu1 %v7976_v51  ;;  %v4649_v56 = vadd.f32 %v5897_v1, %v4648_v33  ;;  %v7402_v33 = vld [vmem:[%s7594_s21 + $0x2c] sm:$0xff]  }
  0xf1   : > { %6728 = vmatprep.mubr.bf16.mxu0 %v7374_v48  ;;  %v3777_v48 = vsel %vm1113_vm0, %v3774_v49, %v3776_v7  ;;  %v6059_v35 = vld [vmem:[%s7594_s21 + $0xa8] sm:$0xff]  }
  0xf2   : > { %v4650_v14 = vadd.f32 %v5898_v53, %v4649_v56  ;;  %v3780_v53 = vrot.slane %v8268_v63, 1  ;;  %v5926_v42 = vunpack.c.h.bf16 %v6059_v35 }
  0xf4   : > { %v4651_v51 = vadd.f32 %v5901_v52, %v4650_v14  ;;  %v5922_v52 = vunpack.c.h.bf16 %v6058_v30  ;;  %v8288_v14 = vld [vmem:[%s7594_s21 + $0x58] sm:$0xff]  }
  0xf6   : > { %v4652_v32 = vadd.f32 %v5902_v62, %v4651_v51  ;;  %v3779_v62 = vsel %vm1113_vm0, %v3776_v7, %v3778_v26  ;;  %v8296_v51 = vld [vmem:[%s7594_s21 + $0x60] sm:$0xff]   ;;  %v7437_v7 = vld [vmem:[%s8741_s4 + $0x30] sm:$0xff]  }
  0xf7   : > { %6505 = vmatmul.mubr.bf16.gmra.mrb[24].mxu1 %v7982_v59  ;;  %v5909_v59 = vunpack.c.l.bf16 %v6055_v23  ;;  %v3782_v23 = vrot.slane %v8288_v14, 1 }
  0xf8   : > { %6729 = vmatmul.mubr.bf16.gmra.mrb[24].mxu0 %v7375_v13  ;;  %6508 = vmatprep.mubr.bf16.mxu1 %v7997_v58  ;;  %v4653_v40 = vadd.f32 %v5905_v17, %v4652_v32  ;;  %v7435_v13 = vld [vmem:[%s8738_s1 + $0x210] sm:$0xff]   ;;  %v3781_v17 = vsel %vm1113_vm0, %v3778_v26, %v3780_v53  ;;  %v7436_v32 = vld [vmem:[%s8738_s1 + $0x218] sm:$0xff]   ;;  %v6062_v26 = vld [vmem:[%s7594_s21 + $0xc0] sm:$0xff]  }
  0xf9   : > { %6732 = vmatprep.mubr.bf16.mxu0 %v7379_v11  ;;  %v7405_v11 = vld [vmem:[%s7594_s21 + $0x34] sm:$0xff]   ;;  %v3783_v3 = vsel %vm1113_vm0, %v3780_v53, %v3782_v23 }
  0xfa   : > { %v4654_v58 = vadd.f32 %v5906_v4, %v4653_v40  ;;  %v5925_v4 = vunpack.c.l.bf16 %v6059_v35  ;;  %v7416_v40 = vld [vmem:[%s8741_s4 + $0x18] sm:$0xff]  }
  0xfc   : > { %v4655_v36 = vadd.f32 %v5909_v59, %v4654_v58  ;;  %v7407_v59 = vld [vmem:[%s7594_s21 + $0x3c] sm:$0xff]  }
  0xfd   : > { %v7442_v58 = vld [vmem:[%s8738_s1 + $0x220] sm:$0xff]  }
  0xfe   : > { %v4656_v15 = vadd.f32 %v5910_v25, %v4655_v36  ;;  %v7410_v36 = vld [vmem:[%s7594_s21 + $0x44] sm:$0xff]  }
  0xff   : > { %6509 = vmatmul.mubr.bf16.gmra.mrb[28].mxu1 %v8003_v28  ;;  %v8236_v28 = vld [vmem:[%s7594_s21 + $0x30] sm:$0xff]  }
 0x100   : > { %6733 = vmatmul.mubr.bf16.gmra.mrb[28].mxu0 %v7380_v54  ;;  %6512 = vmatprep.mubr.bf16.mxu1 %v8029_v38  ;;  %v5913_v38 = vunpack.c.l.bf16 %v6056_v16  ;;  %v3772_v45 = vrot.slane %v8236_v28, 1  ;;  %v8315_v16 = vld [vmem:[%s7594_s21 + $0x68] sm:$0xff]  }
 0x101   : > { %6736 = vmatprep.mubr.bf16.mxu0 %v7384_v2  ;;  %v3784_v2 = vrot.slane %v8296_v51, 1 }
 0x102   : > { %v4657_v27 = vadd.f32 %v5913_v38, %v4656_v15  ;;  %v3775_v24 = vsel %vm1113_vm0, %v3772_v45, %v3774_v49  ;;  %v8322_v38 = vld [vmem:[%s7594_s21 + $0x70] sm:$0xff]   ;;  %v7443_v15 = vld [vmem:[%s8738_s1 + $0x228] sm:$0xff]   ;;  %v8342_v49 = vld [vmem:[%s7594_s21 + $0x78] sm:$0xff]  }
 0x103   : > { %v3785_v12 = vsel %vm1113_vm0, %v3782_v23, %v3784_v2 }
 0x104   : > { %v4658_v46 = vadd.f32 %v5914_v21, %v4657_v27  ;;  %v7429_v21 = vld [vmem:[%s8741_s4 + $0x28] sm:$0xff]   ;;  %v3788_v27 = vrot.slane %v8322_v38, 1 }
 0x106   : > { %v4659_v44 = vadd.f32 %v5917_v10, %v4658_v46  ;;  %v6061_v10 = vld [vmem:[%s7594_s21 + $0xb8] sm:$0xff]  }
 0x107   : > { %6513 = vmatmul.mubr.bf16.gmra.mrb[32].mxu1 %v8035_v0  ;;  %v7394_v0 = vld [vmem:[%s7594_s21 + $0x14] sm:$0xff]  }
 0x108   : > { %6737 = vmatmul.mubr.bf16.gmra.mrb[32].mxu0 %v7385_v31  ;;  %6516 = vmatprep.mubr.bf16.mxu1 %v8059_v50  ;;  %v3773_v50 = vsel %vm1113_vm0, %v3771_v18, %v3772_v45  ;;  %v4660_v1 = vadd.f32 %v5918_v34, %v4659_v44  ;;  %v6060_v31 = vld [vmem:[%s7594_s21 + $0xb0] sm:$0xff]   ;;  %v3786_v45 = vrot.slane %v8315_v16, 1  ;;  %v8349_v34 = vld [vmem:[%s7594_s21 + $0x80] sm:$0xff]   ;;  %v7450_v44 = vld [vmem:[%s8738_s1 + $0x238] sm:$0xff]  }
 0x109   : > { %6740 = vmatprep.mubr.bf16.mxu0 %v7389_v8  ;;  %v7423_v8 = vld [vmem:[%s8741_s4 + $0x20] sm:$0xff]   ;;  %v5929_v55 = vunpack.c.l.bf16 %v6060_v31 }
 0x10a   : > { %v4661_v56 = vadd.f32 %v5921_v61, %v4660_v1  ;;  %v3787_v46 = vsel %vm1113_vm0, %v3784_v2, %v3786_v45  ;;  %v5934_v61 = vunpack.c.h.bf16 %v6061_v10 }
 0x10c   : > { %v4662_v54 = vadd.f32 %v5922_v52, %v4661_v56  ;;  %v8370_v52 = vld [vmem:[%s7594_s21 + $0x90] sm:$0xff]   ;;  %v5937_v56 = vunpack.c.l.bf16 %v6062_v26 }
 0x10e   : > { %v4663_v25 = vadd.f32 %v5925_v4, %v4662_v54  ;;  %v7424_v4 = vld [vmem:[%s7594_s21 + $0x74] sm:$0xff]   ;;  %v4570_v54 = vld [vmem:[%s7594_s21 + $0xc8] sm:$0xf] }
 0x10f   : > { %6517 = vmatmul.mubr.bf16.gmra.mrb[36].mxu1 %v1522_v22  ;;  %v7412_v22 = vld [vmem:[%s7594_s21 + $0x4c] sm:$0xff]  }
 0x110   : > { %6741 = vmatmul.mubr.bf16.gmra.mrb[36].mxu0 %v7391_v5  ;;  %6536 = vmatprep.mubr.bf16.mxu1 %v7394_v0  ;;  %v4664_v18 = vadd.f32 %v5926_v42, %v4663_v25  ;;  %v7449_v5 = vld [vmem:[%s8738_s1 + $0x230] sm:$0xff]   ;;  %v5930_v0 = vunpack.c.h.bf16 %v6060_v31  ;;  %v7426_v31 = vld [vmem:[%s7594_s21 + $0x7c] sm:$0xff]  }
 0x111   : > { %6760 = vmatprep.mubr.bf16.mxu0 %v3773_v50  ;;  %v7414_v50 = vld [vmem:[%s7594_s21 + $0x54] sm:$0xff]  }
 0x112   : > { %v4665_v37 = vadd.f32 %v5929_v55, %v4664_v18  ;;  %v8396_v18 = vld [vmem:[%s7594_s21 + $0xb0] sm:$0xff]  }
 0x114   : > { %v4666_v30 = vadd.f32 %v5930_v0, %v4665_v37  ;;  %v7438_v0 = vld [vmem:[%s7594_s21 + $0x94] sm:$0xff]  }
 0x117   : > { %6537 = vmatmul.mubr.bf16.vlgmr.msra.gmra.mrb[0].mxu1 %v7397_v29  ;;  %v3789_v29 = vsel %vm1113_vm0, %v3786_v45, %v3788_v27 }
 0x118   : > { %6761 = vmatmul.mubr.bf16.vlgmr.msra.gmra.mrb[0].mxu0 %v3775_v24  ;;  %6857 = vmatpush3.bf16.msra.mxu1 %v7399_v39  ;;  %v5933_v39 = vunpack.c.l.bf16 %v6061_v10  ;;  %v3790_v24 = vrot.slane %v8342_v49, 1 }
 0x119   : > { %6540 = vmatprep.mubr.bf16.mxu1 %v7400_v6  ;;  %6764 = vmatprep.mubr.bf16.mxu0 %v3777_v48  ;;  %v7446_v6 = vld [vmem:[%s8741_s4 + $0x38] sm:$0xff]   ;;  %v3792_v48 = vrot.slane %v8349_v34, 1 }
 0x11a   : > { %6858 = vmatprep.subr.bf16.mxu1 %v7485_v20  ;;  %6801 = vmatpush3.bf16.msra.mxu0 %v8200_v41  ;;  %v7409_v41 = vld [vmem:[%s8741_s4 + $0x10] sm:$0xff]   ;;  %v4667_v1 = vadd.f32 %v5933_v39, %v4666_v30  ;;  %v3791_v53 = vsel %vm1113_vm0, %v3788_v27, %v3790_v24  ;;  %v3804_v27 = vrot.slane %v8396_v18, 1  ;;  %v7440_v39 = vld [vmem:[%s7594_s21 + $0x9c] sm:$0xff]   ;;  %v4113_v30 = vld [vmem:[%s7594_s21 + $0x28] sm:$0xc] }
 0x11b   : > { %6802 = vmatprep.subr.bf16.mxu0 %v7430_v57 }
 0x11c   : > { %6859 = vmatpush3.bf16.msra.mxu1 %v7404_v60  ;;  %v7419_v60 = vld [vmem:[%s7594_s21 + $0x64] sm:$0xff]  }
 0x11d   : > { %6860 = vmatprep.subr.bf16.mxu1 %v7485_v20 }
 0x11e   : > { %6803 = vmatpush3.bf16.msra.mxu0 %v7430_v57  ;;  %v7417_v57 = vld [vmem:[%s7594_s21 + $0x5c] sm:$0xff]  }
 0x11f   : > { %6541 = vmatmul.mubr.bf16.gmra.mrb[4].mxu1 %v7402_v33  ;;  %6804 = vmatprep.subr.bf16.mxu0 %v7435_v13  ;;  %v8366_v33 = vld [vmem:[%s7594_s21 + $0x88] sm:$0xff]  }
 0x120   : > { %6765 = vmatmul.mubr.bf16.gmra.mrb[4].mxu0 %v3779_v62  ;;  %6544 = vmatprep.mubr.bf16.mxu1 %v7405_v11  ;;  %v4668_v11 = vadd.f32 %v5934_v61, %v4667_v1  ;;  %v3794_v35 = vrot.slane %v8366_v33, 1  ;;  %v3796_v62 = vrot.slane %v8370_v52, 1  ;;  %v5729_v1 = vcombine.low %v4113_v30, %v8228_v19  ;;  %v7460_v30 = vld [vmem:[%s8744_s7 + $0x38] sm:$0xff]  }
 0x121   : > { %6768 = vmatprep.mubr.bf16.mxu0 %v3781_v17  ;;  %6861 = vmatpush3.bf16.msra.mxu1 %v7409_v41  ;;  %v7421_v41 = vld [vmem:[%s7594_s21 + $0x6c] sm:$0xff]   ;;  %v5938_v17 = vunpack.c.h.bf16 %v6062_v26  ;;  %v4141_v19 = vrot.slane %v8248_v9, 2 }
 0x122   : > { %6862 = vmatprep.subr.bf16.mxu1 %v7485_v20  ;;  %6805 = vmatpush3.bf16.msra.mxu0 %v7435_v13  ;;  %v3793_v13 = vsel %vm1113_vm0, %v3790_v24, %v3792_v48  ;;  %v3795_v23 = vsel %vm1113_vm0, %v3792_v48, %v3794_v35  ;;  %v3797_v2 = vsel %vm1113_vm0, %v3794_v35, %v3796_v62 }
 0x123   : > { %6806 = vmatprep.subr.bf16.mxu0 %v7436_v32 }
 0x125   : > { %6863 = vmatpush3.bf16.msra.mxu1 %v7416_v40  ;;  %v8380_v40 = vld [vmem:[%s7594_s21 + $0x98] sm:$0xff]  }
 0x126   : > { %6864 = vmatprep.subr.bf16.mxu1 %v7485_v20  ;;  %6807 = vmatpush3.bf16.msra.mxu0 %v7436_v32  ;;  %v4669_v32 = vadd.f32 %v5937_v56, %v4668_v11  ;;  %v3798_v25 = vrot.slane %v8380_v40, 1  ;;  %v7447_v56 = vld [vmem:[%s7594_s21 + $0xac] sm:$0xff]  }
 0x127   : > { %6545 = vmatmul.mubr.bf16.gmra.mrb[8].mxu1 %v7407_v59  ;;  %6808 = vmatprep.subr.bf16.mxu0 %v7442_v58  ;;  %v8384_v59 = vld [vmem:[%s7594_s21 + $0xa0] sm:$0xff]  }
 0x128   : > { %6769 = vmatmul.mubr.bf16.gmra.mrb[8].mxu0 %v3783_v3  ;;  %6548 = vmatprep.mubr.bf16.mxu1 %v7410_v36  ;;  %v4670_v42 = vadd.f32 %v5938_v17, %v4669_v32  ;;  %v3800_v36 = vrot.slane %v8384_v59, 1  ;;  %v4143_v17 = vrot.slane %v8252_v43, 2  ;;  %v4149_v43 = vrot.slane %v8288_v14, 2 }
 0x129   : > { %6772 = vmatprep.mubr.bf16.mxu0 %v3785_v12  ;;  %6865 = vmatpush3.bf16.msra.mxu1 %v7423_v8  ;;  %v7431_v8 = vld [vmem:[%s7594_s21 + $0x84] sm:$0xff]   ;;  %v3799_v12 = vsel %vm1113_vm0, %v3796_v62, %v3798_v25  ;;  %v4157_v14 = vrot.slane %v8342_v49, 2  ;;  %v4165_v49 = vrot.slane %v8380_v40, 2 }
 0x12a   : > { %6866 = vmatprep.subr.bf16.mxu1 %v7485_v20  ;;  %6809 = vmatpush3.bf16.msra.mxu0 %v7442_v58  ;;  %v4621_v58 = vunpack.c.l.bf16 %v4570_v54  ;;  %v3801_v55 = vsel %vm1113_vm0, %v3798_v25, %v3800_v36  ;;  %v4145_v54 = vrot.slane %v8264_v47, 2  ;;  %v4153_v47 = vrot.slane %v8315_v16, 2 }
 0x12b   : > { %6810 = vmatprep.subr.bf16.mxu0 %v7443_v15  ;;  %v4161_v16 = vrot.slane %v8366_v33, 2 }
 0x12c   : > { %v4671_v3 = vadd.f32 %v4670_v42, %v4621_v58  ;;  %v4151_v58 = vrot.slane %v8296_v51, 2  ;;  %v4159_v51 = vrot.slane %v8349_v34, 2  ;;  %v4167_v34 = vrot.slane %v8384_v59, 2 }
 0x12d   : > { %6867 = vmatpush3.bf16.msra.mxu1 %v7429_v21 }
 0x12e   : > { %6868 = vmatprep.subr.bf16.mxu1 %v7485_v20  ;;  %6811 = vmatpush3.bf16.msra.mxu0 %v7443_v15  ;;  %v8392_v15 = vld [vmem:[%s7594_s21 + $0xa8] sm:$0xff]   ;;  %v4672_v45 = vrot.slane %v4671_v3, 4  ;;  %v4152_v25 = vsel %vm1481_vm1, %v4149_v43, %v4151_v58 }
 0x12f   : > { %6549 = vmatmul.mubr.bf16.gmra.mrb[12].mxu1 %v7412_v22  ;;  %6812 = vmatprep.subr.bf16.mxu0 %v7449_v5  ;;  %v3802_v21 = vrot.slane %v8392_v15, 1  ;;  %v7433_v22 = vld [vmem:[%s7594_s21 + $0x8c] sm:$0xff]   ;;  %v4169_v33 = vrot.slane %v8392_v15, 2 }
 0x130   : > { %6773 = vmatmul.mubr.bf16.gmra.mrb[12].mxu0 %v3787_v46  ;;  %6552 = vmatprep.mubr.bf16.mxu1 %v7414_v50  ;;  %v8404_v50 = vld [vmem:[%s7594_s21 + $0xb8] sm:$0xff]   ;;  %v8408_v46 = vld [vmem:[%s7594_s21 + $0xc0] sm:$0xff]  }
 0x131   : > { %6776 = vmatprep.mubr.bf16.mxu0 %v3789_v29  ;;  %6869 = vmatpush3.bf16.msra.mxu1 %v7437_v7  ;;  %v3803_v37 = vsel %vm1113_vm0, %v3800_v36, %v3802_v21  ;;  %v3805_v10 = vsel %vm1113_vm0, %v3802_v21, %v3804_v27  ;;  %v3806_v29 = vrot.slane %v8404_v50, 1  ;;  %v4154_v36 = vsel %vm1481_vm1, %v4151_v58, %v4153_v47 }
 0x132   : > { %6870 = vmatprep.subr.bf16.mxu1 %v7485_v20  ;;  %6813 = vmatpush3.bf16.msra.mxu0 %v7449_v5  ;;  %v4673_v5 = vadd.f32 %v4672_v45, %v4671_v3  ;;  %v4168_v21 = vsel %vm1481_vm1, %v4165_v49, %v4167_v34  ;;  %v4173_v40 = vrot.slane %v8404_v50, 2  ;;  %v4175_v59 = vrot.slane %v8408_v46, 2  ;;  %v7454_v50 = vld [vmem:[%s8744_s7 + $0x8] sm:$0xff]  }
 0x133   : > { %6814 = vmatprep.subr.bf16.mxu0 %v7450_v44  ;;  %v3807_v48 = vsel %vm1113_vm0, %v3804_v27, %v3806_v29  ;;  %v4170_v27 = vsel %vm1481_vm1, %v4167_v34, %v4169_v33 }
 0x134   : > { %v4674_v7 = vrot.slane %v4673_v5, 2 }
 0x135   : > { %6871 = vmatpush3.bf16.msra.mxu1 %v7446_v6  ;;  %v7444_v6 = vld [vmem:[%s7594_s21 + $0xa4] sm:$0xff]  }
 0x136   : > { %6815 = vmatpush3.bf16.msra.mxu0 %v7450_v44  ;;  %6876 = vmatprep.subr.bf16.mxu1 %v7485_v20  ;;  %v3808_v44 = vrot.slane %v8408_v46, 1  ;;  %v4675_v24 = vadd.f32 %v4674_v7, %v4673_v5  ;;  %v7455_v46 = vld [vmem:[%s8744_s7 + $0x10] sm:$0xff]   ;;  %v7456_v7 = vld [vmem:[%s8744_s7 + $0x18] sm:$0xff]  }
 0x137   : > { %6553 = vmatmul.mubr.bf16.gmra.mrb[16].mxu1 %v7417_v57  ;;  %v7448_v57 = vld [vmem:[%s7594_s21 + $0xc8] ss:$0 sps:$4 sm:$0x11]  }
 0x138   : > { %6777 = vmatmul.mubr.bf16.gmra.mrb[16].mxu0 %v3791_v53  ;;  %6556 = vmatprep.mubr.bf16.mxu1 %v7419_v60  ;;  %v3809_v61 = vsel %vm1113_vm0, %v3806_v29, %v3808_v44  ;;  %v4676_v60 = vrot.slane %v4675_v24, 1  ;;  %v3810_v26 = vrot.slane %v7448_v57, 1  ;;  %v4138_v53 = vrot.slane %v5729_v1, 2  ;;  %v7457_v29 = vld [vmem:[%s8744_s7 + $0x20] sm:$0xff]  }
 0x139   : > { %6780 = vmatprep.mubr.bf16.mxu0 %v3793_v13  ;;  %v4139_v13 = vrot.slane %v8236_v28, 2 }
 0x13a   : > { %v4677_v11 = vadd.f32 %v4676_v60, %v4675_v24  ;;  %v3811_v35 = vsel %vm1113_vm0, %v3808_v44, %v3810_v26  ;;  %v7458_v44 = vld [vmem:[%s8744_s7 + $0x28] sm:$0xff]  }
 0x13b   : > { %v4140_v62 = vsel %vm1481_vm1, %v4138_v53, %v4139_v13  ;;  %v4142_v28 = vsel %vm1481_vm1, %v4139_v13, %v4141_v19 }
 0x13f   : > { %6557 = vmatmul.mubr.bf16.gmra.mrb[20].mxu1 %v7421_v41  ;;  %v4678_v41 = vmul.f32 0.00390625, %v4677_v11 }
 0x140   : > { %6781 = vmatmul.mubr.bf16.gmra.mrb[20].mxu0 %v3795_v23  ;;  %6560 = vmatprep.mubr.bf16.mxu1 %v7424_v4  ;;  %v4144_v4 = vsel %vm1481_vm1, %v4141_v19, %v4143_v17  ;;  %v4147_v23 = vrot.slane %v8268_v63, 2  ;;  %v4155_v63 = vrot.slane %v8322_v38, 2  ;;  %v4163_v38 = vrot.slane %v8370_v52, 2 }
 0x141   : > { %6784 = vmatprep.mubr.bf16.mxu0 %v3797_v2  ;;  %v4680_v32 = vpack.c.bf16 %v4678_v41, %v4678_v41  ;;  %v4146_v2 = vsel %vm1481_vm1, %v4143_v17, %v4145_v54  ;;  %v4171_v52 = vrot.slane %v8396_v18, 2 }
 0x142   : > { %v4148_v9 = vsel %vm1481_vm1, %v4145_v54, %v4147_v23  ;;  %v4150_v42 = vsel %vm1481_vm1, %v4147_v23, %v4149_v43  ;;  %v4158_v3 = vsel %vm1481_vm1, %v4155_v63, %v4157_v14  ;;  %v4166_v45 = vsel %vm1481_vm1, %v4163_v38, %v4165_v49 }
 0x143   : > { %v4174_v5 = vsel %vm1481_vm1, %v4171_v52, %v4173_v40 }
 0x147   : > { %6561 = vmatmul.mubr.bf16.gmra.mrb[24].mxu1 %v7426_v31  ;;  %v4156_v31 = vsel %vm1481_vm1, %v4153_v47, %v4155_v63 }
 0x148   : > { %6785 = vmatmul.mubr.bf16.gmra.mrb[24].mxu0 %v3799_v12  ;;  %6564 = vmatprep.mubr.bf16.mxu1 %v7431_v8  ;;  %v4160_v8 = vsel %vm1481_vm1, %v4157_v14, %v4159_v51  ;;  %v4162_v12 = vsel %vm1481_vm1, %v4159_v51, %v4161_v16 }
 0x149   : > { %6788 = vmatprep.mubr.bf16.mxu0 %v3801_v55  ;;  %v4164_v55 = vsel %vm1481_vm1, %v4161_v16, %v4163_v38 }
 0x14f   : > { %6565 = vmatmul.mubr.bf16.gmra.mrb[28].mxu1 %v7433_v22  ;;  %v4172_v22 = vsel %vm1481_vm1, %v4169_v33, %v4171_v52 }
 0x150   : > { %6789 = vmatmul.mubr.bf16.gmra.mrb[28].mxu0 %v3803_v37  ;;  %6568 = vmatprep.mubr.bf16.mxu1 %v7438_v0  ;;  %v7452_v0 = vld [vmem:[%s7594_s21 + $0xc8] ss:$0 sps:$4 sm:$0x33]   ;;  %v4176_v37 = vsel %vm1481_vm1, %v4173_v40, %v4175_v59  ;;  %v8574_v40 = vld [vmem:[%s8740_s3] ss:$0 sm:$0xff] }
 0x151   : > { %6792 = vmatprep.mubr.bf16.mxu0 %v3805_v10  ;;  %v4177_v15 = vrot.slane %v7452_v0, 2  ;;  %v7453_v10 = vld [vmem:[%s8744_s7] sm:$0xff]  }
 0x153   : > { %v4178_v18 = vsel %vm1481_vm1, %v4175_v59, %v4177_v15 }
 0x157   : > { %6569 = vmatmul.mubr.bf16.gmra.mrb[32].mxu1 %v7440_v39  ;;  %v7459_v39 = vld [vmem:[%s8744_s7 + $0x30] sm:$0xff]  }
 0x158   : > { %6793 = vmatmul.mubr.bf16.gmra.mrb[32].mxu0 %v3807_v48  ;;  %6572 = vmatprep.mubr.bf16.mxu1 %v7444_v6 }
 0x159   : > { %6796 = vmatprep.mubr.bf16.mxu0 %v3809_v61 }
 0x15f   : > { %6573 = vmatmul.mubr.bf16.gmra.mrb[36].mxu1 %v7447_v56 }
 0x160   : > { %6797 = vmatmul.mubr.bf16.gmra.mrb[36].mxu0 %v3811_v35  ;;  %6872 = vmatprep.mubr.msk.bf16.mxu1 %vm7486_vm2, %v7485_v20 }
 0x161   : > { %6816 = vmatprep.mubr.bf16.mxu0 %v4140_v62 }
 0x167   : > { %6873 = vmatmul.mubr.bf16.vlgmr.msra.gmra.mrb[40].mxu1 %v4680_v32 }
 0x168   : > { %6817 = vmatmul.mubr.bf16.vlgmr.msra.gmra.mrb[0].mxu0 %v4142_v28  ;;  %6892 = vmatprep.mubr.msk.bf16.mxu1 %vm7486_vm2, %v7485_v20 }
 0x169   : > { %6820 = vmatprep.mubr.bf16.mxu0 %v4144_v4  ;;  %6877 = vmatpush3.bf16.msra.mxu1 %v7453_v10 }
 0x16a   : > { %6878 = vmatprep.subr.bf16.mxu1 %v7485_v20 }
 0x16d   : > { %6879 = vmatpush3.bf16.msra.mxu1 %v7454_v50 }
 0x16e   : > { %6880 = vmatprep.subr.bf16.mxu1 %v7485_v20 }
 0x170   : > { %6821 = vmatmul.mubr.bf16.gmra.mrb[4].mxu0 %v4146_v2 }
 0x171   : > { %6824 = vmatprep.mubr.bf16.mxu0 %v4148_v9  ;;  %6881 = vmatpush3.bf16.msra.mxu1 %v7455_v46 }
 0x172   : > { %6882 = vmatprep.subr.bf16.mxu1 %v7485_v20 }
 0x175   : > { %6883 = vmatpush3.bf16.msra.mxu1 %v7456_v7 }
 0x176   : > { %6884 = vmatprep.subr.bf16.mxu1 %v7485_v20 }
 0x178   : > { %6825 = vmatmul.mubr.bf16.gmra.mrb[8].mxu0 %v4150_v42 }
 0x179   : > { %6828 = vmatprep.mubr.bf16.mxu0 %v4152_v25  ;;  %6885 = vmatpush3.bf16.msra.mxu1 %v7457_v29 }
 0x17a   : > { %6886 = vmatprep.subr.bf16.mxu1 %v7485_v20 }
 0x17d   : > { %6887 = vmatpush3.bf16.msra.mxu1 %v7458_v44 }
 0x17e   : > { %6888 = vmatprep.subr.bf16.mxu1 %v7485_v20 }
 0x180   : > { %6829 = vmatmul.mubr.bf16.gmra.mrb[12].mxu0 %v4154_v36 }
 0x181   : > { %6832 = vmatprep.mubr.bf16.mxu0 %v4156_v31  ;;  %6889 = vmatpush3.bf16.msra.mxu1 %v7459_v39 }
 0x182   : > { %6890 = vmatprep.subr.bf16.mxu1 %v7485_v20 }
 0x185   : > { %6891 = vmatpush3.bf16.msra.mxu1 %v7460_v30  ;;  %v5165_v30 = vld [vmem:[%s8742_s5] sm:$0x1] }
 0x188   : > { %6833 = vmatmul.mubr.bf16.gmra.mrb[16].mxu0 %v4158_v3 }
 0x189   : > { %6836 = vmatprep.mubr.bf16.mxu0 %v4160_v8 }
 0x190   : > { %6837 = vmatmul.mubr.bf16.gmra.mrb[20].mxu0 %v4162_v12 }
 0x191   : > { %6840 = vmatprep.mubr.bf16.mxu0 %v4164_v55  ;;  %v4679_v55 = vld [vmem:[#allocation3] sm:$0x1] }
 0x198   : > { %6841 = vmatmul.mubr.bf16.gmra.mrb[24].mxu0 %v4166_v45  ;;  %v8569_v45 = vld [vmem:[%s8739_s2] ss:$0 sm:$0xff] }
 0x199   : > { %6844 = vmatprep.mubr.bf16.mxu0 %v4168_v21 }
 0x1a0   : > { %6845 = vmatmul.mubr.bf16.gmra.mrb[28].mxu0 %v4170_v27 }
 0x1a1   : > { %6848 = vmatprep.mubr.bf16.mxu0 %v4172_v22 }
 0x1a8   : > { %6849 = vmatmul.mubr.bf16.gmra.mrb[32].mxu0 %v4174_v5 }
 0x1a9   : > { %6852 = vmatprep.mubr.bf16.mxu0 %v4176_v37 }
 0x1b0   : > { %6853 = vmatmul.mubr.bf16.gmra.mrb[36].mxu0 %v4178_v18 }
 0x1ea   : > { %v6538_v24 = vpop.f32.mrb[0].mxu1 }
 0x1eb   : > { %v2083_v6 = vpop.f32.mrb[1].mxu1 }
 0x1ec   : > { %v6539_v48 = vpop.f32.mrb[2].mxu1 }
 0x1ed   : > { %v2086_v57 = vpop.f32.mrb[3].mxu1 }
 0x1f2   : > { %v8494_v61 = vpop.f32.mrb[4].mxu1 }
 0x1f3   : > { %v8496_v1 = vpop.f32.mrb[5].mxu1 }
 0x1f4   : > { %v8498_v60 = vpop.f32.mrb[6].mxu1 }
 0x1f5   : > { %v8500_v26 = vpop.f32.mrb[7].mxu1 }
 0x1fa   : > { %v8502_v53 = vpop.f32.mrb[8].mxu1 }
 0x1fb   : > { %v8504_v20 = vpop.f32.mrb[9].mxu1 }
 0x1fc   : > { %v8506_v13 = vpop.f32.mrb[10].mxu1 }
 0x1fd   : > { %v8508_v56 = vpop.f32.mrb[11].mxu1 }
 0x202   : > { %v8510_v11 = vpop.f32.mrb[12].mxu1 }
 0x203   : > { %v8512_v35 = vpop.f32.mrb[13].mxu1 }
 0x204   : > { %v8514_v62 = vpop.f32.mrb[14].mxu1 }
 0x205   : > { %v8516_v41 = vpop.f32.mrb[15].mxu1 }
 0x20a   : > { %v8518_v19 = vpop.f32.mrb[16].mxu1 }
 0x20b   : > { %v8520_v17 = vpop.f32.mrb[17].mxu1 }
 0x20c   : > { %v8522_v32 = vpop.f32.mrb[18].mxu1 }
 0x20d   : > { %v8524_v28 = vpop.f32.mrb[19].mxu1 }
 0x212   : > { %v8526_v4 = vpop.f32.mrb[20].mxu1 }
 0x213   : > { %v8528_v54 = vpop.f32.mrb[21].mxu1 }
 0x214   : > { %v8530_v23 = vpop.f32.mrb[22].mxu1 }
 0x215   : > { %v8532_v2 = vpop.f32.mrb[23].mxu1 }
 0x21a   : > { %v8534_v9 = vpop.f32.mrb[24].mxu1 }
 0x21b   : > { %v8536_v43 = vpop.f32.mrb[25].mxu1 }
 0x21c   : > { %v8538_v58 = vpop.f32.mrb[26].mxu1 }
 0x21d   : > { %v8540_v42 = vpop.f32.mrb[27].mxu1 }
 0x222   : > { %v8542_v25 = vpop.f32.mrb[28].mxu1 }
 0x223   : > { %v8544_v47 = vpop.f32.mrb[29].mxu1 }
 0x224   : > { %v8546_v63 = vpop.f32.mrb[30].mxu1 }
 0x225   : > { %v8548_v36 = vpop.f32.mrb[31].mxu1 }
 0x22a   : > { %v8550_v31 = vpop.f32.mrb[32].mxu1 }
 0x22b   : > { %v8552_v14 = vpop.f32.mrb[33].mxu1 }
 0x22c   : > { %v8554_v51 = vpop.f32.mrb[34].mxu1 }
 0x22d   : > { %v8556_v3 = vpop.f32.mrb[35].mxu1 }
 0x232   : > { %v8558_v8 = vpop.f32.mrb[36].mxu1 }
 0x233   : > { %v8560_v16 = vpop.f32.mrb[37].mxu1 }
 0x234   : > { %v8562_v38 = vpop.f32.mrb[38].mxu1 }
 0x235   : > { %v8564_v12 = vpop.f32.mrb[39].mxu1 }
 0x23a   : > { %v4779_v49 = vpop.f32.mrb[40].mxu1 }
 0x23b   : > { %v6818_v34 = vpop.f32.mrb[0].mxu0  ;;  %v4785_v21 = vadd.f32 %v4779_v49, %v4679_v55  ;;  %v6874_v33 = vpop.f32.mrb[41].mxu1 }
 0x23c   : > { %v6896_v52 = vadd.f32 %v6818_v34, %v6538_v24  ;;  %v4281_v27 = vpop.f32.mrb[1].mxu0  ;;  %v4782_v22 = vpop.f32.mrb[42].mxu1 }
 0x23d   : > { %4786 = vst [vmem:[#allocation3] sm:$0x1] %v4785_v21  ;;  %v6897_v59 = vadd.f32 %v4281_v27, %v2083_v6  ;;  %v6819_v5 = vpop.f32.mrb[2].mxu0  ;;  %v6875_v0 = vpop.f32.mrb[43].mxu1 }
 0x23e   : > { %v4839_v37 = vmul.f32 %v6896_v52, %v8569_v45  ;;  %v6898_v15 = vadd.f32 %v6819_v5, %v6539_v48  ;;  %v4284_v18 = vpop.f32.mrb[3].mxu0  ;;  %v5167_v48 = vld [vmem:[%s8743_s6] sm:$0x1] }
 0x23f   : > { %v4837_v10 = vmul.f32 %v6897_v59, %v8569_v45  ;;  %v6899_v50 = vadd.f32 %v4284_v18, %v2086_v57 }
 0x240   : > { %v4886_v46 = vadd.f32 %v8574_v40, %v4839_v37  ;;  %v4840_v7 = vmul.f32 %v6898_v15, %v8569_v45 }
 0x241   : > { %v4884_v29 = vadd.f32 %v8574_v40, %v4837_v10  ;;  %v4838_v44 = vmul.f32 %v6899_v50, %v8569_v45 }
 0x242   : > { %v4887_v39 = vadd.f32 %v8574_v40, %v4840_v7  ;;  %v4926_v57 = vmax.f32 %v4886_v46, 0.0 }
 0x243   : > { %v4885_v24 = vadd.f32 %v8574_v40, %v4838_v44  ;;  %v6822_v6 = vpop.f32.mrb[4].mxu0  ;;  %v4924_v33 = vmax.f32 %v4884_v29, 0.0 }
 0x244   : > { %v4927_v55 = vmax.f32 %v4887_v39, 0.0  ;;  %v6900_v49 = vadd.f32 %v6822_v6, %v8494_v61  ;;  %v4297_v34 = vpop.f32.mrb[5].mxu0  ;;  %v5164_v21 = vld [vmem:[#allocation3] sm:$0x1] }
 0x245   : > { %v4925_v52 = vmax.f32 %v4885_v24, 0.0  ;;  %v6901_v27 = vadd.f32 %v4297_v34, %v8496_v1  ;;  %v6823_v22 = vpop.f32.mrb[6].mxu0  ;;  %v5166_v59 = vmul.f32 %v5165_v30, %v5164_v21 }
 0x246   : > { %v5947_v5 = vpack.c.bf16 %v4927_v55, %v4926_v57  ;;  %v4843_v0 = vmul.f32 %v6900_v49, %v8569_v45  ;;  %v6902_v61 = vadd.f32 %v6823_v22, %v8498_v60  ;;  %v4300_v37 = vpop.f32.mrb[7].mxu0 }
 0x247   : > { %v5942_v15 = vpack.c.bf16 %v4925_v52, %v4924_v33  ;;  %v4841_v18 = vmul.f32 %v6901_v27, %v8569_v45  ;;  %v6903_v10 = vadd.f32 %v4300_v37, %v8500_v26  ;;  %v5168_v50 = vadd.f32 %v5167_v48, %v5166_v59 }
 0x248   : > { %6063 = vst [vmem:[%s8595_s25 + $0x8] sm:$0xff] %v5947_v5   ;;  %v4890_v46 = vadd.f32 %v8574_v40, %v4843_v0  ;;  %v4844_v7 = vmul.f32 %v6902_v61, %v8569_v45 }
 0x249   : > { %5943 = vst [vmem:[%s8595_s25] sm:$0xff] %v5942_v15   ;;  %v4888_v1 = vadd.f32 %v8574_v40, %v4841_v18  ;;  %v4842_v29 = vmul.f32 %v6903_v10, %v8569_v45  ;;  %v5169_v44 = vmax.f32 %v5168_v50, 0.0 }
 0x24a   : > { %v4891_v60 = vadd.f32 %v8574_v40, %v4844_v7  ;;  %v4930_v6 = vmax.f32 %v4890_v46, 0.0 }
 0x24b   : > { %v4889_v39 = vadd.f32 %v8574_v40, %v4842_v29  ;;  %v6826_v30 = vpop.f32.mrb[8].mxu0  ;;  %v5170_v24 = vpack.c.bf16 %v5169_v44, %v5169_v44  ;;  %v4928_v55 = vmax.f32 %v4888_v1, 0.0 }
 0x24c   : > { %v4931_v26 = vmax.f32 %v4891_v60, 0.0  ;;  %v6904_v48 = vadd.f32 %v6826_v30, %v8502_v53  ;;  %v4313_v57 = vpop.f32.mrb[9].mxu0 }
 0x24d   : > { %v4929_v49 = vmax.f32 %v4889_v39, 0.0  ;;  %v6905_v34 = vadd.f32 %v4313_v57, %v8504_v20  ;;  %v6827_v21 = vpop.f32.mrb[10].mxu0  ;;  %6893 = vmatmul.mubr.bf16.vlgmr.msra.gmra.mrb[44].mxu1 %v5170_v24 }
 0x24e   : > { %v5957_v33 = vpack.c.bf16 %v4931_v26, %v4930_v6  ;;  %v4847_v52 = vmul.f32 %v6904_v48, %v8569_v45  ;;  %v6906_v27 = vadd.f32 %v6827_v21, %v8506_v13  ;;  %v4316_v22 = vpop.f32.mrb[11].mxu0 }
 0x24f   : > { %v5952_v59 = vpack.c.bf16 %v4929_v49, %v4928_v55  ;;  %v4845_v5 = vmul.f32 %v6905_v34, %v8569_v45  ;;  %v6907_v0 = vadd.f32 %v4316_v22, %v8508_v56 }
 0x250   : > { %6065 = vst [vmem:[%s8595_s25 + $0x18] sm:$0xff] %v5957_v33   ;;  %v4894_v53 = vadd.f32 %v8574_v40, %v4847_v52  ;;  %v4848_v61 = vmul.f32 %v6906_v27, %v8569_v45 }
 0x251   : > { %6064 = vst [vmem:[%s8595_s25 + $0x10] sm:$0xff] %v5952_v59   ;;  %v4892_v20 = vadd.f32 %v8574_v40, %v4845_v5  ;;  %v4846_v37 = vmul.f32 %v6907_v0, %v8569_v45 }
 0x252   : > { %v4895_v15 = vadd.f32 %v8574_v40, %v4848_v61  ;;  %v4934_v10 = vmax.f32 %v4894_v53, 0.0 }
 0x253   : > { %v4893_v13 = vadd.f32 %v8574_v40, %v4846_v37  ;;  %v6830_v18 = vpop.f32.mrb[12].mxu0  ;;  %v4932_v7 = vmax.f32 %v4892_v20, 0.0 }
 0x254   : > { %v4935_v50 = vmax.f32 %v4895_v15, 0.0  ;;  %v6908_v56 = vadd.f32 %v6830_v18, %v8510_v11  ;;  %v4329_v46 = vpop.f32.mrb[13].mxu0 }
 0x255   : > { %v4933_v1 = vmax.f32 %v4893_v13, 0.0  ;;  %v6909_v29 = vadd.f32 %v4329_v46, %v8512_v35  ;;  %v6831_v44 = vpop.f32.mrb[14].mxu0 }
 0x256   : > { %v5967_v60 = vpack.c.bf16 %v4935_v50, %v4934_v10  ;;  %v4851_v39 = vmul.f32 %v6908_v56, %v8569_v45  ;;  %v6910_v30 = vadd.f32 %v6831_v44, %v8514_v62  ;;  %v4332_v24 = vpop.f32.mrb[15].mxu0 }
 0x257   : > { %v5962_v6 = vpack.c.bf16 %v4933_v1, %v4932_v7  ;;  %v4849_v26 = vmul.f32 %v6909_v29, %v8569_v45  ;;  %v6911_v48 = vadd.f32 %v4332_v24, %v8516_v41 }
 0x258   : > { %6067 = vst [vmem:[%s8595_s25 + $0x28] sm:$0xff] %v5967_v60   ;;  %v4898_v11 = vadd.f32 %v8574_v40, %v4851_v39  ;;  %v4852_v57 = vmul.f32 %v6910_v30, %v8569_v45 }
 0x259   : > { %6066 = vst [vmem:[%s8595_s25 + $0x20] sm:$0xff] %v5962_v6   ;;  %v4896_v35 = vadd.f32 %v8574_v40, %v4849_v26  ;;  %v4850_v55 = vmul.f32 %v6911_v48, %v8569_v45 }
 0x25a   : > { %v4899_v49 = vadd.f32 %v8574_v40, %v4852_v57  ;;  %v4938_v21 = vmax.f32 %v4898_v11, 0.0 }
 0x25b   : > { %v4897_v62 = vadd.f32 %v8574_v40, %v4850_v55  ;;  %v6834_v34 = vpop.f32.mrb[16].mxu0  ;;  %v4936_v27 = vmax.f32 %v4896_v35, 0.0 }
 0x25c   : > { %v4939_v33 = vmax.f32 %v4899_v49, 0.0  ;;  %v6912_v41 = vadd.f32 %v6834_v34, %v8518_v19  ;;  %v4345_v52 = vpop.f32.mrb[17].mxu0 }
 0x25d   : > { %v4937_v22 = vmax.f32 %v4897_v62, 0.0  ;;  %v6913_v59 = vadd.f32 %v4345_v52, %v8520_v17  ;;  %v6835_v5 = vpop.f32.mrb[18].mxu0 }
 0x25e   : > { %v5977_v0 = vpack.c.bf16 %v4939_v33, %v4938_v21  ;;  %v4855_v53 = vmul.f32 %v6912_v41, %v8569_v45  ;;  %v6914_v61 = vadd.f32 %v6835_v5, %v8522_v32  ;;  %v4348_v20 = vpop.f32.mrb[19].mxu0 }
 0x25f   : > { %v5972_v37 = vpack.c.bf16 %v4937_v22, %v4936_v27  ;;  %v4853_v15 = vmul.f32 %v6913_v59, %v8569_v45  ;;  %v6915_v13 = vadd.f32 %v4348_v20, %v8524_v28 }
 0x260   : > { %6069 = vst [vmem:[%s8595_s25 + $0x38] sm:$0xff] %v5977_v0   ;;  %v4902_v19 = vadd.f32 %v8574_v40, %v4855_v53  ;;  %v4856_v18 = vmul.f32 %v6914_v61, %v8569_v45 }
 0x261   : > { %6068 = vst [vmem:[%s8595_s25 + $0x30] sm:$0xff] %v5972_v37   ;;  %v4900_v17 = vadd.f32 %v8574_v40, %v4853_v15  ;;  %v4854_v10 = vmul.f32 %v6915_v13, %v8569_v45 }
 0x262   : > { %v4903_v50 = vadd.f32 %v8574_v40, %v4856_v18  ;;  %v4942_v46 = vmax.f32 %v4902_v19, 0.0 }
 0x263   : > { %v4901_v32 = vadd.f32 %v8574_v40, %v4854_v10  ;;  %v6838_v56 = vpop.f32.mrb[20].mxu0  ;;  %v4940_v29 = vmax.f32 %v4900_v17, 0.0 }
 0x264   : > { %v4943_v7 = vmax.f32 %v4903_v50, 0.0  ;;  %v6916_v28 = vadd.f32 %v6838_v56, %v8526_v4  ;;  %v4361_v1 = vpop.f32.mrb[21].mxu0 }
 0x265   : > { %v4941_v44 = vmax.f32 %v4901_v32, 0.0  ;;  %v6917_v60 = vadd.f32 %v4361_v1, %v8528_v54  ;;  %v6839_v39 = vpop.f32.mrb[22].mxu0 }
 0x266   : > { %v5987_v30 = vpack.c.bf16 %v4943_v7, %v4942_v46  ;;  %v4859_v24 = vmul.f32 %v6916_v28, %v8569_v45  ;;  %v6918_v6 = vadd.f32 %v6839_v39, %v8530_v23  ;;  %v4364_v26 = vpop.f32.mrb[23].mxu0 }
 0x267   : > { %v5982_v48 = vpack.c.bf16 %v4941_v44, %v4940_v29  ;;  %v4857_v11 = vmul.f32 %v6917_v60, %v8569_v45  ;;  %v6919_v57 = vadd.f32 %v4364_v26, %v8532_v2 }
 0x268   : > { %6071 = vst [vmem:[%s8595_s25 + $0x48] sm:$0xff] %v5987_v30   ;;  %v4906_v4 = vadd.f32 %v8574_v40, %v4859_v24  ;;  %v4860_v35 = vmul.f32 %v6918_v6, %v8569_v45 }
 0x269   : > { %6070 = vst [vmem:[%s8595_s25 + $0x40] sm:$0xff] %v5982_v48   ;;  %v4904_v54 = vadd.f32 %v8574_v40, %v4857_v11  ;;  %v4858_v55 = vmul.f32 %v6919_v57, %v8569_v45 }
 0x26a   : > { %v4907_v49 = vadd.f32 %v8574_v40, %v4860_v35  ;;  %v4946_v34 = vmax.f32 %v4906_v4, 0.0 }
 0x26b   : > { %v4905_v23 = vadd.f32 %v8574_v40, %v4858_v55  ;;  %v6842_v62 = vpop.f32.mrb[24].mxu0  ;;  %v4944_v41 = vmax.f32 %v4904_v54, 0.0 }
 0x26c   : > { %v4947_v21 = vmax.f32 %v4907_v49, 0.0  ;;  %v6920_v2 = vadd.f32 %v6842_v62, %v8534_v9  ;;  %v4377_v33 = vpop.f32.mrb[25].mxu0 }
 0x26d   : > { %v4945_v52 = vmax.f32 %v4905_v23, 0.0  ;;  %v6921_v27 = vadd.f32 %v4377_v33, %v8536_v43  ;;  %v6843_v22 = vpop.f32.mrb[26].mxu0 }
 0x26e   : > { %v5997_v59 = vpack.c.bf16 %v4947_v21, %v4946_v34  ;;  %v4863_v5 = vmul.f32 %v6920_v2, %v8569_v45  ;;  %v6922_v0 = vadd.f32 %v6843_v22, %v8538_v58  ;;  %v4380_v53 = vpop.f32.mrb[27].mxu0 }
 0x26f   : > { %v5992_v61 = vpack.c.bf16 %v4945_v52, %v4944_v41  ;;  %v4861_v20 = vmul.f32 %v6921_v27, %v8569_v45  ;;  %v6923_v37 = vadd.f32 %v4380_v53, %v8540_v42 }
 0x270   : > { %6073 = vst [vmem:[%s8595_s25 + $0x58] sm:$0xff] %v5997_v59   ;;  %v4910_v9 = vadd.f32 %v8574_v40, %v4863_v5  ;;  %v4864_v15 = vmul.f32 %v6922_v0, %v8569_v45 }
 0x271   : > { %6072 = vst [vmem:[%s8595_s25 + $0x50] sm:$0xff] %v5992_v61   ;;  %v4908_v43 = vadd.f32 %v8574_v40, %v4861_v20  ;;  %v4862_v13 = vmul.f32 %v6923_v37, %v8569_v45 }
 0x272   : > { %v4911_v19 = vadd.f32 %v8574_v40, %v4864_v15  ;;  %v4950_v17 = vmax.f32 %v4910_v9, 0.0 }
 0x273   : > { %v4909_v58 = vadd.f32 %v8574_v40, %v4862_v13  ;;  %v6846_v18 = vpop.f32.mrb[28].mxu0  ;;  %v4948_v32 = vmax.f32 %v4908_v43, 0.0 }
 0x274   : > { %v4951_v10 = vmax.f32 %v4911_v19, 0.0  ;;  %v6924_v42 = vadd.f32 %v6846_v18, %v8542_v25  ;;  %v4393_v50 = vpop.f32.mrb[29].mxu0 }
 0x275   : > { %v4949_v56 = vmax.f32 %v4909_v58, 0.0  ;;  %v6925_v46 = vadd.f32 %v4393_v50, %v8544_v47  ;;  %v6847_v7 = vpop.f32.mrb[30].mxu0 }
 0x276   : > { %v6007_v28 = vpack.c.bf16 %v4951_v10, %v4950_v17  ;;  %v4867_v1 = vmul.f32 %v6924_v42, %v8569_v45  ;;  %v6926_v29 = vadd.f32 %v6847_v7, %v8546_v63  ;;  %v4396_v44 = vpop.f32.mrb[31].mxu0 }
 0x277   : > { %v6002_v60 = vpack.c.bf16 %v4949_v56, %v4948_v32  ;;  %v4865_v39 = vmul.f32 %v6925_v46, %v8569_v45  ;;  %v6927_v30 = vadd.f32 %v4396_v44, %v8548_v36 }
 0x278   : > { %6075 = vst [vmem:[%s8595_s25 + $0x68] sm:$0xff] %v6007_v28   ;;  %v4914_v25 = vadd.f32 %v8574_v40, %v4867_v1  ;;  %v4868_v24 = vmul.f32 %v6926_v29, %v8569_v45 }
 0x279   : > { %6074 = vst [vmem:[%s8595_s25 + $0x60] sm:$0xff] %v6002_v60   ;;  %v4912_v47 = vadd.f32 %v8574_v40, %v4865_v39  ;;  %v4866_v6 = vmul.f32 %v6927_v30, %v8569_v45 }
 0x27a   : > { %v4915_v26 = vadd.f32 %v8574_v40, %v4868_v24  ;;  %v4954_v11 = vmax.f32 %v4914_v25, 0.0 }
 0x27b   : > { %v4913_v63 = vadd.f32 %v8574_v40, %v4866_v6  ;;  %v6850_v48 = vpop.f32.mrb[32].mxu0  ;;  %v4952_v35 = vmax.f32 %v4912_v47, 0.0 }
 0x27c   : > { %v4955_v57 = vmax.f32 %v4915_v26, 0.0  ;;  %v6928_v36 = vadd.f32 %v6850_v48, %v8550_v31  ;;  %v4409_v4 = vpop.f32.mrb[33].mxu0 }
 0x27d   : > { %v4953_v54 = vmax.f32 %v4913_v63, 0.0  ;;  %v6929_v55 = vadd.f32 %v4409_v4, %v8552_v14  ;;  %v6851_v49 = vpop.f32.mrb[34].mxu0 }
 0x27e   : > { %v6017_v23 = vpack.c.bf16 %v4955_v57, %v4954_v11  ;;  %v4871_v62 = vmul.f32 %v6928_v36, %v8569_v45  ;;  %v6930_v34 = vadd.f32 %v6851_v49, %v8554_v51  ;;  %v4412_v21 = vpop.f32.mrb[35].mxu0 }
 0x27f   : > { %v6012_v2 = vpack.c.bf16 %v4953_v54, %v4952_v35  ;;  %v4869_v33 = vmul.f32 %v6929_v55, %v8569_v45  ;;  %v6931_v41 = vadd.f32 %v4412_v21, %v8556_v3 }
 0x280   : > { %6077 = vst [vmem:[%s8595_s25 + $0x78] sm:$0xff] %v6017_v23   ;;  %v4918_v31 = vadd.f32 %v8574_v40, %v4871_v62  ;;  %v4872_v52 = vmul.f32 %v6930_v34, %v8569_v45 }
 0x281   : > { %6076 = vst [vmem:[%s8595_s25 + $0x70] sm:$0xff] %v6012_v2   ;;  %v4916_v14 = vadd.f32 %v8574_v40, %v4869_v33  ;;  %v4870_v27 = vmul.f32 %v6931_v41, %v8569_v45 }
 0x282   : > { %v4919_v22 = vadd.f32 %v8574_v40, %v4872_v52  ;;  %v4958_v5 = vmax.f32 %v4918_v31, 0.0 }
 0x283   : > { %v4917_v51 = vadd.f32 %v8574_v40, %v4870_v27  ;;  %v6854_v59 = vpop.f32.mrb[36].mxu0  ;;  %v4956_v61 = vmax.f32 %v4916_v14, 0.0 }
 0x284   : > { %v4959_v0 = vmax.f32 %v4919_v22, 0.0  ;;  %v6932_v3 = vadd.f32 %v6854_v59, %v8558_v8  ;;  %v4425_v53 = vpop.f32.mrb[37].mxu0 }
 0x285   : > { %v4957_v20 = vmax.f32 %v4917_v51, 0.0  ;;  %v6933_v37 = vadd.f32 %v4425_v53, %v8560_v16  ;;  %v6855_v9 = vpop.f32.mrb[38].mxu0 }
 0x286   : > { %v6027_v15 = vpack.c.bf16 %v4959_v0, %v4958_v5  ;;  %v4875_v43 = vmul.f32 %v6932_v3, %v8569_v45  ;;  %v6934_v13 = vadd.f32 %v6855_v9, %v8562_v38  ;;  %v4428_v19 = vpop.f32.mrb[39].mxu0 }
 0x287   : > { %v6022_v58 = vpack.c.bf16 %v4957_v20, %v4956_v61  ;;  %v4873_v18 = vmul.f32 %v6933_v37, %v8569_v45  ;;  %v6935_v17 = vadd.f32 %v4428_v19, %v8564_v12 }
 0x288   : > { %6079 = vst [vmem:[%s8595_s25 + $0x88] sm:$0xff] %v6027_v15   ;;  %v4922_v8 = vadd.f32 %v8574_v40, %v4875_v43  ;;  %v4876_v16 = vmul.f32 %v6934_v13, %v8569_v45 }
 0x289   : > { %6078 = vst [vmem:[%s8595_s25 + $0x80] sm:$0xff] %v6022_v58   ;;  %v4920_v10 = vadd.f32 %v8574_v40, %v4873_v18  ;;  %v4874_v42 = vmul.f32 %v6935_v17, %v8569_v45 }
 0x28a   : > { %v4923_v38 = vadd.f32 %v8574_v40, %v4876_v16  ;;  %v4962_v32 = vmax.f32 %v4922_v8, 0.0 }
 0x28b   : > { %v4921_v50 = vadd.f32 %v8574_v40, %v4874_v42  ;;  %v4960_v46 = vmax.f32 %v4920_v10, 0.0 }
 0x28c   : > { %v4963_v56 = vmax.f32 %v4923_v38, 0.0 }
 0x28d   : > { %v4961_v12 = vmax.f32 %v4921_v50, 0.0 }
 0x28e   : > { %v6037_v7 = vpack.c.bf16 %v4963_v56, %v4962_v32 }
 0x28f   : > { %v6032_v28 = vpack.c.bf16 %v4961_v12, %v4960_v46 }
 0x290   : > { %6081 = vst [vmem:[%s8595_s25 + $0x98] sm:$0xff] %v6037_v7  }
 0x291   : > { %6080 = vst [vmem:[%s8595_s25 + $0x90] sm:$0xff] %v6032_v28  }
 0x320   : > { %v5269_v1 = vpop.f32.mrb[44].mxu1 }
 0x321   : > { %5275 = vst [vmem:[%s408_s28] sm:$0x1] %v5269_v1  ;;  %v6894_v29 = vpop.f32.mrb[45].mxu1 }
 0x322   : > { %v5272_v45 = vpop.f32.mrb[46].mxu1 }
 0x323   : > { %v6895_v44 = vpop.f32.mrb[47].mxu1 }
 0x324 PF: > { %s20_s11 = sadd.s32 1, %s7483_s11   ;;  %s8747_s30 = smov %s7479_s10 }
 0x325   : > { %p17_p5 = scmp.ge.s32.totalorder %s20_s11, 4   ;;  %s8748_s10 = smov %s8750_s12 }
 0x327   :  { %19 = sbr.rel (!%p17_p5) target bundleno = 2 (0x2), region = 116 }

// kernel: aspp_forward.4
= control target key start
LH: loop header
LB: loop body
LE: loop exit
PB: predicated region body
PF: predicated region fallthrough
CT: control target
= control target key end

     0   :  { %s7740_s15 = smov 0   ;;  %s7742_s16 = smov 0   ;;  %s9224_s0 = inlined_call_operand.vmem [shape: bf16[2,584,128], index: 0, kind: input, shape index: {}]   ;;  %s9225_s1 = inlined_call_operand.vmem [shape: bf16[9,128,128], index: 1, kind: input, shape index: {}]   ;;  %s9226_s2 = inlined_call_operand.vmem [shape: f32[1,128], index: 2, kind: input, shape index: {}]   ;;  %s9227_s3 = inlined_call_operand.vmem [shape: f32[1,128], index: 3, kind: input, shape index: {}]   ;;  %s9228_s4 = inlined_call_operand.vmem [shape: bf16[2,384,128], index: 4, kind: output, shape index: {}]  }
   0x1   :  { %s7744_s17 = smov 0  }
   0x2 LB: > { %s26_s18 = sadd.s32 1, %s7709_s16  ;;  %p5437_p0 = scmp.ge.s32.totalorder %s7713_s17, 1  ;;  %s7713_s17 = sphi %s7744_s17, %s14_s17   ;;  %s7709_s16 = sphi %s7742_s16, %s9363_s16   ;;  %s7705_s15 = sphi %s7740_s15, %s9362_s15  }
   0x3   : > { %p28_p1 = scmp.ge.s32.totalorder %s26_s18, 2  ;;  %p190_p2 = scmp.lt.s32.totalorder %s7713_s17, 3 }
   0x5   : > { %s9365_s18 = smov (%p28_p1, %s26_s18), 0  ;;  %p191_p3 = pnand %p5437_p0, %p190_p2 }
   0x7   : > { %194 = sbr.rel (%p191_p3) target bundleno = 698 (0x2ba), region = 36 }
   0xe   : > { %v7392_v0 = vld [vmem:[%s9225_s1] sm:$0xff]   ;;  %v7394_v2 = vld [vmem:[%s9225_s1 + $0x8] sm:$0xff]   ;;  %p224_p4 = scmp.lt.s32.totalorder %s7705_s15, 1  ;;  %v7396_v4 = vld [vmem:[%s9225_s1 + $0x10] sm:$0xff]   ;;  %vm1062_vm0 = vcmask 1045504  }
   0xf   : > { %v7393_v1 = vld [vmem:[%s9225_s1 + $0x100] sm:$0xff]   ;;  %6390 = vmatprep.subr.bf16.mxu1 %v7392_v0  ;;  %v7395_v3 = vld [vmem:[%s9225_s1 + $0x108] sm:$0xff]   ;;  %v7397_v5 = vld [vmem:[%s9225_s1 + $0x110] sm:$0xff]  }
  0x10   : > { %6646 = vmatprep.subr.bf16.mxu0 %v7393_v1  ;;  %6391 = vmatpush3.bf16.msra.mxu1 %v7392_v0  ;;  %s9367_s15 = smov (!%p224_p4, %s7705_s15), 1  ;;  %v7398_v6 = vld [vmem:[%s9225_s1 + $0x18] sm:$0xff]   ;;  %v7400_v8 = vld [vmem:[%s9225_s1 + $0x20] sm:$0xff]   ;;  %v7402_v10 = vld [vmem:[%s9225_s1 + $0x28] sm:$0xff]  }
  0x11   : > { %6647 = vmatpush3.bf16.msra.mxu0 %v7393_v1  ;;  %6392 = vmatprep.subr.bf16.mxu1 %v7394_v2  ;;  %v7399_v7 = vld [vmem:[%s9225_s1 + $0x118] sm:$0xff]   ;;  %s7366_s9 = smul.u32 292, %s9367_s15  ;;  %v7401_v9 = vld [vmem:[%s9225_s1 + $0x120] sm:$0xff]   ;;  %v7403_v11 = vld [vmem:[%s9225_s1 + $0x128] sm:$0xff]  }
  0x12   : > { %6648 = vmatprep.subr.bf16.mxu0 %v7395_v3  ;;  %v7404_v20 = vld [vmem:[%s9225_s1 + $0x30] sm:$0xff]   ;;  %v7406_v25 = vld [vmem:[%s9225_s1 + $0x38] sm:$0xff]   ;;  %v7413_v34 = vld [vmem:[%s9225_s1 + $0x40] sm:$0xff]   ;;  %s7367_s12 = smul.u32 192, %s9367_s15 }
  0x13   : > { %s7797_s22 = scalar_lea.vmem %s9224_s0, %s7366_s9  ;;  %v7405_v23 = vld [vmem:[%s9225_s1 + $0x130] sm:$0xff]   ;;  %v7407_v30 = vld [vmem:[%s9225_s1 + $0x138] sm:$0xff]   ;;  %v7415_v36 = vld [vmem:[%s9225_s1 + $0x140] sm:$0xff]  }
  0x14   : > { %6393 = vmatpush3.bf16.msra.mxu1 %v7394_v2  ;;  %v7408_v12 = vld [vmem:[%s7797_s22] sm:$0xff]   ;;  %v2376_v13 = vld [vmem:[%s7797_s22 + $0x30] sm:$0xc]  ;;  %v7805_v14 = vld [vmem:[%s7797_s22 + $0x34] sm:$0xf]  ;;  %s9085_s19 = scalar_lea.vmem %s9228_s4, %s7367_s12 }
  0x15   : > { %6649 = vmatpush3.bf16.msra.mxu0 %v7395_v3  ;;  %6394 = vmatprep.subr.bf16.mxu1 %v7396_v4  ;;  %v7808_v15 = vld [vmem:[%s7797_s22 + $0x38] sm:$0xf]  ;;  %v7811_v16 = vld [vmem:[%s7797_s22 + $0x3c] sm:$0xf]  ;;  %v5633_v17 = vcombine.low %v2376_v13, %v7805_v14  ;;  %v7815_v18 = vld [vmem:[%s7797_s22 + $0x40] sm:$0xf] }
  0x16   : > { %6650 = vmatprep.subr.bf16.mxu0 %v7397_v5  ;;  %6406 = vmatprep.mubr.bf16.mxu1 %v7408_v12  ;;  %v5634_v19 = vcombine.low %v7808_v15, %v7811_v16  ;;  %v7823_v22 = vld [vmem:[%s7797_s22 + $0x44] sm:$0xf]  ;;  %v7835_v28 = vld [vmem:[%s7797_s22 + $0x48] sm:$0xf]  ;;  %v7838_v29 = vld [vmem:[%s7797_s22 + $0x4c] sm:$0xf] }
  0x17   : > { %v2565_v21 = vrot.slane %v5633_v17, 2  ;;  %v5635_v27 = vcombine.low %v7815_v18, %v7823_v22  ;;  %v5636_v31 = vcombine.low %v7835_v28, %v7838_v29  ;;  %v7846_v32 = vld [vmem:[%s7797_s22 + $0x50] sm:$0xf]  ;;  %v7849_v33 = vld [vmem:[%s7797_s22 + $0x54] sm:$0xf]  ;;  %v7412_v39 = vld [vmem:[%s7797_s22 + $0x8] sm:$0xff]  }
  0x18   : > { %6395 = vmatpush3.bf16.msra.mxu1 %v7396_v4  ;;  %v2566_v24 = vrot.slane %v5634_v19, 2  ;;  %v7858_v37 = vld [vmem:[%s7797_s22 + $0x58] sm:$0xf]  ;;  %v7861_v38 = vld [vmem:[%s7797_s22 + $0x5c] sm:$0xf]  ;;  %v5637_v41 = vcombine.low %v7846_v32, %v7849_v33  ;;  %v7417_v43 = vld [vmem:[%s7797_s22 + $0x10] sm:$0xff]  }
  0x19   : > { %6651 = vmatpush3.bf16.msra.mxu0 %v7397_v5  ;;  %6396 = vmatprep.subr.bf16.mxu1 %v7398_v6  ;;  %v2568_v35 = vrot.slane %v5635_v27, 2  ;;  %v2570_v40 = vrot.slane %v5636_v31, 2  ;;  %v5638_v44 = vcombine.low %v7858_v37, %v7861_v38  ;;  %v7416_v45 = vld [vmem:[%s9225_s1 + $0x148] sm:$0xff]   ;;  %v7422_v49 = vld [vmem:[%s9225_s1 + $0x150] sm:$0xff]   ;;  %v7419_v50 = vld [vmem:[%s7797_s22 + $0x18] sm:$0xff]  }
  0x1a   : > { %6652 = vmatprep.subr.bf16.mxu0 %v7399_v7  ;;  %v2567_v26 = vsel %vm1062_vm0, %v2565_v21, %v2566_v24  ;;  %v2572_v47 = vrot.slane %v5637_v41, 2  ;;  %v7421_v48 = vld [vmem:[%s9225_s1 + $0x48] sm:$0xff]   ;;  %v7882_v52 = vld [vmem:[%s7797_s22 + $0x60] sm:$0xf]  ;;  %v7885_v53 = vld [vmem:[%s7797_s22 + $0x64] sm:$0xf] }
  0x1b   : > { %6662 = vmatprep.mubr.bf16.mxu0 %v2567_v26  ;;  %v2569_v42 = vsel %vm1062_vm0, %v2566_v24, %v2568_v35  ;;  %v2571_v46 = vsel %vm1062_vm0, %v2568_v35, %v2570_v40  ;;  %v2574_v51 = vrot.slane %v5638_v44, 2  ;;  %v7431_v54 = vld [vmem:[%s9225_s1 + $0x50] sm:$0xff]   ;;  %v7891_v55 = vld [vmem:[%s7797_s22 + $0x68] sm:$0xf]  ;;  %v7894_v56 = vld [vmem:[%s7797_s22 + $0x6c] sm:$0xf]  ;;  %v5639_v58 = vcombine.low %v7882_v52, %v7885_v53 }
  0x1c   : > { %6397 = vmatpush3.bf16.msra.mxu1 %v7398_v6  ;;  %v7423_v57 = vld [vmem:[%s7797_s22 + $0x20] sm:$0xff]   ;;  %v2573_v59 = vsel %vm1062_vm0, %v2570_v40, %v2572_v47  ;;  %v7427_v61 = vld [vmem:[%s9225_s1 + $0x158] sm:$0xff]   ;;  %v5640_v62 = vcombine.low %v7891_v55, %v7894_v56  ;;  %v7907_v63 = vld [vmem:[%s7797_s22 + $0x70] sm:$0xf] }
  0x1d   : > { %6653 = vmatpush3.bf16.msra.mxu0 %v7399_v7  ;;  %6398 = vmatprep.subr.bf16.mxu1 %v7400_v8  ;;  %v2575_v60 = vsel %vm1062_vm0, %v2572_v47, %v2574_v51  ;;  %v2576_v0 = vrot.slane %v5639_v58, 2  ;;  %v7439_v1 = vld [vmem:[%s9225_s1 + $0x58] sm:$0xff]   ;;  %v7913_v2 = vld [vmem:[%s7797_s22 + $0x74] sm:$0xf]  ;;  %v7433_v4 = vld [vmem:[%s9225_s1 + $0x160] sm:$0xff]  }
  0x1e   : > { %6654 = vmatprep.subr.bf16.mxu0 %v7401_v9  ;;  %v2578_v3 = vrot.slane %v5640_v62, 2  ;;  %v7919_v5 = vld [vmem:[%s7797_s22 + $0x78] sm:$0xf]  ;;  %v7922_v6 = vld [vmem:[%s7797_s22 + $0x7c] sm:$0xf]  ;;  %v7425_v7 = vld [vmem:[%s7797_s22 + $0x28] sm:$0xff]  }
  0x1f   : > { %v7434_v13 = vld [vmem:[%s9225_s1 + $0x168] sm:$0xff]   ;;  %v7936_v19 = vld [vmem:[%s7797_s22 + $0x80] sm:$0xf]  ;;  %v7445_v40 = vld [vmem:[%s9225_s1 + $0x178] sm:$0xff]  }
  0x20   : > { %6399 = vmatpush3.bf16.msra.mxu1 %v7400_v8  ;;  %v7428_v8 = vld [vmem:[%s7797_s22 + $0x30] sm:$0xff]   ;;  %v2579_v12 = vsel %vm1062_vm0, %v2576_v0, %v2578_v3  ;;  %v7449_v21 = vld [vmem:[%s9225_s1 + $0x60] sm:$0xff]   ;;  %v7950_v27 = vld [vmem:[%s7797_s22 + $0x88] sm:$0xf] }
  0x21   : > { %6655 = vmatpush3.bf16.msra.mxu0 %v7401_v9  ;;  %6400 = vmatprep.subr.bf16.mxu1 %v7402_v10  ;;  %v5641_v9 = vcombine.low %v7907_v63, %v7913_v2  ;;  %v7435_v26 = vld [vmem:[%s7797_s22 + $0x40] sm:$0xff]   ;;  %v7455_v31 = vld [vmem:[%s9225_s1 + $0x68] sm:$0xff]   ;;  %v7968_v41 = vld [vmem:[%s7797_s22 + $0x90] sm:$0xf] }
  0x22   : > { %6656 = vmatprep.subr.bf16.mxu0 %v7403_v11  ;;  %v7450_v44 = vld [vmem:[%s9225_s1 + $0x180] sm:$0xff]   ;;  %v7437_v47 = vld [vmem:[%s7797_s22 + $0x48] sm:$0xff]   ;;  %v7443_v58 = vld [vmem:[%s7797_s22 + $0x58] sm:$0xff]  }
  0x23   : > { %v2580_v17 = vrot.slane %v5641_v9, 2  ;;  %v8019_v9 = vld [vmem:[%s7797_s22 + $0xa0] sm:$0xf] }
  0x24   : > { %6401 = vmatpush3.bf16.msra.mxu1 %v7402_v10  ;;  %v2577_v10 = vsel %vm1062_vm0, %v2574_v51, %v2576_v0  ;;  %v8003_v0 = vld [vmem:[%s9225_s1 + $0x80] sm:$0xff]  }
  0x25   : > { %6657 = vmatpush3.bf16.msra.mxu0 %v7403_v11  ;;  %6402 = vmatprep.subr.bf16.mxu1 %v7404_v20  ;;  %v5642_v11 = vcombine.low %v7919_v5, %v7922_v6 }
  0x26   : > { %6658 = vmatprep.subr.bf16.mxu0 %v7405_v23 }
  0x27   : > { %v2582_v24 = vrot.slane %v5642_v11, 2  ;;  %v8030_v11 = vld [vmem:[%s7797_s22 + $0xac] sm:$0xf] }
  0x28   : > { %6403 = vmatpush3.bf16.msra.mxu1 %v7404_v20  ;;  %v7939_v20 = vld [vmem:[%s7797_s22 + $0x84] sm:$0xf]  ;;  %9263 = vst [vmem:[#allocation7_spill] sm:$0xff] %v8030_v11 }
  0x29   : > { %6659 = vmatpush3.bf16.msra.mxu0 %v7405_v23  ;;  %6404 = vmatprep.subr.bf16.mxu1 %v7406_v25  ;;  %v7430_v23 = vld [vmem:[%s7797_s22 + $0x38] sm:$0xff]   ;;  %v5643_v35 = vcombine.low %v7936_v19, %v7939_v20 }
  0x2a   : > { %6660 = vmatprep.subr.bf16.mxu0 %v7407_v30 }
  0x2c   : > { %6405 = vmatpush3.bf16.msra.mxu1 %v7406_v25  ;;  %v7440_v25 = vld [vmem:[%s9225_s1 + $0x170] sm:$0xff]  }
  0x2d   : > { %6661 = vmatpush3.bf16.msra.mxu0 %v7407_v30  ;;  %6454 = vmatprep.subr.bf16.mxu1 %v7413_v34  ;;  %v7953_v30 = vld [vmem:[%s7797_s22 + $0x8c] sm:$0xf] }
  0x2e   : > { %6710 = vmatprep.subr.bf16.mxu0 %v7415_v36 }
  0x2f   : > { %6407 = vmatmul.mubr.bf16.vlgmr.msra.gmra.mrb[0].mxu1 %v7412_v39  ;;  %v5644_v39 = vcombine.low %v7950_v27, %v7953_v30 }
  0x30   : > { %6663 = vmatmul.mubr.bf16.vlgmr.msra.gmra.mrb[0].mxu0 %v2569_v42  ;;  %6455 = vmatpush3.bf16.msra.mxu1 %v7413_v34  ;;  %v2581_v34 = vsel %vm1062_vm0, %v2578_v3, %v2580_v17  ;;  %v7971_v42 = vld [vmem:[%s7797_s22 + $0x94] sm:$0xf]  ;;  %v5682_v3 = vcombine.low %v7805_v14, %v7808_v15  ;;  %v8027_v15 = vld [vmem:[%s7797_s22 + $0xa8] sm:$0xf]  ;;  %v8224_v14 = vld [vmem:[%s7797_s22 + $0x44] sm:$0xf] }
  0x31   : > { %6711 = vmatpush3.bf16.msra.mxu0 %v7415_v36  ;;  %6410 = vmatprep.mubr.bf16.mxu1 %v7417_v43  ;;  %v2583_v36 = vsel %vm1062_vm0, %v2580_v17, %v2582_v24  ;;  %v2584_v43 = vrot.slane %v5643_v35, 2  ;;  %9262 = vst [vmem:[#allocation6_spill] sm:$0xff] %v8027_v15  ;;  %v5683_v17 = vcombine.low %v7811_v16, %v7815_v18  ;;  %v8055_v16 = vld [vmem:[%s7797_s22 + $0xbc] sm:$0xf]  ;;  %v8058_v18 = vld [vmem:[%s7797_s22 + $0xc0] sm:$0xf] }
  0x32   : > { %6712 = vmatprep.subr.bf16.mxu0 %v7416_v45  ;;  %6666 = vmatprep.mubr.bf16.mxu0 %v2571_v46  ;;  %v7464_v46 = vld [vmem:[%s9225_s1 + $0x70] sm:$0xff]   ;;  %9267 = vst [vmem:[#allocation11_spill] sm:$0xff] %v8055_v16  ;;  %9268 = vst [vmem:[#allocation12_spill] sm:$0xff] %v8058_v18 }
  0x33   : > { %6456 = vmatprep.subr.bf16.mxu1 %v7421_v48  ;;  %v8200_v35 = vld [vmem:[%s7797_s22 + $0x34] sm:$0xf] }
  0x34   : > { %6457 = vmatpush3.bf16.msra.mxu1 %v7421_v48  ;;  %v7441_v48 = vld [vmem:[%s7797_s22 + $0x50] sm:$0xff]  }
  0x35   : > { %6713 = vmatpush3.bf16.msra.mxu0 %v7416_v45  ;;  %6458 = vmatprep.subr.bf16.mxu1 %v7431_v54  ;;  %v2586_v45 = vrot.slane %v5644_v39, 2  ;;  %v8071_v39 = vld [vmem:[%s7797_s22 + $0xc8] sm:$0xf] }
  0x36   : > { %6714 = vmatprep.subr.bf16.mxu0 %v7422_v49  ;;  %9270 = vst [vmem:[#allocation14_spill] sm:$0xff] %v8071_v39 }
  0x37   : > { %6411 = vmatmul.mubr.bf16.gmra.mrb[4].mxu1 %v7419_v50  ;;  %v5645_v50 = vcombine.low %v7968_v41, %v7971_v42  ;;  %v2587_v51 = vsel %vm1062_vm0, %v2584_v43, %v2586_v45 }
  0x38   : > { %6667 = vmatmul.mubr.bf16.gmra.mrb[4].mxu0 %v2573_v59  ;;  %6414 = vmatprep.mubr.bf16.mxu1 %v7423_v57  ;;  %v7446_v59 = vld [vmem:[%s7797_s22 + $0x60] sm:$0xff]  }
  0x39   : > { %6715 = vmatpush3.bf16.msra.mxu0 %v7422_v49  ;;  %6670 = vmatprep.mubr.bf16.mxu0 %v2575_v60  ;;  %v2585_v49 = vsel %vm1062_vm0, %v2582_v24, %v2584_v43  ;;  %v7988_v57 = vrot.slane %v5645_v50, 2  ;;  %v7993_v60 = vld [vmem:[%s7797_s22 + $0xc] sm:$0xf]  ;;  %v8042_v24 = vld [vmem:[%s7797_s22 + $0xb4] sm:$0xf]  ;;  %v7453_v43 = vld [vmem:[%s7797_s22 + $0x78] sm:$0xff]  }
  0x3a   : > { %6716 = vmatprep.subr.bf16.mxu0 %v7427_v61  ;;  %6459 = vmatpush3.bf16.msra.mxu1 %v7431_v54  ;;  %v7471_v54 = vld [vmem:[%s9225_s1 + $0x78] sm:$0xff]   ;;  %9265 = vst [vmem:[#allocation9_spill] sm:$0xff] %v8042_v24 }
  0x3b   : > { %6460 = vmatprep.subr.bf16.mxu1 %v7439_v1  ;;  %9259 = vst [vmem:[#allocation3_spill] sm:$0xff] %v7988_v57  ;;  %v7472_v50 = vld [vmem:[%s9225_s1 + $0x198] sm:$0xff]  }
  0x3d   : > { %6717 = vmatpush3.bf16.msra.mxu0 %v7427_v61  ;;  %v7996_v61 = vld [vmem:[%s7797_s22 + $0x10] sm:$0xf] }
  0x3e   : > { %6718 = vmatprep.subr.bf16.mxu0 %v7433_v4  ;;  %6461 = vmatpush3.bf16.msra.mxu1 %v7439_v1  ;;  %v2589_v1 = vsel %vm1062_vm0, %v2586_v45, %v7988_v57 }
  0x3f   : > { %6415 = vmatmul.mubr.bf16.gmra.mrb[8].mxu1 %v7425_v7  ;;  %6462 = vmatprep.subr.bf16.mxu1 %v7449_v21  ;;  %v8013_v7 = vld [vmem:[%s7797_s22 + $0x9c] sm:$0xf] }
  0x40   : > { %6671 = vmatmul.mubr.bf16.gmra.mrb[8].mxu0 %v2577_v10  ;;  %6418 = vmatprep.mubr.bf16.mxu1 %v7428_v8  ;;  %9261 = vst [vmem:[#allocation5_spill] sm:$0xff] %v8013_v7  ;;  %v8022_v10 = vld [vmem:[%s7797_s22 + $0xa4] sm:$0xf] }
  0x41   : > { %6674 = vmatprep.mubr.bf16.mxu0 %v2579_v12  ;;  %6719 = vmatpush3.bf16.msra.mxu0 %v7433_v4  ;;  %v8010_v4 = vld [vmem:[%s7797_s22 + $0x98] sm:$0xf] }
  0x42   : > { %6720 = vmatprep.subr.bf16.mxu0 %v7434_v13  ;;  %6463 = vmatpush3.bf16.msra.mxu1 %v7449_v21  ;;  %9260 = vst [vmem:[#allocation4_spill] sm:$0xff] %v8010_v4  ;;  %v7451_v21 = vld [vmem:[%s7797_s22 + $0x70] sm:$0xff]   ;;  %v5694_v8 = vcombine.low %v7971_v42, %v8010_v4  ;;  %v8258_v42 = vld [vmem:[%s7797_s22 + $0x58] sm:$0xf] }
  0x43   : > { %6464 = vmatprep.subr.bf16.mxu1 %v7455_v31 }
  0x45   : > { %6721 = vmatpush3.bf16.msra.mxu0 %v7434_v13  ;;  %v7448_v13 = vld [vmem:[%s7797_s22 + $0x68] sm:$0xff]  }
  0x46   : > { %6722 = vmatprep.subr.bf16.mxu0 %v7440_v25  ;;  %6465 = vmatpush3.bf16.msra.mxu1 %v7455_v31  ;;  %v7456_v31 = vld [vmem:[%s9225_s1 + $0x188] sm:$0xff]  }
  0x47   : > { %6419 = vmatmul.mubr.bf16.gmra.mrb[12].mxu1 %v7430_v23  ;;  %6466 = vmatprep.subr.bf16.mxu1 %v7464_v46  ;;  %v8039_v23 = vld [vmem:[%s7797_s22 + $0xb0] sm:$0xf] }
  0x48   : > { %6675 = vmatmul.mubr.bf16.gmra.mrb[12].mxu0 %v2581_v34  ;;  %6422 = vmatprep.mubr.bf16.mxu1 %v7435_v26  ;;  %9264 = vst [vmem:[#allocation8_spill] sm:$0xff] %v8039_v23  ;;  %v8052_v34 = vld [vmem:[%s7797_s22 + $0xb8] sm:$0xf]  ;;  %v8206_v26 = vld [vmem:[%s7797_s22 + $0x3c] sm:$0xf] }
  0x49   : > { %6678 = vmatprep.mubr.bf16.mxu0 %v2583_v36  ;;  %6723 = vmatpush3.bf16.msra.mxu0 %v7440_v25  ;;  %v5684_v25 = vcombine.low %v7823_v22, %v7835_v28  ;;  %9266 = vst [vmem:[#allocation10_spill] sm:$0xff] %v8052_v34  ;;  %v8063_v28 = vld [vmem:[%s7797_s22 + $0xc4] sm:$0xf]  ;;  %v7466_v36 = vld [vmem:[%s9225_s1 + $0x190] sm:$0xff]   ;;  %v8203_v22 = vld [vmem:[%s7797_s22 + $0x38] sm:$0xf] }
  0x4a   : > { %6724 = vmatprep.subr.bf16.mxu0 %v7445_v40  ;;  %6467 = vmatpush3.bf16.msra.mxu1 %v7464_v46  ;;  %9269 = vst [vmem:[#allocation13_spill] sm:$0xff] %v8063_v28  ;;  %v7457_v46 = vld [vmem:[%s7797_s22 + $0x80] sm:$0xff]   ;;  %v5700_v57 = vcombine.low %v8063_v28, %v8071_v39 }
  0x4b   : > { %6468 = vmatprep.subr.bf16.mxu1 %v7471_v54 }
  0x4d   : > { %6725 = vmatpush3.bf16.msra.mxu0 %v7445_v40  ;;  %v8074_v40 = vld [vmem:[%s7797_s22 + $0xcc] sm:$0xf] }
  0x4e   : > { %6774 = vmatprep.subr.bf16.mxu0 %v7450_v44  ;;  %6469 = vmatpush3.bf16.msra.mxu1 %v7471_v54  ;;  %9271 = vst [vmem:[#allocation15_spill] sm:$0xff] %v8074_v40  ;;  %v8102_v54 = vld [vmem:[%s7797_s22 + $0xdc] sm:$0xf] }
  0x4f   : > { %6423 = vmatmul.mubr.bf16.gmra.mrb[16].mxu1 %v7437_v47  ;;  %6518 = vmatprep.subr.bf16.mxu1 %v8003_v0  ;;  %v8083_v47 = vld [vmem:[%s7797_s22 + $0xd0] sm:$0xf]  ;;  %9275 = vst [vmem:[#allocation19_spill] sm:$0xff] %v8102_v54 }
  0x50   : > { %6679 = vmatmul.mubr.bf16.gmra.mrb[16].mxu0 %v2585_v49  ;;  %6426 = vmatprep.mubr.bf16.mxu1 %v7441_v48  ;;  %9272 = vst [vmem:[#allocation16_spill] sm:$0xff] %v8083_v47  ;;  %v8086_v48 = vld [vmem:[%s7797_s22 + $0xd4] sm:$0xf]  ;;  %v5686_v49 = vcombine.low %v7849_v33, %v7858_v37  ;;  %v8105_v33 = vld [vmem:[%s7797_s22 + $0x8] sm:$0xf] }
  0x51   : > { %6682 = vmatprep.mubr.bf16.mxu0 %v2587_v51  ;;  %9273 = vst [vmem:[#allocation17_spill] sm:$0xff] %v8086_v48  ;;  %v8094_v51 = vld [vmem:[%s7797_s22 + $0x4] sm:$0xf]  ;;  %v8171_v37 = vld [vmem:[%s7797_s22 + $0x28] sm:$0xf]  ;;  %v5489_v45 = vcombine.low %v8105_v33, %v7993_v60 }
  0x57   : > { %6427 = vmatmul.mubr.bf16.gmra.mrb[20].mxu1 %v7443_v58 }
  0x58   : > { %6683 = vmatmul.mubr.bf16.gmra.mrb[20].mxu0 %v2589_v1  ;;  %6430 = vmatprep.mubr.bf16.mxu1 %v7446_v59  ;;  %v8112_v59 = vld [vmem:[%s7797_s22 + $0xe0] sm:$0xf]  ;;  %v8115_v1 = vld [vmem:[%s7797_s22 + $0xe4] sm:$0xf] }
  0x59   : > { %6726 = vmatprep.mubr.bf16.mxu0 %v5682_v3  ;;  %9276 = vst [vmem:[#allocation20_spill] sm:$0xff] %v8112_v59  ;;  %9277 = vst [vmem:[#allocation21_spill] sm:$0xff] %v8115_v1  ;;  %v7485_v3 = vld [vmem:[%s9225_s1 + $0x1a0] sm:$0xff]   ;;  %v5703_v28 = vcombine.low %v8102_v54, %v8112_v59  ;;  %v8420_v59 = vld [vmem:[%s7797_s22 + $0xa8] sm:$0xf] }
  0x5a   : > { %v8444_v54 = vld [vmem:[%s7797_s22 + $0xb4] sm:$0xf] }
  0x5f   : > { %6431 = vmatmul.mubr.bf16.gmra.mrb[24].mxu1 %v7448_v13  ;;  %v8121_v13 = vld [vmem:[%s7797_s22 + $0xe8] sm:$0xf] }
  0x60   : > { %6727 = vmatmul.mubr.bf16.vlgmr.msra.gmra.mrb[0].mxu0 %v5683_v17  ;;  %6434 = vmatprep.mubr.bf16.mxu1 %v7451_v21  ;;  %9278 = vst [vmem:[#allocation22_spill] sm:$0xff] %v8121_v13  ;;  %v8126_v21 = vld [vmem:[%s7797_s22 + $0xec] sm:$0xf] }
  0x61   : > { %6775 = vmatpush3.bf16.msra.mxu0 %v7450_v44  ;;  %6730 = vmatprep.mubr.bf16.mxu0 %v5684_v25  ;;  %v5685_v44 = vcombine.low %v7838_v29, %v7846_v32  ;;  %v8099_v32 = vld [vmem:[%s7797_s22 + $0xd8] sm:$0xf]  ;;  %9279 = vst [vmem:[#allocation23_spill] sm:$0xff] %v8126_v21  ;;  %v7459_v25 = vld [vmem:[%s7797_s22 + $0x88] sm:$0xff]   ;;  %v5691_v29 = vcombine.low %v7922_v6, %v7936_v19  ;;  %v8211_v19 = vld [vmem:[%s7797_s22 + $0x40] sm:$0xf] }
  0x62   : > { %6776 = vmatprep.subr.bf16.mxu0 %v7456_v31  ;;  %9274 = vst [vmem:[#allocation18_spill] sm:$0xff] %v8099_v32  ;;  %v7493_v17 = vld [vmem:[%s9225_s1 + $0x1a8] sm:$0xff]  }
  0x65   : > { %6777 = vmatpush3.bf16.msra.mxu0 %v7456_v31  ;;  %v7515_v31 = vld [vmem:[%s9225_s1 + $0x1b8] sm:$0xff]  }
  0x66   : > { %6778 = vmatprep.subr.bf16.mxu0 %v7466_v36 }
  0x67   : > { %6435 = vmatmul.mubr.bf16.gmra.mrb[28].mxu1 %v7453_v43  ;;  %v7461_v43 = vld [vmem:[%s7797_s22 + $0x90] sm:$0xff]  }
  0x68   : > { %6731 = vmatmul.mubr.bf16.gmra.mrb[4].mxu0 %v5685_v44  ;;  %6438 = vmatprep.mubr.bf16.mxu1 %v7457_v46  ;;  %v5688_v44 = vcombine.low %v7885_v53, %v7891_v55  ;;  %v8137_v46 = vld [vmem:[%s7797_s22 + $0x14] sm:$0xf]  ;;  %v5698_v55 = vcombine.low %v8042_v24, %v8052_v34  ;;  %v8291_v53 = vld [vmem:[%s7797_s22 + $0x68] sm:$0xf] }
  0x69   : > { %6734 = vmatprep.mubr.bf16.mxu0 %v5686_v49  ;;  %6779 = vmatpush3.bf16.msra.mxu0 %v7466_v36  ;;  %v5687_v36 = vcombine.low %v7861_v38, %v7882_v52  ;;  %v8140_v49 = vld [vmem:[%s7797_s22 + $0x18] sm:$0xf]  ;;  %v8146_v38 = vld [vmem:[%s7797_s22 + $0x1c] sm:$0xf]  ;;  %v8149_v52 = vld [vmem:[%s7797_s22 + $0x20] sm:$0xf]  ;;  %v5490_v6 = vcombine.low %v7996_v61, %v8137_v46 }
  0x6a   : > { %6780 = vmatprep.subr.bf16.mxu0 %v7472_v50 }
  0x6d   : > { %6781 = vmatpush3.bf16.msra.mxu0 %v7472_v50  ;;  %v7463_v50 = vld [vmem:[%s7797_s22 + $0x98] sm:$0xff]  }
  0x6e   : > { %6782 = vmatprep.subr.bf16.mxu0 %v7485_v3 }
  0x6f   : > { %6439 = vmatmul.mubr.bf16.gmra.mrb[32].mxu1 %v7459_v25  ;;  %v7507_v25 = vld [vmem:[%s9225_s1 + $0x1b0] sm:$0xff]  }
  0x70   : > { %6735 = vmatmul.mubr.bf16.gmra.mrb[8].mxu0 %v5687_v36  ;;  %6442 = vmatprep.mubr.bf16.mxu1 %v7461_v43  ;;  %v5689_v36 = vcombine.low %v7894_v56, %v7907_v63  ;;  %v7467_v43 = vld [vmem:[%s7797_s22 + $0xa0] sm:$0xff]   ;;  %v8174_v56 = vld [vmem:[%s7797_s22 + $0x2c] sm:$0xf]  ;;  %v8177_v63 = vld [vmem:[%s7797_s22 + $0x30] sm:$0xf] }
  0x71   : > { %6738 = vmatprep.mubr.bf16.mxu0 %v5688_v44  ;;  %6783 = vmatpush3.bf16.msra.mxu0 %v7485_v3  ;;  %v5690_v44 = vcombine.low %v7913_v2, %v7919_v5  ;;  %v8165_v3 = vld [vmem:[%s7797_s22 + $0x24] sm:$0xf]  ;;  %v8227_v5 = vld [vmem:[%s7797_s22 + $0x48] sm:$0xf]  ;;  %v5697_v2 = vcombine.low %v8030_v11, %v8039_v23  ;;  %v8325_v23 = vld [vmem:[%s7797_s22 + $0x74] sm:$0xf] }
  0x72   : > { %6784 = vmatprep.subr.bf16.mxu0 %v7493_v17  ;;  %v8394_v11 = vld [vmem:[%s7797_s22 + $0x98] sm:$0xf] }
  0x75   : > { %6785 = vmatpush3.bf16.msra.mxu0 %v7493_v17  ;;  %v7469_v17 = vld [vmem:[%s7797_s22 + $0xa8] sm:$0xff]  }
  0x76   : > { %6786 = vmatprep.subr.bf16.mxu0 %v7507_v25 }
  0x77   : > { %6443 = vmatmul.mubr.bf16.gmra.mrb[36].mxu1 %v7463_v50  ;;  %v873_v50 = vld [vmem:[%s7797_s22] sm:$0xc] }
  0x78   : > { %6739 = vmatmul.mubr.bf16.gmra.mrb[12].mxu0 %v5689_v36  ;;  %6446 = vmatprep.mubr.bf16.mxu1 %v7467_v43  ;;  %v8188_v36 = vld [vmem:[%s9225_s1 + $0x1c0] sm:$0xff]   ;;  %v7473_v43 = vld [vmem:[%s7797_s22 + $0xb0] sm:$0xff]  }
  0x79   : > { %6742 = vmatprep.mubr.bf16.mxu0 %v5690_v44  ;;  %6787 = vmatpush3.bf16.msra.mxu0 %v7507_v25  ;;  %v5692_v25 = vcombine.low %v7939_v20, %v7950_v27  ;;  %v5488_v44 = vcombine.low %v873_v50, %v8094_v51  ;;  %v7475_v50 = vld [vmem:[%s7797_s22 + $0xb8] sm:$0xff]   ;;  %v8267_v20 = vld [vmem:[%s7797_s22 + $0x60] sm:$0xf] }
  0x7a   : > { %6788 = vmatprep.subr.bf16.mxu0 %v7515_v31 }
  0x7b   : > { %v1063_v27 = vrot.slane %v5488_v44, 2  ;;  %v8235_v44 = vld [vmem:[%s7797_s22 + $0x50] sm:$0xf] }
  0x7d   : > { %6789 = vmatpush3.bf16.msra.mxu0 %v7515_v31  ;;  %v1064_v31 = vrot.slane %v5489_v45, 2  ;;  %v5491_v45 = vcombine.low %v8140_v49, %v8146_v38 }
  0x7e   : > { %6838 = vmatprep.subr.bf16.mxu0 %v8188_v36 }
  0x7f   : > { %6447 = vmatmul.mubr.bf16.gmra.mrb[40].mxu1 %v7469_v17  ;;  %v1065_v12 = vsel %vm1062_vm0, %v1063_v27, %v1064_v31  ;;  %v5696_v17 = vcombine.low %v8022_v10, %v8027_v15  ;;  %v7529_v15 = vld [vmem:[%s7797_s22 + $0x70] sm:$0xff]  }
  0x80   : > { %6743 = vmatmul.mubr.bf16.gmra.mrb[16].mxu0 %v5691_v29  ;;  %6450 = vmatprep.mubr.bf16.mxu1 %v7473_v43  ;;  %v5693_v29 = vcombine.low %v7953_v30, %v7968_v41  ;;  %v1066_v43 = vrot.slane %v5490_v6, 2  ;;  %v5492_v30 = vcombine.low %v8149_v52, %v8165_v3  ;;  %v1068_v6 = vrot.slane %v5491_v45, 2  ;;  %v8254_v41 = vld [vmem:[%s7797_s22 + $0x54] sm:$0xf] }
  0x81   : > { %6746 = vmatprep.mubr.bf16.mxu0 %v5692_v25  ;;  %v8232_v25 = vld [vmem:[%s7797_s22 + $0x4c] sm:$0xf] }
  0x82   : > { %v1067_v27 = vsel %vm1062_vm0, %v1064_v31, %v1066_v43  ;;  %v1069_v45 = vsel %vm1062_vm0, %v1066_v43, %v1068_v6  ;;  %v8261_v31 = vld [vmem:[%s7797_s22 + $0x5c] sm:$0xf]  ;;  %v5497_v34 = vcombine.low %v8227_v5, %v8232_v25 }
  0x83   : > { %v5499_v39 = vcombine.low %v8258_v42, %v8261_v31 }
  0x87   : > { %6451 = vmatmul.mubr.bf16.gmra.mrb[44].mxu1 %v7475_v50  ;;  %v5695_v50 = vcombine.low %v8013_v7, %v8019_v9  ;;  %v7537_v7 = vld [vmem:[%s7797_s22 + $0x88] sm:$0xff]  }
  0x88   : > { %6747 = vmatmul.mubr.bf16.gmra.mrb[20].mxu0 %v5693_v29  ;;  %6470 = vmatprep.mubr.bf16.mxu1 %v1065_v12  ;;  %v1070_v29 = vrot.slane %v5492_v30, 2  ;;  %v7492_v12 = vld [vmem:[%s9225_s1 + $0x88] sm:$0xff]   ;;  %v5494_v30 = vcombine.low %v8177_v63, %v8200_v35 }
  0x89   : > { %6750 = vmatprep.mubr.bf16.mxu0 %v5694_v8  ;;  %v5493_v8 = vcombine.low %v8171_v37, %v8174_v56 }
  0x8b   : > { %v1072_v43 = vrot.slane %v5493_v8, 2 }
  0x8d   : > { %v1073_v8 = vsel %vm1062_vm0, %v1070_v29, %v1072_v43 }
  0x8f   : > { %6471 = vmatmul.mubr.bf16.vlgmr.msra.gmra.mrb[0].mxu1 %v1067_v27  ;;  %v7504_v27 = vld [vmem:[%s9225_s1 + $0x90] sm:$0xff]  }
  0x90   : > { %6751 = vmatmul.mubr.bf16.gmra.mrb[24].mxu0 %v5695_v50  ;;  %6519 = vmatpush3.bf16.msra.mxu1 %v8003_v0  ;;  %v1071_v50 = vsel %vm1062_vm0, %v1068_v6, %v1070_v29  ;;  %v5495_v0 = vcombine.low %v8203_v22, %v8206_v26  ;;  %v8288_v6 = vld [vmem:[%s7797_s22 + $0x64] sm:$0xf]  ;;  %v8312_v29 = vld [vmem:[%s7797_s22 + $0x70] sm:$0xf] }
  0x91   : > { %6474 = vmatprep.mubr.bf16.mxu1 %v1069_v45  ;;  %6754 = vmatprep.mubr.bf16.mxu0 %v5696_v17  ;;  %v1074_v45 = vrot.slane %v5494_v30, 2  ;;  %v7514_v17 = vld [vmem:[%s9225_s1 + $0x98] sm:$0xff]   ;;  %v8297_v30 = vld [vmem:[%s7797_s22 + $0x70] sm:$0xf] }
  0x92   : > { %6520 = vmatprep.subr.bf16.mxu1 %v7492_v12  ;;  %v1076_v62 = vrot.slane %v5495_v0, 2  ;;  %v8334_v0 = vld [vmem:[%s7797_s22 + $0x7c] sm:$0xf] }
  0x94   : > { %6521 = vmatpush3.bf16.msra.mxu1 %v7492_v12  ;;  %v8294_v12 = vld [vmem:[%s7797_s22 + $0x6c] sm:$0xf]  ;;  %v1077_v58 = vsel %vm1062_vm0, %v1074_v45, %v1076_v62 }
  0x95   : > { %6522 = vmatprep.subr.bf16.mxu1 %v7504_v27 }
  0x97   : > { %6475 = vmatmul.mubr.bf16.gmra.mrb[4].mxu1 %v1071_v50  ;;  %v5496_v50 = vcombine.low %v8211_v19, %v8224_v14 }
  0x98   : > { %6755 = vmatmul.mubr.bf16.gmra.mrb[28].mxu0 %v5697_v2  ;;  %6478 = vmatprep.mubr.bf16.mxu1 %v1073_v8  ;;  %v7525_v2 = vld [vmem:[%s9225_s1 + $0xa0] sm:$0xff]   ;;  %v8309_v8 = vld [vmem:[%s7797_s22 + $0x6c] sm:$0xf] }
  0x99   : > { %6758 = vmatprep.mubr.bf16.mxu0 %v5698_v55  ;;  %6523 = vmatpush3.bf16.msra.mxu1 %v7504_v27  ;;  %v1075_v55 = vsel %vm1062_vm0, %v1072_v43, %v1074_v45  ;;  %v5699_v27 = vcombine.low %v8055_v16, %v8058_v18  ;;  %v1078_v24 = vrot.slane %v5496_v50, 2  ;;  %v8328_v43 = vld [vmem:[%s7797_s22 + $0x78] sm:$0xf]  ;;  %v7532_v18 = vld [vmem:[%s9225_s1 + $0xa8] sm:$0xff]   ;;  %v8337_v45 = vld [vmem:[%s7797_s22 + $0x80] sm:$0xf] }
  0x9a   : > { %6524 = vmatprep.subr.bf16.mxu1 %v7514_v17  ;;  %v8357_v50 = vld [vmem:[%s7797_s22 + $0x84] sm:$0xf]  ;;  %v8391_v16 = vld [vmem:[%s7797_s22 + $0x94] sm:$0xf] }
  0x9d   : > { %6525 = vmatpush3.bf16.msra.mxu1 %v7514_v17  ;;  %v1080_v17 = vrot.slane %v5497_v34, 2 }
  0x9e   : > { %6526 = vmatprep.subr.bf16.mxu1 %v7525_v2 }
  0x9f   : > { %6479 = vmatmul.mubr.bf16.gmra.mrb[8].mxu1 %v1075_v55  ;;  %v7541_v55 = vld [vmem:[%s9225_s1 + $0xb0] sm:$0xff]   ;;  %v1081_v34 = vsel %vm1062_vm0, %v1078_v24, %v1080_v17 }
  0xa0   : > { %6759 = vmatmul.mubr.bf16.gmra.mrb[32].mxu0 %v5699_v27  ;;  %6482 = vmatprep.mubr.bf16.mxu1 %v1077_v58  ;;  %v1079_v27 = vsel %vm1062_vm0, %v1076_v62, %v1078_v24  ;;  %v5701_v58 = vcombine.low %v8074_v40, %v8083_v47  ;;  %v8360_v62 = vld [vmem:[%s7797_s22 + $0x88] sm:$0xf]  ;;  %v7548_v47 = vld [vmem:[%s9225_s1 + $0xb8] sm:$0xff]   ;;  %v8370_v40 = vld [vmem:[%s7797_s22 + $0x8c] sm:$0xf] }
  0xa1   : > { %6762 = vmatprep.mubr.bf16.mxu0 %v5700_v57  ;;  %6527 = vmatpush3.bf16.msra.mxu1 %v7525_v2  ;;  %v5498_v57 = vcombine.low %v8235_v44, %v8254_v41  ;;  %v5702_v2 = vcombine.low %v8086_v48, %v8099_v32  ;;  %v5500_v32 = vcombine.low %v8267_v20, %v8288_v6 }
  0xa2   : > { %6528 = vmatprep.subr.bf16.mxu1 %v7532_v18  ;;  %v5501_v48 = vcombine.low %v8291_v53, %v8294_v12  ;;  %9280 = vst [vmem:[#allocation24_spill] sm:$0xff] %v8370_v40 }
  0xa3   : > { %v1082_v24 = vrot.slane %v5498_v57, 2  ;;  %v8382_v57 = vld [vmem:[%s9225_s1 + $0xc0] sm:$0xff]  }
  0xa5   : > { %6529 = vmatpush3.bf16.msra.mxu1 %v7532_v18  ;;  %v8373_v18 = vld [vmem:[%s7797_s22 + $0x90] sm:$0xf] }
  0xa6   : > { %6530 = vmatprep.subr.bf16.mxu1 %v7541_v55 }
  0xa7   : > { %6483 = vmatmul.mubr.bf16.gmra.mrb[12].mxu1 %v1079_v27  ;;  %v1084_v27 = vrot.slane %v5499_v39, 2  ;;  %v1088_v39 = vrot.slane %v5501_v48, 2  ;;  %v8399_v48 = vld [vmem:[%s7797_s22 + $0x9c] sm:$0xf] }
  0xa8   : > { %6763 = vmatmul.mubr.bf16.gmra.mrb[36].mxu0 %v5701_v58  ;;  %6486 = vmatprep.mubr.bf16.mxu1 %v1081_v34  ;;  %v1083_v34 = vsel %vm1062_vm0, %v1080_v17, %v1082_v24  ;;  %v5704_v58 = vcombine.low %v8115_v1, %v8121_v13  ;;  %v2959_v17 = vld [vmem:[%s7797_s22 + $0xf0] sm:$0xf]  ;;  %9281 = vst [vmem:[#allocation25_spill] sm:$0xff] %v8399_v48  ;;  %v7523_v13 = vld [vmem:[%s7797_s22 + $0x60] sm:$0xff]  }
  0xa9   : > { %6766 = vmatprep.mubr.bf16.mxu0 %v5702_v2  ;;  %6531 = vmatpush3.bf16.msra.mxu1 %v7541_v55  ;;  %v1086_v2 = vrot.slane %v5500_v32, 2  ;;  %v1085_v55 = vsel %vm1062_vm0, %v1082_v24, %v1084_v27  ;;  %v8402_v32 = vld [vmem:[%s7797_s22 + $0xa0] sm:$0xf]  ;;  %v5705_v1 = vcombine.low %v8126_v21, %v2959_v17  ;;  %v8426_v21 = vld [vmem:[%s7797_s22 + $0xb0] sm:$0xf] }
  0xaa   : > { %6532 = vmatprep.subr.bf16.mxu1 %v7548_v47 }
  0xab   : > { %v1089_v24 = vsel %vm1062_vm0, %v1086_v2, %v1088_v39 }
  0xad   : > { %6533 = vmatpush3.bf16.msra.mxu1 %v7548_v47  ;;  %v8423_v47 = vld [vmem:[%s7797_s22 + $0xac] sm:$0xf] }
  0xae   : > { %6582 = vmatprep.subr.bf16.mxu1 %v8382_v57  ;;  %9282 = vst [vmem:[#allocation26_spill] sm:$0xff] %v8423_v47 }
  0xaf   : > { %6487 = vmatmul.mubr.bf16.gmra.mrb[16].mxu1 %v1083_v34  ;;  %v1087_v34 = vsel %vm1062_vm0, %v1084_v27, %v1086_v2  ;;  %v8447_v2 = vld [vmem:[%s7797_s22 + $0xb8] sm:$0xf] }
  0xb0   : > { %6767 = vmatmul.mubr.bf16.gmra.mrb[40].mxu0 %v5703_v28  ;;  %6490 = vmatprep.mubr.bf16.mxu1 %v1085_v55  ;;  %v5502_v28 = vcombine.low %v8297_v30, %v8325_v23  ;;  %v5503_v55 = vcombine.low %v8328_v43, %v8334_v0 }
  0xb1   : > { %6770 = vmatprep.mubr.bf16.mxu0 %v5704_v58  ;;  %v8417_v58 = vld [vmem:[%s7797_s22 + $0xa4] sm:$0xf] }
  0xb2   : > { %v1090_v27 = vrot.slane %v5502_v28, 2  ;;  %v1092_v17 = vrot.slane %v5503_v55, 2  ;;  %v7533_v28 = vld [vmem:[%s9225_s1 + $0x1c8] sm:$0xff]  }
  0xb4   : > { %v1093_v55 = vsel %vm1062_vm0, %v1090_v27, %v1092_v17 }
  0xb7   : > { %6491 = vmatmul.mubr.bf16.gmra.mrb[20].mxu1 %v1087_v34  ;;  %v7526_v34 = vld [vmem:[%s7797_s22 + $0x68] sm:$0xff]  }
  0xb8   : > { %6771 = vmatmul.mubr.bf16.gmra.mrb[44].mxu0 %v5705_v1  ;;  %6494 = vmatprep.mubr.bf16.mxu1 %v1089_v24  ;;  %v1091_v1 = vsel %vm1062_vm0, %v1088_v39, %v1090_v27  ;;  %v5504_v24 = vcombine.low %v8337_v45, %v8357_v50  ;;  %v7543_v27 = vld [vmem:[%s9225_s1 + $0x1d0] sm:$0xff]  }
  0xb9   : > { %6790 = vmatprep.mubr.bf16.mxu0 %v7523_v13  ;;  %v5505_v13 = vcombine.low %v8360_v62, %v8370_v40  ;;  %v7531_v40 = vld [vmem:[%s7797_s22 + $0x78] sm:$0xff]  }
  0xba   : > { %v1094_v39 = vrot.slane %v5504_v24, 2 }
  0xbb   : > { %v1096_v4 = vrot.slane %v5505_v13, 2 }
  0xbd   : > { %v1097_v24 = vsel %vm1062_vm0, %v1094_v39, %v1096_v4 }
  0xbf   : > { %6495 = vmatmul.mubr.bf16.gmra.mrb[24].mxu1 %v1091_v1  ;;  %v1095_v1 = vsel %vm1062_vm0, %v1092_v17, %v1094_v39 }
  0xc0   : > { %6791 = vmatmul.mubr.bf16.vlgmr.msra.gmra.mrb[0].mxu0 %v7526_v34  ;;  %6498 = vmatprep.mubr.bf16.mxu1 %v1093_v55  ;;  %v5506_v34 = vcombine.low %v8373_v18, %v8391_v16  ;;  %v7535_v55 = vld [vmem:[%s7797_s22 + $0x80] sm:$0xff]  }
  0xc1   : > { %6839 = vmatpush3.bf16.msra.mxu0 %v8188_v36  ;;  %6794 = vmatprep.mubr.bf16.mxu0 %v7529_v15  ;;  %v5507_v15 = vcombine.low %v8394_v11, %v8399_v48  ;;  %v7549_v36 = vld [vmem:[%s9225_s1 + $0x1d8] sm:$0xff]   ;;  %v5508_v48 = vcombine.low %v8402_v32, %v8417_v58 }
  0xc2   : > { %6840 = vmatprep.subr.bf16.mxu0 %v7533_v28  ;;  %v1098_v17 = vrot.slane %v5506_v34, 2  ;;  %v5509_v34 = vcombine.low %v8420_v59, %v8423_v47  ;;  %v5510_v47 = vcombine.low %v8426_v21, %v8444_v54 }
  0xc3   : > { %v1100_v13 = vrot.slane %v5507_v15, 2  ;;  %v7574_v15 = vld [vmem:[%s9225_s1 + $0x1f0] sm:$0xff]  }
  0xc4   : > { %v1099_v39 = vsel %vm1062_vm0, %v1096_v4, %v1098_v17  ;;  %v1102_v4 = vrot.slane %v5508_v48, 2  ;;  %v7545_v48 = vld [vmem:[%s7797_s22 + $0xa0] sm:$0xff]  }
  0xc5   : > { %6841 = vmatpush3.bf16.msra.mxu0 %v7533_v28  ;;  %v7558_v28 = vld [vmem:[%s9225_s1 + $0x1e0] sm:$0xff]  }
  0xc6   : > { %6842 = vmatprep.subr.bf16.mxu0 %v7543_v27 }
  0xc7   : > { %6499 = vmatmul.mubr.bf16.gmra.mrb[28].mxu1 %v1095_v1  ;;  %v1101_v1 = vsel %vm1062_vm0, %v1098_v17, %v1100_v13  ;;  %v7542_v17 = vld [vmem:[%s7797_s22 + $0x98] sm:$0xff]  }
  0xc8   : > { %6795 = vmatmul.mubr.bf16.gmra.mrb[4].mxu0 %v7531_v40  ;;  %6502 = vmatprep.mubr.bf16.mxu1 %v1097_v24  ;;  %v7539_v40 = vld [vmem:[%s7797_s22 + $0x90] sm:$0xff]   ;;  %v1104_v24 = vrot.slane %v5509_v34, 2 }
  0xc9   : > { %6798 = vmatprep.mubr.bf16.mxu0 %v7535_v55  ;;  %6843 = vmatpush3.bf16.msra.mxu0 %v7543_v27  ;;  %v7564_v27 = vld [vmem:[%s9225_s1 + $0x1e8] sm:$0xff]   ;;  %v8481_v55 = vld [vmem:[%s7797_s22 + $0xbc] sm:$0xf] }
  0xca   : > { %6844 = vmatprep.subr.bf16.mxu0 %v7549_v36 }
  0xcd   : > { %6845 = vmatpush3.bf16.msra.mxu0 %v7549_v36  ;;  %v1103_v36 = vsel %vm1062_vm0, %v1100_v13, %v1102_v4  ;;  %v1106_v13 = vrot.slane %v5510_v47, 2 }
  0xce   : > { %6846 = vmatprep.subr.bf16.mxu0 %v7558_v28 }
  0xcf   : > { %6503 = vmatmul.mubr.bf16.gmra.mrb[32].mxu1 %v1099_v39  ;;  %v7580_v39 = vld [vmem:[%s9225_s1 + $0x1f8] sm:$0xff]   ;;  %v1107_v34 = vsel %vm1062_vm0, %v1104_v24, %v1106_v13 }
  0xd0   : > { %6799 = vmatmul.mubr.bf16.gmra.mrb[8].mxu0 %v7537_v7  ;;  %6506 = vmatprep.mubr.bf16.mxu1 %v1101_v1  ;;  %v1105_v7 = vsel %vm1062_vm0, %v1102_v4, %v1104_v24  ;;  %v7552_v4 = vld [vmem:[%s7797_s22 + $0xc0] ss:$0 sps:$4 sm:$0x33]  }
  0xd1   : > { %6802 = vmatprep.mubr.bf16.mxu0 %v7539_v40  ;;  %6847 = vmatpush3.bf16.msra.mxu0 %v7558_v28  ;;  %v5511_v28 = vcombine.low %v8447_v2, %v8481_v55  ;;  %v8500_v40 = vld [vmem:[%s9225_s1 + $0x200] sm:$0xff]   ;;  %v1110_v47 = vrot.slane %v7552_v4, 2  ;;  %v7570_v4 = vld [vmem:[%s7797_s22 + $0xf0] sm:$0xff]  }
  0xd2   : > { %6848 = vmatprep.subr.bf16.mxu0 %v7564_v27  ;;  %v7555_v24 = vld [vmem:[%s7797_s22 + $0xc0] sm:$0xff]  }
  0xd3   : > { %v1108_v1 = vrot.slane %v5511_v28, 2  ;;  %v7557_v28 = vld [vmem:[%s7797_s22 + $0xc8] sm:$0xff]  }
  0xd5   : > { %6849 = vmatpush3.bf16.msra.mxu0 %v7564_v27  ;;  %v7547_v27 = vld [vmem:[%s7797_s22 + $0xa8] sm:$0xff]  }
  0xd6   : > { %6850 = vmatprep.subr.bf16.mxu0 %v7574_v15 }
  0xd7   : > { %6507 = vmatmul.mubr.bf16.gmra.mrb[36].mxu1 %v1103_v36  ;;  %v1109_v36 = vsel %vm1062_vm0, %v1106_v13, %v1108_v1  ;;  %v7563_v13 = vld [vmem:[%s9225_s1 + $0xc8] sm:$0xff]  }
  0xd8   : > { %6803 = vmatmul.mubr.bf16.gmra.mrb[12].mxu0 %v7542_v17  ;;  %6510 = vmatprep.mubr.bf16.mxu1 %v1105_v7  ;;  %v7551_v17 = vld [vmem:[%s7797_s22 + $0xb0] sm:$0xff]   ;;  %v7553_v7 = vld [vmem:[%s7797_s22 + $0xb8] sm:$0xff]  }
  0xd9   : > { %6806 = vmatprep.mubr.bf16.mxu0 %v7545_v48  ;;  %6851 = vmatpush3.bf16.msra.mxu0 %v7574_v15  ;;  %v1111_v15 = vsel %vm1062_vm0, %v1108_v1, %v1110_v47  ;;  %v9283_v48 = vcombine.low %v8094_v51, %v8105_v33  ;;  %v9284_v1 = vcombine.low %v7993_v60, %v7996_v61  ;;  %v7572_v51 = vld [vmem:[%s9225_s1 + $0xd0] sm:$0xff]   ;;  %v7562_v33 = vld [vmem:[%s7797_s22 + $0xd8] sm:$0xff]   ;;  %v8570_v47 = vld [vmem:[%s7797_s22 + $0x64] sm:$0xf] }
  0xda   : > { %6852 = vmatprep.subr.bf16.mxu0 %v7580_v39  ;;  %v7579_v60 = vld [vmem:[%s9225_s1 + $0xd8] sm:$0xff]   ;;  %v9286_v61 = vcombine.low %v8146_v38, %v8149_v52  ;;  %v7597_v38 = vld [vmem:[%s9225_s1 + $0xe8] sm:$0xff]   ;;  %v9289_v52 = vcombine.low %v8200_v35, %v8203_v22  ;;  %v9290_v35 = vcombine.low %v8206_v26, %v8211_v19  ;;  %v7582_v26 = vld [vmem:[%s7797_s22 + $0x110] sm:$0xff]  }
  0xdb   : > { %v7613_v22 = vld [vmem:[%s9225_s1 + $0xf8] sm:$0xff]  }
  0xdd   : > { %6853 = vmatpush3.bf16.msra.mxu0 %v7580_v39  ;;  %v7560_v39 = vld [vmem:[%s7797_s22 + $0xd0] sm:$0xff]  }
  0xde   : > { %6902 = vmatprep.subr.bf16.mxu0 %v8500_v40 }
  0xdf   : > { %6511 = vmatmul.mubr.bf16.gmra.mrb[40].mxu1 %v1107_v34  ;;  %v9285_v34 = vcombine.low %v8137_v46, %v8140_v49  ;;  %v9287_v46 = vcombine.low %v8165_v3, %v8171_v37  ;;  %v7590_v49 = vld [vmem:[%s9225_s1 + $0xe0] sm:$0xff]   ;;  %v9288_v37 = vcombine.low %v8174_v56, %v8177_v63  ;;  %v7606_v3 = vld [vmem:[%s9225_s1 + $0xf0] sm:$0xff]   ;;  %v9291_v63 = vcombine.low %v8224_v14, %v8227_v5 }
  0xe0   : > { %6807 = vmatmul.mubr.bf16.gmra.mrb[16].mxu0 %v7547_v27  ;;  %6514 = vmatprep.mubr.bf16.mxu1 %v1109_v36  ;;  %v7566_v27 = vld [vmem:[%s7797_s22 + $0xe0] sm:$0xff]   ;;  %v7573_v36 = vld [vmem:[%s7797_s22 + $0xf8] sm:$0xff]  }
  0xe1   : > { %6810 = vmatprep.mubr.bf16.mxu0 %v7551_v17  ;;  %v7576_v56 = vld [vmem:[%s7797_s22 + $0x100] sm:$0xff]  }
  0xe2   : > { %v3878_v17 = vld [vmem:[%s7797_s22 + $0x60] sm:$0xc] }
  0xe3   : > { %v5778_v19 = vcombine.low %v3878_v17, %v8570_v47  ;;  %v8583_v5 = vld [vmem:[%s9225_s1 + $0x100] sm:$0xff]  }
  0xe7   : > { %6515 = vmatmul.mubr.bf16.gmra.mrb[44].mxu1 %v1111_v15  ;;  %v8573_v15 = vld [vmem:[%s7797_s22 + $0x68] sm:$0xf] }
  0xe8   : > { %6811 = vmatmul.mubr.bf16.gmra.mrb[20].mxu0 %v7553_v7  ;;  %6534 = vmatprep.mubr.bf16.mxu1 %v9283_v48  ;;  %v7578_v7 = vld [vmem:[%s7797_s22 + $0x108] sm:$0xff]   ;;  %v5779_v14 = vcombine.low %v8573_v15, %v8309_v8  ;;  %v9293_v48 = vcombine.low %v8254_v41, %v8258_v42 }
  0xe9   : > { %6814 = vmatprep.mubr.bf16.mxu0 %v7555_v24  ;;  %v9292_v24 = vcombine.low %v8232_v25, %v8235_v44  ;;  %v7584_v25 = vld [vmem:[%s7797_s22 + $0x118] sm:$0xff]  }
  0xef   : > { %6535 = vmatmul.mubr.bf16.vlgmr.msra.gmra.mrb[0].mxu1 %v9284_v1  ;;  %v8596_v1 = vld [vmem:[%s7797_s22 + $0x78] sm:$0xf] }
  0xf0   : > { %6815 = vmatmul.mubr.bf16.gmra.mrb[24].mxu0 %v7557_v28  ;;  %6583 = vmatpush3.bf16.msra.mxu1 %v8382_v57  ;;  %v7568_v57 = vld [vmem:[%s7797_s22 + $0xe8] sm:$0xff]   ;;  %v4067_v28 = vrot.slane %v5778_v19, 2  ;;  %v9302_v19 = vld [vmem:[#allocation5_spill] sm:$0xff] }
  0xf1   : > { %6538 = vmatprep.mubr.bf16.mxu1 %v9285_v34  ;;  %6818 = vmatprep.mubr.bf16.mxu0 %v7560_v39  ;;  %v4068_v39 = vrot.slane %v5779_v14, 2  ;;  %v8599_v34 = vld [vmem:[%s7797_s22 + $0x7c] sm:$0xf] }
  0xf2   : > { %6584 = vmatprep.subr.bf16.mxu1 %v7563_v13  ;;  %v5781_v42 = vcombine.low %v8596_v1, %v8599_v34 }
  0xf3   : > { %v4069_v41 = vsel %vm1062_vm0, %v4067_v28, %v4068_v39 }
  0xf4   : > { %6585 = vmatpush3.bf16.msra.mxu1 %v7563_v13  ;;  %v8593_v13 = vld [vmem:[%s7797_s22 + $0x74] sm:$0xf] }
  0xf5   : > { %6586 = vmatprep.subr.bf16.mxu1 %v7572_v51  ;;  %v5780_v44 = vcombine.low %v8312_v29, %v8593_v13 }
  0xf7   : > { %6539 = vmatmul.mubr.bf16.gmra.mrb[4].mxu1 %v9286_v61  ;;  %v8614_v61 = vld [vmem:[%s7797_s22 + $0x80] sm:$0xf] }
  0xf8   : > { %6819 = vmatmul.mubr.bf16.gmra.mrb[28].mxu0 %v7562_v33  ;;  %6542 = vmatprep.mubr.bf16.mxu1 %v9287_v46  ;;  %v9295_v33 = vcombine.low %v8288_v6, %v8291_v53  ;;  %v8617_v46 = vld [vmem:[%s7797_s22 + $0x84] sm:$0xf]  ;;  %v7598_v6 = vld [vmem:[%s9225_s1 + $0x208] sm:$0xff]  }
  0xf9   : > { %6822 = vmatprep.mubr.bf16.mxu0 %v7566_v27  ;;  %6587 = vmatpush3.bf16.msra.mxu1 %v7572_v51  ;;  %v9294_v51 = vcombine.low %v8261_v31, %v8267_v20  ;;  %v4070_v27 = vrot.slane %v5780_v44, 2  ;;  %v5782_v53 = vcombine.low %v8614_v61, %v8617_v46 }
  0xfa   : > { %6588 = vmatprep.subr.bf16.mxu1 %v7579_v60 }
  0xfb   : > { %v4071_v20 = vsel %vm1062_vm0, %v4068_v39, %v4070_v27  ;;  %v8680_v39 = vld [vmem:[%s7797_s22 + $0xa0] sm:$0xf] }
  0xfd   : > { %6589 = vmatpush3.bf16.msra.mxu1 %v7579_v60  ;;  %v4072_v60 = vrot.slane %v5781_v42, 2 }
  0xfe   : > { %6590 = vmatprep.subr.bf16.mxu1 %v7590_v49 }
  0xff   : > { %6543 = vmatmul.mubr.bf16.gmra.mrb[8].mxu1 %v9288_v37  ;;  %v4073_v31 = vsel %vm1062_vm0, %v4070_v27, %v4072_v60  ;;  %v9297_v37 = vcombine.low %v8325_v23, %v8328_v43  ;;  %v9304_v27 = vld [vmem:[#allocation24_spill] sm:$0xff] }
 0x100   : > { %6823 = vmatmul.mubr.bf16.gmra.mrb[32].mxu0 %v7568_v57  ;;  %6546 = vmatprep.mubr.bf16.mxu1 %v9289_v52  ;;  %v8623_v57 = vld [vmem:[%s7797_s22 + $0x8c] sm:$0xf]  ;;  %v4074_v52 = vrot.slane %v5782_v53, 2  ;;  %v9307_v53 = vld [vmem:[#allocation6_spill] sm:$0xff] }
 0x101   : > { %6826 = vmatprep.mubr.bf16.mxu0 %v7570_v4  ;;  %6591 = vmatpush3.bf16.msra.mxu1 %v7590_v49  ;;  %v8620_v49 = vld [vmem:[%s7797_s22 + $0x88] sm:$0xf] }
 0x102   : > { %6592 = vmatprep.subr.bf16.mxu1 %v7597_v38  ;;  %v5783_v4 = vcombine.low %v8620_v49, %v8623_v57  ;;  %v4075_v23 = vsel %vm1062_vm0, %v4072_v60, %v4074_v52  ;;  %v9305_v60 = vcombine.low %v9304_v27, %v8373_v18  ;;  %v8720_v18 = vld [vmem:[%s7797_s22 + $0xb0] sm:$0xf] }
 0x105   : > { %6593 = vmatpush3.bf16.msra.mxu1 %v7597_v38  ;;  %v9296_v38 = vcombine.low %v8294_v12, %v8297_v30  ;;  %v7608_v12 = vld [vmem:[%s9225_s1 + $0x210] sm:$0xff]   ;;  %v8651_v30 = vld [vmem:[%s7797_s22 + $0x98] sm:$0xf] }
 0x106   : > { %6594 = vmatprep.subr.bf16.mxu1 %v7606_v3 }
 0x107   : > { %6547 = vmatmul.mubr.bf16.gmra.mrb[12].mxu1 %v9290_v35 }
 0x108   : > { %6827 = vmatmul.mubr.bf16.gmra.mrb[36].mxu0 %v7573_v36  ;;  %6550 = vmatprep.mubr.bf16.mxu1 %v9291_v63  ;;  %v8642_v36 = vld [vmem:[%s7797_s22 + $0x90] sm:$0xf] }
 0x109   : > { %6830 = vmatprep.mubr.bf16.mxu0 %v7576_v56  ;;  %6595 = vmatpush3.bf16.msra.mxu1 %v7606_v3  ;;  %v4076_v3 = vrot.slane %v5783_v4, 2  ;;  %v8645_v56 = vld [vmem:[%s7797_s22 + $0x94] sm:$0xf] }
 0x10a   : > { %6596 = vmatprep.subr.bf16.mxu1 %v7613_v22  ;;  %v5784_v43 = vcombine.low %v8642_v36, %v8645_v56 }
 0x10b   : > { %v4077_v63 = vsel %vm1062_vm0, %v4074_v52, %v4076_v3  ;;  %v9311_v52 = vld [vmem:[#allocation9_spill] sm:$0xff] }
 0x10d   : > { %6597 = vmatpush3.bf16.msra.mxu1 %v7613_v22  ;;  %v8654_v22 = vld [vmem:[%s7797_s22 + $0x9c] sm:$0xf] }
 0x10e   : > { %6966 = vmatprep.subr.bf16.mxu1 %v8583_v5  ;;  %v5785_v17 = vcombine.low %v8651_v30, %v8654_v22 }
 0x10f   : > { %6551 = vmatmul.mubr.bf16.gmra.mrb[16].mxu1 %v9292_v24 }
 0x110   : > { %6831 = vmatmul.mubr.bf16.gmra.mrb[40].mxu0 %v7578_v7  ;;  %6554 = vmatprep.mubr.bf16.mxu1 %v9293_v48  ;;  %v7614_v7 = vld [vmem:[%s9225_s1 + $0x218] sm:$0xff]   ;;  %v4078_v48 = vrot.slane %v5784_v43, 2  ;;  %v4080_v28 = vrot.slane %v5785_v17, 2  ;;  %v8723_v43 = vld [vmem:[%s7797_s22 + $0xb4] sm:$0xf] }
 0x111   : > { %6834 = vmatprep.mubr.bf16.mxu0 %v7582_v26  ;;  %v9299_v26 = vcombine.low %v8334_v0, %v8337_v45  ;;  %v7623_v0 = vld [vmem:[%s9225_s1 + $0x220] sm:$0xff]  }
 0x112   : > { %v4079_v44 = vsel %vm1062_vm0, %v4076_v3, %v4078_v48  ;;  %v4081_v42 = vsel %vm1062_vm0, %v4078_v48, %v4080_v28  ;;  %v9315_v48 = vcombine.low %v8417_v58, %v8420_v59  ;;  %v8771_v58 = vld [vmem:[%s7797_s22 + $0xc8] sm:$0xf] }
 0x117   : > { %6555 = vmatmul.mubr.bf16.gmra.mrb[20].mxu1 %v9294_v51 }
 0x118   : > { %6835 = vmatmul.mubr.bf16.gmra.mrb[44].mxu0 %v7584_v25  ;;  %6558 = vmatprep.mubr.bf16.mxu1 %v9295_v33  ;;  %v8683_v25 = vld [vmem:[%s7797_s22 + $0xa4] sm:$0xf]  ;;  %v7628_v33 = vld [vmem:[%s9225_s1 + $0x228] sm:$0xff]  }
 0x119   : > { %6854 = vmatprep.mubr.bf16.mxu0 %v4069_v41  ;;  %v5786_v41 = vcombine.low %v8680_v39, %v8683_v25 }
 0x11f   : > { %6559 = vmatmul.mubr.bf16.gmra.mrb[24].mxu1 %v9296_v38  ;;  %v4082_v38 = vrot.slane %v5786_v41, 2 }
 0x120   : > { %6855 = vmatmul.mubr.bf16.vlgmr.msra.gmra.mrb[0].mxu0 %v4071_v20  ;;  %6562 = vmatprep.mubr.bf16.mxu1 %v9297_v37  ;;  %v9306_v20 = vcombine.low %v8391_v16, %v8394_v11  ;;  %v9310_v37 = vld [vmem:[#allocation8_spill] sm:$0xff]  ;;  %v7637_v11 = vld [vmem:[%s9225_s1 + $0x230] sm:$0xff]  }
 0x121   : > { %6903 = vmatpush3.bf16.msra.mxu0 %v8500_v40  ;;  %6858 = vmatprep.mubr.bf16.mxu0 %v4073_v31  ;;  %v9298_v40 = vcombine.low %v8019_v9, %v8022_v10  ;;  %v9300_v9 = vcombine.low %v8357_v50, %v8360_v62  ;;  %v9301_v10 = vld [vmem:[#allocation4_spill] sm:$0xff]  ;;  %v9308_v31 = vld [vmem:[#allocation7_spill] sm:$0xff]  ;;  %v9312_v3 = vcombine.low %v9310_v37, %v9311_v52 }
 0x122   : > { %6904 = vmatprep.subr.bf16.mxu0 %v7598_v6  ;;  %v9303_v14 = vcombine.low %v9301_v10, %v9302_v19  ;;  %v8693_v50 = vld [vmem:[%s7797_s22 + $0xa8] sm:$0xf]  ;;  %v8696_v62 = vld [vmem:[%s7797_s22 + $0xac] sm:$0xf]  ;;  %v7642_v10 = vld [vmem:[%s9225_s1 + $0x238] sm:$0xff]  }
 0x123   : > { %v2592_v35 = vrot.slane %v9298_v40, 2  ;;  %v5787_v51 = vcombine.low %v8693_v50, %v8696_v62  ;;  %v8732_v40 = vld [vmem:[%s7797_s22 + $0xb8] sm:$0xf]  ;;  %v9313_v19 = vld [vmem:[#allocation25_spill] sm:$0xff] }
 0x124   : > { %v8677_v24 = vrot.slane %v9303_v14, 2  ;;  %v9314_v14 = vcombine.low %v9313_v19, %v8402_v32  ;;  %v8762_v32 = vld [vmem:[%s7797_s22 + $0xc0] sm:$0xf]  ;;  %v9328_v19 = vld [vmem:[#allocation16_spill] sm:$0xff] }
 0x125   : > { %6905 = vmatpush3.bf16.msra.mxu0 %v7598_v6  ;;  %v9309_v6 = vcombine.low %v9307_v53, %v9308_v31  ;;  %v8765_v53 = vld [vmem:[%s7797_s22 + $0xc4] sm:$0xf]  ;;  %v8774_v31 = vld [vmem:[%s7797_s22 + $0xcc] sm:$0xf] }
 0x126   : > { %6906 = vmatprep.subr.bf16.mxu0 %v7608_v12  ;;  %v8690_v45 = vsel %vm1062_vm0, %v8677_v24, %v2592_v35  ;;  %v5791_v52 = vcombine.low %v8771_v58, %v8774_v31 }
 0x127   : > { %6563 = vmatmul.mubr.bf16.gmra.mrb[28].mxu1 %v9299_v26  ;;  %v2594_v4 = vrot.slane %v9309_v6, 2  ;;  %v5788_v26 = vcombine.low %v8720_v18, %v8723_v43 }
 0x128   : > { %6859 = vmatmul.mubr.bf16.gmra.mrb[4].mxu0 %v4075_v23  ;;  %6566 = vmatprep.mubr.bf16.mxu1 %v9300_v9  ;;  %v4084_v23 = vrot.slane %v5787_v51, 2  ;;  %v9319_v51 = vld [vmem:[#allocation12_spill] sm:$0xff] }
 0x129   : > { %6862 = vmatprep.mubr.bf16.mxu0 %v4077_v63  ;;  %6907 = vmatpush3.bf16.msra.mxu0 %v7608_v12  ;;  %v2596_v12 = vrot.slane %v9312_v3, 2  ;;  %v8729_v16 = vsel %vm1062_vm0, %v2592_v35, %v2594_v4  ;;  %v8735_v63 = vld [vmem:[%s7797_s22 + $0xbc] sm:$0xf] }
 0x12a   : > { %6908 = vmatprep.subr.bf16.mxu0 %v7614_v7  ;;  %v4085_v9 = vsel %vm1062_vm0, %v4082_v38, %v4084_v23  ;;  %v5789_v35 = vcombine.low %v8732_v40, %v8735_v63  ;;  %v9322_v3 = vld [vmem:[#allocation26_spill] sm:$0xff] }
 0x12b   : > { %v8738_v17 = vsel %vm1062_vm0, %v2594_v4, %v2596_v12 }
 0x12d   : > { %6909 = vmatpush3.bf16.msra.mxu0 %v7614_v7  ;;  %v4083_v7 = vsel %vm1062_vm0, %v4080_v28, %v4082_v38  ;;  %v9316_v28 = vld [vmem:[#allocation10_spill] sm:$0xff]  ;;  %v5790_v38 = vcombine.low %v8762_v32, %v8765_v53 }
 0x12e   : > { %6910 = vmatprep.subr.bf16.mxu0 %v7623_v0 }
 0x12f   : > { %6567 = vmatmul.mubr.bf16.gmra.mrb[32].mxu1 %v9305_v60 }
 0x130   : > { %6863 = vmatmul.mubr.bf16.gmra.mrb[8].mxu0 %v4079_v44  ;;  %6570 = vmatprep.mubr.bf16.mxu1 %v9306_v20  ;;  %v4088_v20 = vrot.slane %v5789_v35, 2 }
 0x131   : > { %6866 = vmatprep.mubr.bf16.mxu0 %v4081_v42  ;;  %6911 = vmatpush3.bf16.msra.mxu0 %v7623_v0  ;;  %v9317_v0 = vld [vmem:[#allocation11_spill] sm:$0xff]  ;;  %v4086_v42 = vrot.slane %v5788_v26, 2 }
 0x132   : > { %6912 = vmatprep.subr.bf16.mxu0 %v7628_v33  ;;  %v9318_v44 = vcombine.low %v9316_v28, %v9317_v0  ;;  %v9326_v26 = vld [vmem:[#allocation15_spill] sm:$0xff]  ;;  %v4092_v0 = vrot.slane %v5791_v52, 2 }
 0x133   : > { %v4087_v4 = vsel %vm1062_vm0, %v4084_v23, %v4086_v42  ;;  %v4089_v37 = vsel %vm1062_vm0, %v4086_v42, %v4088_v20  ;;  %v9324_v23 = vcombine.low %v8444_v54, %v8447_v2  ;;  %v8809_v2 = vld [vmem:[%s7797_s22 + $0xd8] sm:$0xf]  ;;  %v8812_v42 = vld [vmem:[%s7797_s22 + $0xdc] sm:$0xf] }
 0x134   : > { %v2598_v41 = vrot.slane %v9318_v44, 2  ;;  %v8802_v44 = vld [vmem:[%s7797_s22 + $0xd4] sm:$0xf] }
 0x135   : > { %6913 = vmatpush3.bf16.msra.mxu0 %v7628_v33  ;;  %v9320_v33 = vld [vmem:[#allocation13_spill] sm:$0xff] }
 0x136   : > { %6914 = vmatprep.subr.bf16.mxu0 %v7637_v11  ;;  %v9321_v27 = vcombine.low %v9319_v51, %v9320_v33  ;;  %v8768_v59 = vsel %vm1062_vm0, %v2596_v12, %v2598_v41  ;;  %v9323_v12 = vcombine.low %v9322_v3, %v8426_v21  ;;  %v8799_v21 = vld [vmem:[%s7797_s22 + $0xd0] sm:$0xf] }
 0x137   : > { %6571 = vmatmul.mubr.bf16.gmra.mrb[36].mxu1 %v9314_v14  ;;  %v9329_v14 = vld [vmem:[#allocation17_spill] sm:$0xff] }
 0x138   : > { %6867 = vmatmul.mubr.bf16.gmra.mrb[12].mxu0 %v4083_v7  ;;  %6574 = vmatprep.mubr.bf16.mxu1 %v9315_v48  ;;  %v2600_v60 = vrot.slane %v9321_v27, 2  ;;  %v9325_v7 = vld [vmem:[#allocation14_spill] sm:$0xff]  ;;  %v9330_v48 = vcombine.low %v9328_v19, %v9329_v14  ;;  %v7619_v33 = vld [vmem:[%s7797_s22 + $0x30] sm:$0xff]   ;;  %v8841_v14 = vld [vmem:[%s7797_s22 + $0xe8] sm:$0xf] }
 0x139   : > { %6870 = vmatprep.mubr.bf16.mxu0 %v4085_v9  ;;  %6915 = vmatpush3.bf16.msra.mxu0 %v7637_v11  ;;  %v1457_v11 = vld [vmem:[%s7797_s22 + $0xc0] sm:$0xf]  ;;  %v9327_v9 = vcombine.low %v9325_v7, %v9326_v26  ;;  %v7621_v19 = vld [vmem:[%s7797_s22 + $0x38] sm:$0xff]  }
 0x13a   : > { %6916 = vmatprep.subr.bf16.mxu0 %v7642_v10  ;;  %v8777_v6 = vsel %vm1062_vm0, %v2598_v41, %v2600_v60  ;;  %v2604_v28 = vrot.slane %v9330_v48, 2  ;;  %v5560_v54 = vcombine.low %v8481_v55, %v1457_v11  ;;  %v8844_v48 = vld [vmem:[%s7797_s22 + $0xec] sm:$0xf] }
 0x13b   : > { %v2602_v35 = vrot.slane %v9327_v9, 2  ;;  %v8831_v9 = vld [vmem:[%s7797_s22 + $0xe0] sm:$0xf] }
 0x13d   : > { %6917 = vmatpush3.bf16.msra.mxu0 %v7642_v10  ;;  %v4090_v10 = vrot.slane %v5790_v38, 2  ;;  %v8805_v41 = vsel %vm1062_vm0, %v2600_v60, %v2602_v35  ;;  %v8815_v51 = vsel %vm1062_vm0, %v2602_v35, %v2604_v28  ;;  %v5792_v60 = vcombine.low %v8799_v21, %v8802_v44  ;;  %v9332_v38 = vld [vmem:[#allocation18_spill] sm:$0xff]  ;;  %v8834_v35 = vld [vmem:[%s7797_s22 + $0xe4] sm:$0xf] }
 0x13e   : > { %9331 = vst [vmem:[#allocation4_spill] sm:$0xff] %v8815_v51  ;;  %v8929_v51 = vld [vmem:[%s7797_s22 + $0x118] sm:$0xf] }
 0x13f   : > { %6575 = vmatmul.mubr.bf16.gmra.mrb[40].mxu1 %v9323_v12  ;;  %v4091_v27 = vsel %vm1062_vm0, %v4088_v20, %v4090_v10  ;;  %v4093_v55 = vsel %vm1062_vm0, %v4090_v10, %v4092_v0  ;;  %v4094_v20 = vrot.slane %v5792_v60, 2  ;;  %v9335_v12 = vld [vmem:[#allocation20_spill] sm:$0xff]  ;;  %v5794_v60 = vcombine.low %v8831_v9, %v8834_v35  ;;  %9348 = vst [vmem:[#allocation10_spill] sm:$0xff] %v8929_v51 }
 0x140   : > { %6871 = vmatmul.mubr.bf16.gmra.mrb[16].mxu0 %v4087_v4  ;;  %6578 = vmatprep.mubr.bf16.mxu1 %v9324_v23  ;;  %v5793_v4 = vcombine.low %v8809_v2, %v8812_v42  ;;  %v9336_v23 = vld [vmem:[#allocation21_spill] sm:$0xff] }
 0x141   : > { %6874 = vmatprep.mubr.bf16.mxu0 %v4089_v37  ;;  %v9333_v37 = vld [vmem:[#allocation19_spill] sm:$0xff]  ;;  %v9337_v11 = vcombine.low %v9335_v12, %v9336_v23  ;;  %v8866_v12 = vld [vmem:[%s7797_s22 + $0xf0] sm:$0xf]  ;;  %v8869_v23 = vld [vmem:[%s7797_s22 + $0xf4] sm:$0xf] }
 0x142   : > { %v9334_v52 = vcombine.low %v9332_v38, %v9333_v37  ;;  %v4096_v26 = vrot.slane %v5793_v4, 2  ;;  %v9340_v4 = vld [vmem:[#allocation22_spill] sm:$0xff] }
 0x143   : > { %v2608_v7 = vrot.slane %v9337_v11, 2  ;;  %v7626_v11 = vld [vmem:[%s7797_s22 + $0x48] sm:$0xff]  }
 0x144   : > { %v2606_v3 = vrot.slane %v9334_v52, 2  ;;  %v4098_v52 = vrot.slane %v5794_v60, 2 }
 0x146   : > { %v8837_v10 = vsel %vm1062_vm0, %v2604_v28, %v2606_v3  ;;  %v4097_v28 = vsel %vm1062_vm0, %v4094_v20, %v4096_v26  ;;  %v4099_v60 = vsel %vm1062_vm0, %v4096_v26, %v4098_v52 }
 0x147   : > { %6579 = vmatmul.mubr.bf16.gmra.mrb[44].mxu1 %v5560_v54  ;;  %9338 = vst [vmem:[#allocation5_spill] sm:$0xff] %v8837_v10  ;;  %v8847_v54 = vsel %vm1062_vm0, %v2606_v3, %v2608_v7  ;;  %v7684_v3 = vld [vmem:[%s9225_s1 + $0x108] sm:$0xff]  }
 0x148   : > { %6875 = vmatmul.mubr.bf16.gmra.mrb[20].mxu0 %v4091_v27  ;;  %6598 = vmatprep.mubr.bf16.mxu1 %v7619_v33  ;;  %9339 = vst [vmem:[#allocation24_spill] sm:$0xff] %v8847_v54  ;;  %v4095_v33 = vsel %vm1062_vm0, %v4092_v0, %v4094_v20  ;;  %v7624_v27 = vld [vmem:[%s7797_s22 + $0x40] sm:$0xff]   ;;  %v8906_v54 = vld [vmem:[%s7797_s22 + $0x10c] sm:$0xf] }
 0x149   : > { %6878 = vmatprep.mubr.bf16.mxu0 %v4093_v55  ;;  %v5795_v55 = vcombine.low %v8841_v14, %v8844_v48  ;;  %v9341_v0 = vld [vmem:[#allocation23_spill] sm:$0xff]  ;;  %9346 = vst [vmem:[#allocation9_spill] sm:$0xff] %v8906_v54  ;;  %v7635_v10 = vld [vmem:[%s7797_s22 + $0x68] sm:$0xff]  }
 0x14a   : > { %v9342_v38 = vcombine.low %v9340_v4, %v9341_v0 }
 0x14b   : > { %v4100_v20 = vrot.slane %v5795_v55, 2 }
 0x14c   : > { %v8860_v37 = vrot.slane %v9342_v38, 2  ;;  %v8893_v38 = vld [vmem:[%s7797_s22 + $0x100] sm:$0xf] }
 0x14d   : > { %v4101_v55 = vsel %vm1062_vm0, %v4098_v52, %v4100_v20  ;;  %v7631_v52 = vld [vmem:[%s7797_s22 + $0x58] sm:$0xff]  }
 0x14e   : > { %9343 = vst [vmem:[#allocation6_spill] sm:$0xff] %v8860_v37 }
 0x14f   : > { %6599 = vmatmul.mubr.bf16.vlgmr.msra.gmra.mrb[0].mxu1 %v7621_v19  ;;  %v8877_v19 = vld [vmem:[%s7797_s22 + $0xf8] sm:$0xf] }
 0x150   : > { %6879 = vmatmul.mubr.bf16.gmra.mrb[24].mxu0 %v4095_v33  ;;  %6974 = vmatpush3.bf16.msra.mxu1 %v8583_v5  ;;  %v8873_v5 = vsel %vm1062_vm0, %v2608_v7, %v8860_v37  ;;  %v8880_v33 = vld [vmem:[%s7797_s22 + $0xfc] sm:$0xf]  ;;  %v7685_v7 = vld [vmem:[%s9225_s1 + $0x110] sm:$0xff]  }
 0x151   : > { %6602 = vmatprep.mubr.bf16.mxu1 %v7624_v27  ;;  %6882 = vmatprep.mubr.bf16.mxu0 %v4097_v28  ;;  %9344 = vst [vmem:[#allocation7_spill] sm:$0xff] %v8873_v5  ;;  %v7629_v27 = vld [vmem:[%s7797_s22 + $0x50] sm:$0xff]   ;;  %v5796_v28 = vcombine.low %v8866_v12, %v8869_v23  ;;  %v5797_v4 = vcombine.low %v8877_v19, %v8880_v33  ;;  %v7686_v37 = vld [vmem:[%s9225_s1 + $0x118] sm:$0xff]   ;;  %v8903_v5 = vld [vmem:[%s7797_s22 + $0x108] sm:$0xf] }
 0x152   : > { %6967 = vmatprep.subr.bf16.mxu1 %v7684_v3 }
 0x153   : > { %v4102_v26 = vrot.slane %v5796_v28, 2  ;;  %v4104_v0 = vrot.slane %v5797_v4, 2  ;;  %v8919_v4 = vld [vmem:[%s7797_s22 + $0x110] sm:$0xf] }
 0x154   : > { %6975 = vmatpush3.bf16.msra.mxu1 %v7684_v3  ;;  %v8896_v3 = vld [vmem:[%s7797_s22 + $0x104] sm:$0xf] }
 0x155   : > { %6968 = vmatprep.subr.bf16.mxu1 %v7685_v7  ;;  %9345 = vst [vmem:[#allocation8_spill] sm:$0xff] %v8896_v3  ;;  %v4105_v28 = vsel %vm1062_vm0, %v4102_v26, %v4104_v0 }
 0x157   : > { %6603 = vmatmul.mubr.bf16.gmra.mrb[4].mxu1 %v7626_v11  ;;  %v7633_v11 = vld [vmem:[%s7797_s22 + $0x60] sm:$0xff]  }
 0x158   : > { %6883 = vmatmul.mubr.bf16.gmra.mrb[28].mxu0 %v4099_v60  ;;  %6606 = vmatprep.mubr.bf16.mxu1 %v7629_v27  ;;  %v4103_v27 = vsel %vm1062_vm0, %v4100_v20, %v4102_v26  ;;  %v5798_v60 = vcombine.low %v8893_v38, %v8896_v3  ;;  %v8922_v26 = vld [vmem:[%s7797_s22 + $0x114] sm:$0xf]  ;;  %v8932_v3 = vld [vmem:[%s7797_s22 + $0x11c] sm:$0xf] }
 0x159   : > { %6886 = vmatprep.mubr.bf16.mxu0 %v4101_v55  ;;  %6976 = vmatpush3.bf16.msra.mxu1 %v7685_v7  ;;  %v5799_v7 = vcombine.low %v8903_v5, %v8906_v54  ;;  %v7687_v55 = vld [vmem:[%s9225_s1 + $0x120] sm:$0xff]   ;;  %9347 = vst [vmem:[#allocation25_spill] sm:$0xff] %v8922_v26  ;;  %v7688_v54 = vld [vmem:[%s9225_s1 + $0x128] sm:$0xff]   ;;  %9349 = vst [vmem:[#allocation11_spill] sm:$0xff] %v8932_v3 }
 0x15a   : > { %6969 = vmatprep.subr.bf16.mxu1 %v7686_v37  ;;  %v4106_v20 = vrot.slane %v5798_v60, 2 }
 0x15d   : > { %6977 = vmatpush3.bf16.msra.mxu1 %v7686_v37  ;;  %v4108_v37 = vrot.slane %v5799_v7, 2  ;;  %v7689_v7 = vld [vmem:[%s9225_s1 + $0x130] sm:$0xff]  }
 0x15e   : > { %6970 = vmatprep.subr.bf16.mxu1 %v7687_v55 }
 0x15f   : > { %6607 = vmatmul.mubr.bf16.gmra.mrb[8].mxu1 %v7631_v52  ;;  %v7638_v52 = vld [vmem:[%s7797_s22 + $0x70] sm:$0xff]   ;;  %v4109_v60 = vsel %vm1062_vm0, %v4106_v20, %v4108_v37 }
 0x160   : > { %6887 = vmatmul.mubr.bf16.gmra.mrb[32].mxu0 %v4103_v27  ;;  %6610 = vmatprep.mubr.bf16.mxu1 %v7633_v11  ;;  %v4107_v11 = vsel %vm1062_vm0, %v4104_v0, %v4106_v20  ;;  %v5800_v27 = vcombine.low %v8919_v4, %v8922_v26  ;;  %v7640_v20 = vld [vmem:[%s7797_s22 + $0x78] sm:$0xff]  }
 0x161   : > { %6890 = vmatprep.mubr.bf16.mxu0 %v4105_v28  ;;  %6978 = vmatpush3.bf16.msra.mxu1 %v7687_v55  ;;  %v5801_v28 = vcombine.low %v8929_v51, %v8932_v3  ;;  %v7690_v55 = vld [vmem:[%s9225_s1 + $0x138] sm:$0xff]   ;;  %v7643_v3 = vld [vmem:[%s7797_s22 + $0x80] sm:$0xff]  }
 0x162   : > { %6971 = vmatprep.subr.bf16.mxu1 %v7688_v54  ;;  %v4110_v0 = vrot.slane %v5800_v27, 2  ;;  %v7646_v51 = vld [vmem:[%s7797_s22 + $0x120] ss:$0 sps:$4 sm:$0x33]   ;;  %v7647_v27 = vld [vmem:[%s7797_s22 + $0x90] sm:$0xff]  }
 0x164   : > { %v4111_v26 = vsel %vm1062_vm0, %v4108_v37, %v4110_v0  ;;  %v5827_v37 = vcombine.low %v8570_v47, %v8573_v15  ;;  %v5830_v47 = vcombine.low %v8599_v34, %v8614_v61  ;;  %v7654_v15 = vld [vmem:[%s7797_s22 + $0xb0] sm:$0xff]   ;;  %v7660_v34 = vld [vmem:[%s7797_s22 + $0xc8] sm:$0xff]   ;;  %v5834_v61 = vcombine.low %v8654_v22, %v8680_v39 }
 0x165   : > { %6979 = vmatpush3.bf16.msra.mxu1 %v7688_v54  ;;  %v4112_v54 = vrot.slane %v5801_v28, 2  ;;  %v7649_v28 = vld [vmem:[%s7797_s22 + $0x98] sm:$0xff]   ;;  %v7668_v22 = vld [vmem:[%s7797_s22 + $0xe8] sm:$0xff]   ;;  %v5838_v39 = vcombine.low %v8735_v63, %v8762_v32 }
 0x166   : > { %6972 = vmatprep.subr.bf16.mxu1 %v7689_v7  ;;  %v9352_v63 = vld [vmem:[#allocation8_spill] sm:$0xff] }
 0x167   : > { %6611 = vmatmul.mubr.bf16.gmra.mrb[12].mxu1 %v7635_v10  ;;  %v4113_v10 = vsel %vm1062_vm0, %v4110_v0, %v4112_v54  ;;  %v5831_v0 = vcombine.low %v8617_v46, %v8620_v49  ;;  %v7662_v46 = vld [vmem:[%s7797_s22 + $0xd0] sm:$0xff]   ;;  %v5835_v49 = vcombine.low %v8683_v25, %v8693_v50  ;;  %v9351_v25 = vld [vmem:[#allocation3_spill] sm:$0xff]  ;;  %v9353_v32 = vld [vmem:[#allocation4_spill] sm:$0xff] }
 0x168   : > { %6891 = vmatmul.mubr.bf16.gmra.mrb[36].mxu0 %v4107_v11  ;;  %6614 = vmatprep.mubr.bf16.mxu1 %v7638_v52  ;;  %v4114_v52 = vrot.slane %v7646_v51, 2  ;;  %v7645_v11 = vld [vmem:[%s7797_s22 + $0x88] sm:$0xff]   ;;  %v5829_v51 = vcombine.low %v8593_v13, %v8596_v1  ;;  %v7656_v13 = vld [vmem:[%s7797_s22 + $0xb8] sm:$0xff]   ;;  %v5833_v1 = vcombine.low %v8645_v56, %v8651_v30  ;;  %v7666_v56 = vld [vmem:[%s7797_s22 + $0xe0] sm:$0xff]   ;;  %v5837_v30 = vcombine.low %v8723_v43, %v8732_v40 }
 0x169   : > { %6894 = vmatprep.mubr.bf16.mxu0 %v4109_v60  ;;  %6980 = vmatpush3.bf16.msra.mxu1 %v7689_v7  ;;  %v7650_v7 = vld [vmem:[%s7797_s22 + $0xa0] sm:$0xff]   ;;  %v2591_v50 = vsel %vm1062_vm0, %v9351_v25, %v8677_v24  ;;  %v5842_v24 = vcombine.low %v8812_v42, %v8831_v9  ;;  %v5843_v43 = vcombine.low %v8834_v35, %v8841_v14  ;;  %v9360_v35 = vld [vmem:[#allocation6_spill] sm:$0xff] }
 0x16a   : > { %6973 = vmatprep.subr.bf16.mxu1 %v7690_v55  ;;  %v4115_v60 = vsel %vm1062_vm0, %v4112_v54, %v4114_v52  ;;  %v5839_v54 = vcombine.low %v8765_v53, %v8771_v58  ;;  %v5846_v40 = vcombine.low %v8880_v33, %v8893_v38  ;;  %v9354_v53 = vld [vmem:[#allocation5_spill] sm:$0xff]  ;;  %v4461_v9 = vld [vmem:[%s7797_s22 + $0x120] sm:$0xf] }
 0x16d   : > { %6981 = vmatpush3.bf16.msra.mxu1 %v7690_v55 }
 0x16f   : > { %6615 = vmatmul.mubr.bf16.gmra.mrb[16].mxu1 %v7640_v20 }
 0x170   : > { %6895 = vmatmul.mubr.bf16.gmra.mrb[40].mxu0 %v4111_v26  ;;  %6618 = vmatprep.mubr.bf16.mxu1 %v7643_v3  ;;  %v9350_v3 = vcombine.low %v8309_v8, %v8312_v29  ;;  %v7652_v26 = vld [vmem:[%s7797_s22 + $0xa8] sm:$0xff]   ;;  %v5832_v29 = vcombine.low %v8623_v57, %v8642_v36  ;;  %v7658_v8 = vld [vmem:[%s7797_s22 + $0xc0] sm:$0xff]   ;;  %v7664_v57 = vld [vmem:[%s7797_s22 + $0xd8] sm:$0xff]   ;;  %v5836_v36 = vcombine.low %v8696_v62, %v8720_v18 }
 0x171   : > { %6898 = vmatprep.mubr.bf16.mxu0 %v4113_v10  ;;  %v5840_v62 = vcombine.low %v8774_v31, %v8799_v21  ;;  %v5841_v18 = vcombine.low %v8802_v44, %v8809_v2  ;;  %v7681_v31 = vld [vmem:[%s7797_s22 + $0xf0] ss:$0 sps:$4 sm:$0x33]   ;;  %v9359_v2 = vld [vmem:[#allocation7_spill] sm:$0xff] }
 0x172   : > { %v9357_v21 = vld [vmem:[#allocation25_spill] sm:$0xff]  ;;  %v2612_v42 = vrot.slane %v7681_v31, 2 }
 0x174   : > { %v2613_v14 = vsel %vm1062_vm0, %v9360_v35, %v2612_v42 }
 0x177   : > { %6619 = vmatmul.mubr.bf16.gmra.mrb[20].mxu1 %v7645_v11 }
 0x178   : > { %6899 = vmatmul.mubr.bf16.gmra.mrb[44].mxu0 %v4115_v60  ;;  %6622 = vmatprep.mubr.bf16.mxu1 %v7647_v27 }
 0x179   : > { %6918 = vmatprep.mubr.bf16.mxu0 %v5827_v37 }
 0x17f   : > { %6623 = vmatmul.mubr.bf16.gmra.mrb[24].mxu1 %v7649_v28 }
 0x180   : > { %6919 = vmatmul.mubr.bf16.vlgmr.msra.gmra.mrb[0].mxu0 %v9350_v3  ;;  %6626 = vmatprep.mubr.bf16.mxu1 %v7650_v7 }
 0x181   : > { %6922 = vmatprep.mubr.bf16.mxu0 %v5829_v51 }
 0x187   : > { %6627 = vmatmul.mubr.bf16.gmra.mrb[28].mxu1 %v7652_v26 }
 0x188   : > { %6923 = vmatmul.mubr.bf16.gmra.mrb[4].mxu0 %v5830_v47  ;;  %6630 = vmatprep.mubr.bf16.mxu1 %v7654_v15 }
 0x189   : > { %6926 = vmatprep.mubr.bf16.mxu0 %v5831_v0 }
 0x18f   : > { %6631 = vmatmul.mubr.bf16.gmra.mrb[32].mxu1 %v7656_v13 }
 0x190   : > { %6927 = vmatmul.mubr.bf16.gmra.mrb[8].mxu0 %v5832_v29  ;;  %6634 = vmatprep.mubr.bf16.mxu1 %v7658_v8 }
 0x191   : > { %6930 = vmatprep.mubr.bf16.mxu0 %v5833_v1  ;;  %v9066_v1 = vld [vmem:[%s9226_s2] ss:$0 sm:$0xff] }
 0x197   : > { %6635 = vmatmul.mubr.bf16.gmra.mrb[36].mxu1 %v7660_v34 }
 0x198   : > { %6931 = vmatmul.mubr.bf16.gmra.mrb[12].mxu0 %v5834_v61  ;;  %6638 = vmatprep.mubr.bf16.mxu1 %v7662_v46  ;;  %v9071_v46 = vld [vmem:[%s9227_s3] ss:$0 sm:$0xff] }
 0x199   : > { %6934 = vmatprep.mubr.bf16.mxu0 %v5835_v49 }
 0x19f   : > { %6639 = vmatmul.mubr.bf16.gmra.mrb[40].mxu1 %v7664_v57 }
 0x1a0   : > { %6935 = vmatmul.mubr.bf16.gmra.mrb[16].mxu0 %v5836_v36  ;;  %6642 = vmatprep.mubr.bf16.mxu1 %v7666_v56 }
 0x1a1   : > { %6938 = vmatprep.mubr.bf16.mxu0 %v5837_v30 }
 0x1a7   : > { %6643 = vmatmul.mubr.bf16.gmra.mrb[44].mxu1 %v7668_v22 }
 0x1a8   : > { %6939 = vmatmul.mubr.bf16.gmra.mrb[20].mxu0 %v5838_v39  ;;  %6686 = vmatprep.mubr.bf16.mxu1 %v2591_v50 }
 0x1a9   : > { %6942 = vmatprep.mubr.bf16.mxu0 %v5839_v54 }
 0x1af   : > { %6687 = vmatmul.mubr.bf16.vlgmr.msra.gmra.mrb[24].mxu1 %v8690_v45  ;;  %v5844_v45 = vcombine.low %v8844_v48, %v8866_v12  ;;  %v9361_v48 = vld [vmem:[#allocation11_spill] sm:$0xff] }
 0x1b0   : > { %6943 = vmatmul.mubr.bf16.gmra.mrb[24].mxu0 %v5840_v62  ;;  %6690 = vmatprep.mubr.bf16.mxu1 %v8729_v16  ;;  %v5845_v16 = vcombine.low %v8869_v23, %v8877_v19  ;;  %v5850_v12 = vcombine.low %v9361_v48, %v4461_v9 }
 0x1b1   : > { %6946 = vmatprep.mubr.bf16.mxu0 %v5841_v18 }
 0x1b7   : > { %6691 = vmatmul.mubr.bf16.gmra.mrb[28].mxu1 %v8738_v17  ;;  %v5847_v17 = vcombine.low %v9352_v63, %v8903_v5 }
 0x1b8   : > { %6947 = vmatmul.mubr.bf16.gmra.mrb[28].mxu0 %v5842_v24  ;;  %6694 = vmatprep.mubr.bf16.mxu1 %v8768_v59  ;;  %v9355_v59 = vld [vmem:[#allocation9_spill] sm:$0xff] }
 0x1b9   : > { %6950 = vmatprep.mubr.bf16.mxu0 %v5843_v43  ;;  %v5848_v58 = vcombine.low %v9355_v59, %v8919_v4 }
 0x1bf   : > { %6695 = vmatmul.mubr.bf16.gmra.mrb[32].mxu1 %v8777_v6  ;;  %v9356_v6 = vld [vmem:[#allocation10_spill] sm:$0xff] }
 0x1c0   : > { %6951 = vmatmul.mubr.bf16.gmra.mrb[32].mxu0 %v5844_v45  ;;  %6698 = vmatprep.mubr.bf16.mxu1 %v8805_v41  ;;  %v5849_v44 = vcombine.low %v9357_v21, %v9356_v6  ;;  %v9358_v41 = vld [vmem:[#allocation24_spill] sm:$0xff] }
 0x1c1   : > { %6954 = vmatprep.mubr.bf16.mxu0 %v5845_v16 }
 0x1c7   : > { %6699 = vmatmul.mubr.bf16.gmra.mrb[36].mxu1 %v9353_v32 }
 0x1c8   : > { %6955 = vmatmul.mubr.bf16.gmra.mrb[36].mxu0 %v5846_v40  ;;  %6702 = vmatprep.mubr.bf16.mxu1 %v9354_v53 }
 0x1c9   : > { %6958 = vmatprep.mubr.bf16.mxu0 %v5847_v17 }
 0x1cf   : > { %6703 = vmatmul.mubr.bf16.gmra.mrb[40].mxu1 %v9358_v41 }
 0x1d0   : > { %6959 = vmatmul.mubr.bf16.gmra.mrb[40].mxu0 %v5848_v58  ;;  %6706 = vmatprep.mubr.bf16.mxu1 %v9359_v2 }
 0x1d1   : > { %6962 = vmatprep.mubr.bf16.mxu0 %v5849_v44 }
 0x1d7   : > { %6707 = vmatmul.mubr.bf16.gmra.mrb[44].mxu1 %v2613_v14 }
 0x1d8   : > { %6963 = vmatmul.mubr.bf16.gmra.mrb[44].mxu0 %v5850_v12 }
 0x222   : > { %v6600_v23 = vpop.f32.mrb[0].mxu1 }
 0x223   : > { %v2137_v5 = vpop.f32.mrb[1].mxu1 }
 0x224   : > { %v6601_v19 = vpop.f32.mrb[2].mxu1 }
 0x225   : > { %v2140_v33 = vpop.f32.mrb[3].mxu1 }
 0x22a   : > { %v6604_v38 = vpop.f32.mrb[4].mxu1 }
 0x22b   : > { %v2153_v4 = vpop.f32.mrb[5].mxu1 }
 0x22c   : > { %v6605_v55 = vpop.f32.mrb[6].mxu1 }
 0x22d   : > { %v2156_v20 = vpop.f32.mrb[7].mxu1 }
 0x232   : > { %v9031_v10 = vpop.f32.mrb[8].mxu1 }
 0x233   : > { %v9033_v52 = vpop.f32.mrb[9].mxu1 }
 0x234   : > { %v9035_v11 = vpop.f32.mrb[10].mxu1 }
 0x235   : > { %v9037_v27 = vpop.f32.mrb[11].mxu1 }
 0x23a   : > { %v9039_v60 = vpop.f32.mrb[12].mxu1 }
 0x23b   : > { %v9041_v37 = vpop.f32.mrb[13].mxu1 }
 0x23c   : > { %v9043_v28 = vpop.f32.mrb[14].mxu1 }
 0x23d   : > { %v9045_v7 = vpop.f32.mrb[15].mxu1 }
 0x242   : > { %v9047_v51 = vpop.f32.mrb[16].mxu1 }
 0x243   : > { %v9049_v3 = vpop.f32.mrb[17].mxu1 }
 0x244   : > { %v9051_v26 = vpop.f32.mrb[18].mxu1 }
 0x245   : > { %v9053_v47 = vpop.f32.mrb[19].mxu1 }
 0x24a   : > { %v9055_v15 = vpop.f32.mrb[20].mxu1 }
 0x24b   : > { %v9057_v0 = vpop.f32.mrb[21].mxu1 }
 0x24c   : > { %v9059_v13 = vpop.f32.mrb[22].mxu1 }
 0x24d   : > { %v9061_v29 = vpop.f32.mrb[23].mxu1 }
 0x253   : > { %v6920_v8 = vpop.f32.mrb[0].mxu0 }
 0x254   : > { %v6982_v34 = vadd.f32 %v6920_v8, %v6600_v23  ;;  %v4611_v61 = vpop.f32.mrb[1].mxu0 }
 0x255   : > { %v6983_v49 = vadd.f32 %v4611_v61, %v2137_v5  ;;  %v6921_v57 = vpop.f32.mrb[2].mxu0 }
 0x256   : > { %v4958_v36 = vmul.f32 %v6982_v34, %v9066_v1  ;;  %v6984_v56 = vadd.f32 %v6921_v57, %v6601_v19  ;;  %v4614_v30 = vpop.f32.mrb[3].mxu0 }
 0x257   : > { %v4956_v22 = vmul.f32 %v6983_v49, %v9066_v1  ;;  %v6985_v39 = vadd.f32 %v4614_v30, %v2140_v33 }
 0x258   : > { %v5013_v25 = vadd.f32 %v9071_v46, %v4958_v36  ;;  %v4959_v50 = vmul.f32 %v6984_v56, %v9066_v1 }
 0x259   : > { %v5011_v54 = vadd.f32 %v9071_v46, %v4956_v22  ;;  %v4957_v62 = vmul.f32 %v6985_v39, %v9066_v1 }
 0x25a   : > { %v5014_v18 = vadd.f32 %v9071_v46, %v4959_v50  ;;  %v5061_v45 = vmax.f32 %v5013_v25, 0.0 }
 0x25b   : > { %v5012_v24 = vadd.f32 %v9071_v46, %v4957_v62  ;;  %v6924_v43 = vpop.f32.mrb[4].mxu0  ;;  %v5059_v17 = vmax.f32 %v5011_v54, 0.0 }
 0x25c   : > { %v5062_v16 = vmax.f32 %v5014_v18, 0.0  ;;  %v6986_v40 = vadd.f32 %v6924_v43, %v6604_v38  ;;  %v4627_v63 = vpop.f32.mrb[5].mxu0 }
 0x25d   : > { %v5060_v32 = vmax.f32 %v5012_v24, 0.0  ;;  %v6987_v53 = vadd.f32 %v4627_v63, %v2153_v4  ;;  %v6925_v59 = vpop.f32.mrb[6].mxu0 }
 0x25e   : > { %v5967_v58 = vpack.c.bf16 %v5062_v16, %v5061_v45  ;;  %v4962_v31 = vmul.f32 %v6986_v40, %v9066_v1  ;;  %v6988_v6 = vadd.f32 %v6925_v59, %v6605_v55  ;;  %v4630_v21 = vpop.f32.mrb[7].mxu0 }
 0x25f   : > { %v5962_v44 = vpack.c.bf16 %v5060_v32, %v5059_v17  ;;  %v4960_v41 = vmul.f32 %v6987_v53, %v9066_v1  ;;  %v6989_v2 = vadd.f32 %v4630_v21, %v2156_v20 }
 0x260   : > { %6079 = vst [vmem:[%s9085_s19 + $0x8] sm:$0xff] %v5967_v58   ;;  %v5017_v42 = vadd.f32 %v9071_v46, %v4962_v31  ;;  %v4963_v9 = vmul.f32 %v6988_v6, %v9066_v1 }
 0x261   : > { %5963 = vst [vmem:[%s9085_s19] sm:$0xff] %v5962_v44   ;;  %v5015_v35 = vadd.f32 %v9071_v46, %v4960_v41  ;;  %v4961_v14 = vmul.f32 %v6989_v2, %v9066_v1 }
 0x262   : > { %v5018_v48 = vadd.f32 %v9071_v46, %v4963_v9  ;;  %v5065_v5 = vmax.f32 %v5017_v42, 0.0 }
 0x263   : > { %v5016_v12 = vadd.f32 %v9071_v46, %v4961_v14  ;;  %v6928_v23 = vpop.f32.mrb[8].mxu0  ;;  %v5063_v4 = vmax.f32 %v5015_v35, 0.0 }
 0x264   : > { %v5066_v19 = vmax.f32 %v5018_v48, 0.0  ;;  %v6990_v33 = vadd.f32 %v6928_v23, %v9031_v10  ;;  %v4643_v38 = vpop.f32.mrb[9].mxu0 }
 0x265   : > { %v5064_v55 = vmax.f32 %v5016_v12, 0.0  ;;  %v6991_v20 = vadd.f32 %v4643_v38, %v9033_v52  ;;  %v6929_v8 = vpop.f32.mrb[10].mxu0 }
 0x266   : > { %v5977_v34 = vpack.c.bf16 %v5066_v19, %v5065_v5  ;;  %v4966_v61 = vmul.f32 %v6990_v33, %v9066_v1  ;;  %v6992_v49 = vadd.f32 %v6929_v8, %v9035_v11  ;;  %v4646_v57 = vpop.f32.mrb[11].mxu0 }
 0x267   : > { %v5972_v36 = vpack.c.bf16 %v5064_v55, %v5063_v4  ;;  %v4964_v56 = vmul.f32 %v6991_v20, %v9066_v1  ;;  %v6993_v30 = vadd.f32 %v4646_v57, %v9037_v27 }
 0x268   : > { %6081 = vst [vmem:[%s9085_s19 + $0x18] sm:$0xff] %v5977_v34   ;;  %v5021_v10 = vadd.f32 %v9071_v46, %v4966_v61  ;;  %v4967_v22 = vmul.f32 %v6992_v49, %v9066_v1 }
 0x269   : > { %6080 = vst [vmem:[%s9085_s19 + $0x10] sm:$0xff] %v5972_v36   ;;  %v5019_v52 = vadd.f32 %v9071_v46, %v4964_v56  ;;  %v4965_v39 = vmul.f32 %v6993_v30, %v9066_v1 }
 0x26a   : > { %v5022_v25 = vadd.f32 %v9071_v46, %v4967_v22  ;;  %v5069_v54 = vmax.f32 %v5021_v10, 0.0 }
 0x26b   : > { %v5020_v11 = vadd.f32 %v9071_v46, %v4965_v39  ;;  %v6932_v50 = vpop.f32.mrb[12].mxu0  ;;  %v5067_v24 = vmax.f32 %v5019_v52, 0.0 }
 0x26c   : > { %v5070_v62 = vmax.f32 %v5022_v25, 0.0  ;;  %v6994_v27 = vadd.f32 %v6932_v50, %v9039_v60  ;;  %v4659_v18 = vpop.f32.mrb[13].mxu0 }
 0x26d   : > { %v5068_v43 = vmax.f32 %v5020_v11, 0.0  ;;  %v6995_v45 = vadd.f32 %v4659_v18, %v9041_v37  ;;  %v6933_v16 = vpop.f32.mrb[14].mxu0 }
 0x26e   : > { %v5987_v40 = vpack.c.bf16 %v5070_v62, %v5069_v54  ;;  %v4970_v63 = vmul.f32 %v6994_v27, %v9066_v1  ;;  %v6996_v17 = vadd.f32 %v6933_v16, %v9043_v28  ;;  %v4662_v32 = vpop.f32.mrb[15].mxu0 }
 0x26f   : > { %v5982_v53 = vpack.c.bf16 %v5068_v43, %v5067_v24  ;;  %v4968_v59 = vmul.f32 %v6995_v45, %v9066_v1  ;;  %v6997_v58 = vadd.f32 %v4662_v32, %v9045_v7 }
 0x270   : > { %6083 = vst [vmem:[%s9085_s19 + $0x28] sm:$0xff] %v5987_v40   ;;  %v5025_v60 = vadd.f32 %v9071_v46, %v4970_v63  ;;  %v4971_v31 = vmul.f32 %v6996_v17, %v9066_v1 }
 0x271   : > { %6082 = vst [vmem:[%s9085_s19 + $0x20] sm:$0xff] %v5982_v53   ;;  %v5023_v37 = vadd.f32 %v9071_v46, %v4968_v59  ;;  %v4969_v6 = vmul.f32 %v6997_v58, %v9066_v1 }
 0x272   : > { %v5026_v21 = vadd.f32 %v9071_v46, %v4971_v31  ;;  %v5073_v41 = vmax.f32 %v5025_v60, 0.0 }
 0x273   : > { %v5024_v28 = vadd.f32 %v9071_v46, %v4969_v6  ;;  %v6936_v44 = vpop.f32.mrb[16].mxu0  ;;  %v5071_v9 = vmax.f32 %v5023_v37, 0.0 }
 0x274   : > { %v5074_v2 = vmax.f32 %v5026_v21, 0.0  ;;  %v6998_v7 = vadd.f32 %v6936_v44, %v9047_v51  ;;  %v4675_v42 = vpop.f32.mrb[17].mxu0 }
 0x275   : > { %v5072_v35 = vmax.f32 %v5024_v28, 0.0  ;;  %v6999_v14 = vadd.f32 %v4675_v42, %v9049_v3  ;;  %v6937_v48 = vpop.f32.mrb[18].mxu0 }
 0x276   : > { %v5997_v12 = vpack.c.bf16 %v5074_v2, %v5073_v41  ;;  %v4974_v23 = vmul.f32 %v6998_v7, %v9066_v1  ;;  %v7000_v5 = vadd.f32 %v6937_v48, %v9051_v26  ;;  %v4678_v19 = vpop.f32.mrb[19].mxu0 }
 0x277   : > { %v5992_v33 = vpack.c.bf16 %v5072_v35, %v5071_v9  ;;  %v4972_v38 = vmul.f32 %v6999_v14, %v9066_v1  ;;  %v7001_v4 = vadd.f32 %v4678_v19, %v9053_v47 }
 0x278   : > { %6085 = vst [vmem:[%s9085_s19 + $0x38] sm:$0xff] %v5997_v12   ;;  %v5029_v51 = vadd.f32 %v9071_v46, %v4974_v23  ;;  %v4975_v55 = vmul.f32 %v7000_v5, %v9066_v1 }
 0x279   : > { %6084 = vst [vmem:[%s9085_s19 + $0x30] sm:$0xff] %v5992_v33   ;;  %v5027_v3 = vadd.f32 %v9071_v46, %v4972_v38  ;;  %v4973_v20 = vmul.f32 %v7001_v4, %v9066_v1 }
 0x27a   : > { %v5030_v8 = vadd.f32 %v9071_v46, %v4975_v55  ;;  %v5077_v61 = vmax.f32 %v5029_v51, 0.0 }
 0x27b   : > { %v5028_v26 = vadd.f32 %v9071_v46, %v4973_v20  ;;  %v6940_v34 = vpop.f32.mrb[20].mxu0  ;;  %v5075_v36 = vmax.f32 %v5027_v3, 0.0 }
 0x27c   : > { %v5078_v49 = vmax.f32 %v5030_v8, 0.0  ;;  %v7002_v47 = vadd.f32 %v6940_v34, %v9055_v15  ;;  %v4691_v57 = vpop.f32.mrb[21].mxu0 }
 0x27d   : > { %v5076_v56 = vmax.f32 %v5028_v26, 0.0  ;;  %v7003_v30 = vadd.f32 %v4691_v57, %v9057_v0  ;;  %v6941_v10 = vpop.f32.mrb[22].mxu0 }
 0x27e   : > { %v6007_v22 = vpack.c.bf16 %v5078_v49, %v5077_v61  ;;  %v4978_v52 = vmul.f32 %v7002_v47, %v9066_v1  ;;  %v7004_v39 = vadd.f32 %v6941_v10, %v9059_v13  ;;  %v4694_v25 = vpop.f32.mrb[23].mxu0 }
 0x27f   : > { %v6002_v11 = vpack.c.bf16 %v5076_v56, %v5075_v36  ;;  %v4976_v50 = vmul.f32 %v7003_v30, %v9066_v1  ;;  %v7005_v54 = vadd.f32 %v4694_v25, %v9061_v29 }
 0x280   : > { %6087 = vst [vmem:[%s9085_s19 + $0x48] sm:$0xff] %v6007_v22   ;;  %v5033_v15 = vadd.f32 %v9071_v46, %v4978_v52  ;;  %v4979_v62 = vmul.f32 %v7004_v39, %v9066_v1 }
 0x281   : > { %6086 = vst [vmem:[%s9085_s19 + $0x40] sm:$0xff] %v6002_v11   ;;  %v5031_v0 = vadd.f32 %v9071_v46, %v4976_v50  ;;  %v4977_v27 = vmul.f32 %v7005_v54, %v9066_v1 }
 0x282   : > { %v5034_v18 = vadd.f32 %v9071_v46, %v4979_v62  ;;  %v6688_v24 = vpop.f32.mrb[24].mxu1  ;;  %v5081_v16 = vmax.f32 %v5033_v15, 0.0 }
 0x283   : > { %v5032_v13 = vadd.f32 %v9071_v46, %v4977_v27  ;;  %v6944_v43 = vpop.f32.mrb[24].mxu0  ;;  %v2816_v45 = vpop.f32.mrb[25].mxu1  ;;  %v5079_v32 = vmax.f32 %v5031_v0, 0.0 }
 0x284   : > { %v5082_v40 = vmax.f32 %v5034_v18, 0.0  ;;  %v7006_v29 = vadd.f32 %v6944_v43, %v6688_v24  ;;  %v4707_v63 = vpop.f32.mrb[25].mxu0  ;;  %v6689_v17 = vpop.f32.mrb[26].mxu1 }
 0x285   : > { %v5080_v53 = vmax.f32 %v5032_v13, 0.0  ;;  %v7007_v59 = vadd.f32 %v4707_v63, %v2816_v45  ;;  %v6945_v58 = vpop.f32.mrb[26].mxu0  ;;  %v2819_v60 = vpop.f32.mrb[27].mxu1 }
 0x286   : > { %v6017_v31 = vpack.c.bf16 %v5082_v40, %v5081_v16  ;;  %v4982_v37 = vmul.f32 %v7006_v29, %v9066_v1  ;;  %v7008_v6 = vadd.f32 %v6945_v58, %v6689_v17  ;;  %v4710_v21 = vpop.f32.mrb[27].mxu0 }
 0x287   : > { %v6012_v28 = vpack.c.bf16 %v5080_v53, %v5079_v32  ;;  %v4980_v44 = vmul.f32 %v7007_v59, %v9066_v1  ;;  %v7009_v41 = vadd.f32 %v4710_v21, %v2819_v60 }
 0x288   : > { %6089 = vst [vmem:[%s9085_s19 + $0x58] sm:$0xff] %v6017_v31   ;;  %v5037_v2 = vadd.f32 %v9071_v46, %v4982_v37  ;;  %v4983_v7 = vmul.f32 %v7008_v6, %v9066_v1 }
 0x289   : > { %6088 = vst [vmem:[%s9085_s19 + $0x50] sm:$0xff] %v6012_v28   ;;  %v5035_v42 = vadd.f32 %v9071_v46, %v4980_v44  ;;  %v4981_v9 = vmul.f32 %v7009_v41, %v9066_v1 }
 0x28a   : > { %v5038_v35 = vadd.f32 %v9071_v46, %v4983_v7  ;;  %v6692_v14 = vpop.f32.mrb[28].mxu1  ;;  %v5085_v5 = vmax.f32 %v5037_v2, 0.0 }
 0x28b   : > { %v5036_v48 = vadd.f32 %v9071_v46, %v4981_v9  ;;  %v6948_v12 = vpop.f32.mrb[28].mxu0  ;;  %v2832_v23 = vpop.f32.mrb[29].mxu1  ;;  %v5083_v51 = vmax.f32 %v5035_v42, 0.0 }
 0x28c   : > { %v5086_v19 = vmax.f32 %v5038_v35, 0.0  ;;  %v7010_v33 = vadd.f32 %v6948_v12, %v6692_v14  ;;  %v4723_v38 = vpop.f32.mrb[29].mxu0  ;;  %v6693_v4 = vpop.f32.mrb[30].mxu1 }
 0x28d   : > { %v5084_v55 = vmax.f32 %v5036_v48, 0.0  ;;  %v7011_v3 = vadd.f32 %v4723_v38, %v2832_v23  ;;  %v6949_v20 = vpop.f32.mrb[30].mxu0  ;;  %v2835_v8 = vpop.f32.mrb[31].mxu1 }
 0x28e   : > { %v6027_v26 = vpack.c.bf16 %v5086_v19, %v5085_v5  ;;  %v4986_v34 = vmul.f32 %v7010_v33, %v9066_v1  ;;  %v7012_v61 = vadd.f32 %v6949_v20, %v6693_v4  ;;  %v4726_v49 = vpop.f32.mrb[31].mxu0 }
 0x28f   : > { %v6022_v47 = vpack.c.bf16 %v5084_v55, %v5083_v51  ;;  %v4984_v57 = vmul.f32 %v7011_v3, %v9066_v1  ;;  %v7013_v36 = vadd.f32 %v4726_v49, %v2835_v8 }
 0x290   : > { %6091 = vst [vmem:[%s9085_s19 + $0x68] sm:$0xff] %v6027_v26   ;;  %v5041_v56 = vadd.f32 %v9071_v46, %v4986_v34  ;;  %v4987_v30 = vmul.f32 %v7012_v61, %v9066_v1 }
 0x291   : > { %6090 = vst [vmem:[%s9085_s19 + $0x60] sm:$0xff] %v6022_v47   ;;  %v5039_v10 = vadd.f32 %v9071_v46, %v4984_v57  ;;  %v4985_v22 = vmul.f32 %v7013_v36, %v9066_v1 }
 0x292   : > { %v5042_v52 = vadd.f32 %v9071_v46, %v4987_v30  ;;  %v6696_v39 = vpop.f32.mrb[32].mxu1  ;;  %v5089_v54 = vmax.f32 %v5041_v56, 0.0 }
 0x293   : > { %v5040_v25 = vadd.f32 %v9071_v46, %v4985_v22  ;;  %v6952_v11 = vpop.f32.mrb[32].mxu0  ;;  %v2848_v50 = vpop.f32.mrb[33].mxu1  ;;  %v5087_v18 = vmax.f32 %v5039_v10, 0.0 }
 0x294   : > { %v5090_v15 = vmax.f32 %v5042_v52, 0.0  ;;  %v7014_v62 = vadd.f32 %v6952_v11, %v6696_v39  ;;  %v4739_v0 = vpop.f32.mrb[33].mxu0  ;;  %v6697_v27 = vpop.f32.mrb[34].mxu1 }
 0x295   : > { %v5088_v24 = vmax.f32 %v5040_v25, 0.0  ;;  %v7015_v13 = vadd.f32 %v4739_v0, %v2848_v50  ;;  %v6953_v43 = vpop.f32.mrb[34].mxu0  ;;  %v2851_v45 = vpop.f32.mrb[35].mxu1 }
 0x296   : > { %v6037_v16 = vpack.c.bf16 %v5090_v15, %v5089_v54  ;;  %v4990_v40 = vmul.f32 %v7014_v62, %v9066_v1  ;;  %v7016_v29 = vadd.f32 %v6953_v43, %v6697_v27  ;;  %v4742_v63 = vpop.f32.mrb[35].mxu0 }
 0x297   : > { %v6032_v17 = vpack.c.bf16 %v5088_v24, %v5087_v18  ;;  %v4988_v32 = vmul.f32 %v7015_v13, %v9066_v1  ;;  %v7017_v53 = vadd.f32 %v4742_v63, %v2851_v45 }
 0x298   : > { %6093 = vst [vmem:[%s9085_s19 + $0x78] sm:$0xff] %v6037_v16   ;;  %v5045_v59 = vadd.f32 %v9071_v46, %v4990_v40  ;;  %v4991_v58 = vmul.f32 %v7016_v29, %v9066_v1 }
 0x299   : > { %6092 = vst [vmem:[%s9085_s19 + $0x70] sm:$0xff] %v6032_v17   ;;  %v5043_v60 = vadd.f32 %v9071_v46, %v4988_v32  ;;  %v4989_v31 = vmul.f32 %v7017_v53, %v9066_v1 }
 0x29a   : > { %v5046_v37 = vadd.f32 %v9071_v46, %v4991_v58  ;;  %v6700_v6 = vpop.f32.mrb[36].mxu1  ;;  %v5093_v41 = vmax.f32 %v5045_v59, 0.0 }
 0x29b   : > { %v5044_v21 = vadd.f32 %v9071_v46, %v4989_v31  ;;  %v6956_v28 = vpop.f32.mrb[36].mxu0  ;;  %v2864_v44 = vpop.f32.mrb[37].mxu1  ;;  %v5091_v35 = vmax.f32 %v5043_v60, 0.0 }
 0x29c   : > { %v5094_v2 = vmax.f32 %v5046_v37, 0.0  ;;  %v7018_v7 = vadd.f32 %v6956_v28, %v6700_v6  ;;  %v4755_v42 = vpop.f32.mrb[37].mxu0  ;;  %v6701_v9 = vpop.f32.mrb[38].mxu1 }
 0x29d   : > { %v5092_v14 = vmax.f32 %v5044_v21, 0.0  ;;  %v7019_v48 = vadd.f32 %v4755_v42, %v2864_v44  ;;  %v6957_v12 = vpop.f32.mrb[38].mxu0  ;;  %v2867_v23 = vpop.f32.mrb[39].mxu1 }
 0x29e   : > { %v6047_v5 = vpack.c.bf16 %v5094_v2, %v5093_v41  ;;  %v4994_v19 = vmul.f32 %v7018_v7, %v9066_v1  ;;  %v7020_v33 = vadd.f32 %v6957_v12, %v6701_v9  ;;  %v4758_v38 = vpop.f32.mrb[39].mxu0 }
 0x29f   : > { %v6042_v4 = vpack.c.bf16 %v5092_v14, %v5091_v35  ;;  %v4992_v51 = vmul.f32 %v7019_v48, %v9066_v1  ;;  %v7021_v55 = vadd.f32 %v4758_v38, %v2867_v23 }
 0x2a0   : > { %6095 = vst [vmem:[%s9085_s19 + $0x88] sm:$0xff] %v6047_v5   ;;  %v5049_v3 = vadd.f32 %v9071_v46, %v4994_v19  ;;  %v4995_v20 = vmul.f32 %v7020_v33, %v9066_v1 }
 0x2a1   : > { %6094 = vst [vmem:[%s9085_s19 + $0x80] sm:$0xff] %v6042_v4   ;;  %v5047_v8 = vadd.f32 %v9071_v46, %v4992_v51  ;;  %v4993_v26 = vmul.f32 %v7021_v55, %v9066_v1 }
 0x2a2   : > { %v5050_v34 = vadd.f32 %v9071_v46, %v4995_v20  ;;  %v6704_v61 = vpop.f32.mrb[40].mxu1  ;;  %v5097_v36 = vmax.f32 %v5049_v3, 0.0 }
 0x2a3   : > { %v5048_v49 = vadd.f32 %v9071_v46, %v4993_v26  ;;  %v6960_v47 = vpop.f32.mrb[40].mxu0  ;;  %v2880_v57 = vpop.f32.mrb[41].mxu1  ;;  %v5095_v52 = vmax.f32 %v5047_v8, 0.0 }
 0x2a4   : > { %v5098_v56 = vmax.f32 %v5050_v34, 0.0  ;;  %v7022_v30 = vadd.f32 %v6960_v47, %v6704_v61  ;;  %v4771_v10 = vpop.f32.mrb[41].mxu0  ;;  %v6705_v22 = vpop.f32.mrb[42].mxu1 }
 0x2a5   : > { %v5096_v39 = vmax.f32 %v5048_v49, 0.0  ;;  %v7023_v25 = vadd.f32 %v4771_v10, %v2880_v57  ;;  %v6961_v11 = vpop.f32.mrb[42].mxu0  ;;  %v2883_v50 = vpop.f32.mrb[43].mxu1 }
 0x2a6   : > { %v6057_v54 = vpack.c.bf16 %v5098_v56, %v5097_v36  ;;  %v4998_v15 = vmul.f32 %v7022_v30, %v9066_v1  ;;  %v7024_v62 = vadd.f32 %v6961_v11, %v6705_v22  ;;  %v4774_v0 = vpop.f32.mrb[43].mxu0 }
 0x2a7   : > { %v6052_v27 = vpack.c.bf16 %v5096_v39, %v5095_v52  ;;  %v4996_v18 = vmul.f32 %v7023_v25, %v9066_v1  ;;  %v7025_v24 = vadd.f32 %v4774_v0, %v2883_v50 }
 0x2a8   : > { %6097 = vst [vmem:[%s9085_s19 + $0x98] sm:$0xff] %v6057_v54   ;;  %v5053_v13 = vadd.f32 %v9071_v46, %v4998_v15  ;;  %v4999_v43 = vmul.f32 %v7024_v62, %v9066_v1 }
 0x2a9   : > { %6096 = vst [vmem:[%s9085_s19 + $0x90] sm:$0xff] %v6052_v27   ;;  %v5051_v45 = vadd.f32 %v9071_v46, %v4996_v18  ;;  %v4997_v16 = vmul.f32 %v7025_v24, %v9066_v1 }
 0x2aa   : > { %v5054_v40 = vadd.f32 %v9071_v46, %v4999_v43  ;;  %v6708_v29 = vpop.f32.mrb[44].mxu1  ;;  %v5101_v53 = vmax.f32 %v5053_v13, 0.0 }
 0x2ab   : > { %v5052_v63 = vadd.f32 %v9071_v46, %v4997_v16  ;;  %v6964_v17 = vpop.f32.mrb[44].mxu0  ;;  %v2896_v32 = vpop.f32.mrb[45].mxu1  ;;  %v5099_v37 = vmax.f32 %v5051_v45, 0.0 }
 0x2ac   : > { %v5102_v59 = vmax.f32 %v5054_v40, 0.0  ;;  %v7026_v58 = vadd.f32 %v6964_v17, %v6708_v29  ;;  %v4787_v60 = vpop.f32.mrb[45].mxu0  ;;  %v6709_v31 = vpop.f32.mrb[46].mxu1 }
 0x2ad   : > { %v5100_v6 = vmax.f32 %v5052_v63, 0.0  ;;  %v7027_v21 = vadd.f32 %v4787_v60, %v2896_v32  ;;  %v6965_v28 = vpop.f32.mrb[46].mxu0  ;;  %v2899_v44 = vpop.f32.mrb[47].mxu1 }
 0x2ae   : > { %v6067_v41 = vpack.c.bf16 %v5102_v59, %v5101_v53  ;;  %v5002_v2 = vmul.f32 %v7026_v58, %v9066_v1  ;;  %v7028_v7 = vadd.f32 %v6965_v28, %v6709_v31  ;;  %v4790_v42 = vpop.f32.mrb[47].mxu0 }
 0x2af   : > { %v6062_v9 = vpack.c.bf16 %v5100_v6, %v5099_v37  ;;  %v5000_v35 = vmul.f32 %v7027_v21, %v9066_v1  ;;  %v7029_v14 = vadd.f32 %v4790_v42, %v2899_v44 }
 0x2b0   : > { %6099 = vst [vmem:[%s9085_s19 + $0xa8] sm:$0xff] %v6067_v41   ;;  %v5057_v48 = vadd.f32 %v9071_v46, %v5002_v2  ;;  %v5003_v12 = vmul.f32 %v7028_v7, %v9066_v1 }
 0x2b1   : > { %6098 = vst [vmem:[%s9085_s19 + $0xa0] sm:$0xff] %v6062_v9   ;;  %v5055_v23 = vadd.f32 %v9071_v46, %v5000_v35  ;;  %v5001_v5 = vmul.f32 %v7029_v14, %v9066_v1 }
 0x2b2   : > { %v5058_v19 = vadd.f32 %v9071_v46, %v5003_v12  ;;  %v5105_v38 = vmax.f32 %v5057_v48, 0.0 }
 0x2b3   : > { %v5056_v33 = vadd.f32 %v9071_v46, %v5001_v5  ;;  %v5103_v51 = vmax.f32 %v5055_v23, 0.0 }
 0x2b4   : > { %v5106_v4 = vmax.f32 %v5058_v19, 0.0 }
 0x2b5   : > { %v5104_v55 = vmax.f32 %v5056_v33, 0.0 }
 0x2b6   : > { %v6077_v3 = vpack.c.bf16 %v5106_v4, %v5105_v38 }
 0x2b7   : > { %v6072_v20 = vpack.c.bf16 %v5104_v55, %v5103_v51 }
 0x2b8   : > { %6101 = vst [vmem:[%s9085_s19 + $0xb8] sm:$0xff] %v6077_v3  }
 0x2b9   : > { %6100 = vst [vmem:[%s9085_s19 + $0xb0] sm:$0xff] %v6072_v20  }
 0x2ba PF: > { %s14_s17 = sadd.s32 1, %s7713_s17   ;;  %s9362_s15 = smov %s7709_s16 }
 0x2bb   : > { %p11_p5 = scmp.ge.s32.totalorder %s14_s17, 4   ;;  %s9363_s16 = smov %s9365_s18 }
 0x2bd   :  { %13 = sbr.rel (!%p11_p5) target bundleno = 2 (0x2), region = 85 }

// kernel: aspp_forward.5
= control target key start
LH: loop header
LB: loop body
LE: loop exit
PB: predicated region body
PF: predicated region fallthrough
CT: control target
= control target key end

     0   :  { %s3234_s30 = smov 0   ;;  %s3236_s10 = smov 0   ;;  %s3786_s0 = inlined_call_operand.vmem [shape: bf16[2,256,128], index: 0, kind: input, shape index: {}]   ;;  %s3787_s1 = inlined_call_operand.vmem [shape: bf16[2,256,128], index: 1, kind: input, shape index: {}]   ;;  %s3788_s2 = inlined_call_operand.vmem [shape: bf16[2,256,128], index: 2, kind: input, shape index: {}]   ;;  %s3789_s3 = inlined_call_operand.vmem [shape: f32[2,1,128], index: 3, kind: input, shape index: {}]   ;;  %s3790_s4 = inlined_call_operand.vmem [shape: bf16[128,128], index: 4, kind: input, shape index: {}]   ;;  %s3791_s5 = inlined_call_operand.vmem [shape: bf16[128,128], index: 5, kind: input, shape index: {}]   ;;  %s3792_s6 = inlined_call_operand.vmem [shape: bf16[2,128,128], index: 6, kind: input, shape index: {}]   ;;  %s3793_s7 = inlined_call_operand.vmem [shape: f32[1,128], index: 7, kind: input, shape index: {}]   ;;  %s3794_s8 = inlined_call_operand.vmem [shape: f32[1,128], index: 8, kind: input, shape index: {}]   ;;  %s3795_s9 = inlined_call_operand.vmem [shape: bf16[2,256,128], index: 9, kind: output, shape index: {}]  }
   0x1   :  { %s3238_s11 = smov 0  }
   0x2 LB: > { %s31_s12 = sadd.s32 1, %s3177_s10  ;;  %p2381_p0 = scmp.ge.s32.totalorder %s3181_s11, 1  ;;  %s3181_s11 = sphi %s3238_s11, %s19_s11   ;;  %s3177_s10 = sphi %s3236_s10, %s3798_s10   ;;  %s3173_s30 = sphi %s3234_s30, %s3797_s30  }
   0x3   : > { %p33_p1 = scmp.ge.s32.totalorder %s31_s12, 2  ;;  %p350_p2 = scmp.lt.s32.totalorder %s3181_s11, 3 }
   0x5   : > { %s3800_s12 = smov (%p33_p1, %s31_s12), 0  ;;  %p351_p3 = pnand %p2381_p0, %p350_p2 }
   0x6   : > { %v3079_v0 = vld [vmem:[%s3791_s5] sm:$0xff] (!%p351_p3)   ;;  %v3081_v2 = vld [vmem:[%s3791_s5 + $0x8] sm:$0xff] (!%p351_p3)   ;;  %p416_p4 = scmp.lt.s32.totalorder (!%p351_p3), %s3173_s30, 1  ;;  %v3083_v4 = vld [vmem:[%s3791_s5 + $0x10] sm:$0xff] (!%p351_p3)   ;;  %v3183_v14 = vmov (!%p351_p3), 0  }
   0x7   : > { %354 = sbr.rel (%p351_p3) target bundleno = 388 (0x184), region = 56  ;;  %v3080_v1 = vld [vmem:[%s3792_s6] sm:$0xff] (!%p351_p3)   ;;  %2766 = vmatprep.subr.bf16.mxu1 (!%p351_p3), %v3079_v0  ;;  %v3082_v3 = vld [vmem:[%s3792_s6 + $0x8] sm:$0xff] (!%p351_p3)   ;;  %v3084_v5 = vld [vmem:[%s3792_s6 + $0x10] sm:$0xff] (!%p351_p3)  }
   0x8   : > { %2862 = vmatprep.subr.bf16.mxu0 (!%p351_p3), %v3080_v1  ;;  %2767 = vmatpush3.bf16.msra.mxu1 (!%p351_p3), %v3079_v0  ;;  %v3085_v6 = vld [vmem:[%s3791_s5 + $0x18] sm:$0xff] (!%p351_p3)   ;;  %v3087_v8 = vld [vmem:[%s3791_s5 + $0x20] sm:$0xff] (!%p351_p3)   ;;  %v3089_v10 = vld [vmem:[%s3791_s5 + $0x28] sm:$0xff] (!%p351_p3)  }
   0x9   : > { %2863 = vmatpush3.bf16.msra.mxu0 (!%p351_p3), %v3080_v1  ;;  %2768 = vmatprep.subr.bf16.mxu1 (!%p351_p3), %v3081_v2  ;;  %v3086_v7 = vld [vmem:[%s3792_s6 + $0x18] sm:$0xff] (!%p351_p3)   ;;  %v3088_v9 = vld [vmem:[%s3792_s6 + $0x20] sm:$0xff] (!%p351_p3)   ;;  %v3090_v11 = vld [vmem:[%s3792_s6 + $0x28] sm:$0xff] (!%p351_p3)  }
   0xa   : > { %2864 = vmatprep.subr.bf16.mxu0 (!%p351_p3), %v3082_v3  ;;  %v3091_v23 = vld [vmem:[%s3791_s5 + $0x30] sm:$0xff] (!%p351_p3)   ;;  %v3093_v28 = vld [vmem:[%s3791_s5 + $0x38] sm:$0xff] (!%p351_p3)   ;;  %v3097_v37 = vld [vmem:[%s3790_s4] sm:$0xff] (!%p351_p3)  }
   0xb   : > { %v3092_v24 = vld [vmem:[%s3792_s6 + $0x30] sm:$0xff] (!%p351_p3)   ;;  %v3094_v31 = vld [vmem:[%s3792_s6 + $0x38] sm:$0xff] (!%p351_p3)   ;;  %v3099_v43 = vld [vmem:[%s3792_s6 + $0x40] sm:$0xff] (!%p351_p3)  }
   0xc   : > { %2769 = vmatpush3.bf16.msra.mxu1 (!%p351_p3), %v3081_v2  ;;  %v3101_v48 = vld [vmem:[%s3790_s4 + $0x8] sm:$0xff] (!%p351_p3)   ;;  %v3105_v61 = vld [vmem:[%s3790_s4 + $0x10] sm:$0xff] (!%p351_p3)  }
   0xd   : > { %2865 = vmatpush3.bf16.msra.mxu0 (!%p351_p3), %v3082_v3  ;;  %2770 = vmatprep.subr.bf16.mxu1 (!%p351_p3), %v3083_v4  ;;  %v3103_v52 = vld [vmem:[%s3792_s6 + $0x48] sm:$0xff] (!%p351_p3)   ;;  %v3107_v62 = vld [vmem:[%s3792_s6 + $0x50] sm:$0xff] (!%p351_p3)  }
   0xe   : > { %s3802_s30 = smov (!%p416_p4, %s3173_s30), 1  ;;  %2866 = vmatprep.subr.bf16.mxu0 %v3084_v5 }
   0xf   : > { %s3279_s29 = sshll.u32 %s3802_s30, 7  ;;  %s447_s28 = scalar_lea.vmem %s3789_s3, %s3802_s30 }
  0x10   : > { %2771 = vmatpush3.bf16.msra.mxu1 %v3083_v4  ;;  %s3291_s19 = scalar_lea.vmem %s3786_s0, %s3279_s29  ;;  %s3300_s24 = scalar_lea.vmem %s3787_s1, %s3279_s29 }
  0x11   : > { %2867 = vmatpush3.bf16.msra.mxu0 %v3084_v5  ;;  %2772 = vmatprep.subr.bf16.mxu1 %v3085_v6  ;;  %v3306_v12 = vld [vmem:[%s3291_s19] sm:$0xf]  ;;  %v3309_v13 = vld [vmem:[%s3291_s19 + $0x4] sm:$0xf]  ;;  %v3317_v18 = vld [vmem:[%s3291_s19 + $0x8] sm:$0xf]  ;;  %s3543_s23 = scalar_lea.vmem %s3788_s2, %s3279_s29  ;;  %s3676_s18 = scalar_lea.vmem %s3795_s9, %s3279_s29 }
  0x12   : > { %2868 = vmatprep.subr.bf16.mxu0 %v3086_v7  ;;  %v507_v15 = vmax.bf16 %v3183_v14, %v3306_v12  ;;  %v508_v16 = vmax.bf16 %v3183_v14, %v3309_v13  ;;  %v3095_v17 = vld [vmem:[%s3300_s24] sm:$0xff]   ;;  %v2414_v19 = vcombine.low %v3306_v12, %v3309_v13  ;;  %v3322_v20 = vld [vmem:[%s3291_s19 + $0xc] sm:$0xf]  ;;  %v3333_v25 = vld [vmem:[%s3291_s19 + $0x10] sm:$0xf]  ;;  %v509_v33 = vmax.bf16 %v3183_v14, %v3317_v18 }
  0x13   : > { %2878 = vmatprep.mubr.bf16.mxu0 %v3095_v17  ;;  %v2415_v22 = vcombine.low %v3317_v18, %v3322_v20  ;;  %v3336_v26 = vld [vmem:[%s3291_s19 + $0x14] sm:$0xf]  ;;  %v3344_v29 = vld [vmem:[%s3291_s19 + $0x18] sm:$0xf]  ;;  %v3347_v30 = vld [vmem:[%s3291_s19 + $0x1c] sm:$0xf]  ;;  %v510_v34 = vmax.bf16 %v3183_v14, %v3322_v20  ;;  %v511_v38 = vmax.bf16 %v3183_v14, %v3333_v25 }
  0x14   : > { %2773 = vmatpush3.bf16.msra.mxu1 %v3085_v6  ;;  %v2390_v21 = vcombine.low %v507_v15, %v508_v16  ;;  %v2416_v27 = vcombine.low %v3333_v25, %v3336_v26  ;;  %v2417_v32 = vcombine.low %v3344_v29, %v3347_v30  ;;  %v3359_v35 = vld [vmem:[%s3291_s19 + $0x20] sm:$0xf]  ;;  %v3362_v36 = vld [vmem:[%s3291_s19 + $0x24] sm:$0xf]  ;;  %v512_v39 = vmax.bf16 %v3183_v14, %v3336_v26  ;;  %v3372_v40 = vld [vmem:[%s3291_s19 + $0x28] sm:$0xf] }
  0x15   : > { %2869 = vmatpush3.bf16.msra.mxu0 %v3086_v7  ;;  %2774 = vmatprep.subr.bf16.mxu1 %v3087_v8  ;;  %v3375_v41 = vld [vmem:[%s3291_s19 + $0x2c] sm:$0xf]  ;;  %v2418_v42 = vcombine.low %v3359_v35, %v3362_v36  ;;  %v2391_v45 = vcombine.low %v509_v33, %v510_v34  ;;  %v3100_v47 = vld [vmem:[%s3300_s24 + $0x10] sm:$0xff]   ;;  %v3399_v53 = vld [vmem:[%s3291_s19 + $0x38] sm:$0xf]  ;;  %v513_v55 = vmax.bf16 %v3183_v14, %v3344_v29 }
  0x16   : > { %2870 = vmatprep.subr.bf16.mxu0 %v3088_v9  ;;  %2782 = vmatprep.mubr.bf16.mxu1 %v2390_v21  ;;  %v2419_v44 = vcombine.low %v3372_v40, %v3375_v41  ;;  %v3098_v46 = vld [vmem:[%s3300_s24 + $0x8] sm:$0xff]   ;;  %v2392_v49 = vcombine.low %v511_v38, %v512_v39  ;;  %v3390_v50 = vld [vmem:[%s3291_s19 + $0x30] sm:$0xf]  ;;  %v3393_v51 = vld [vmem:[%s3291_s19 + $0x34] sm:$0xf]  ;;  %v514_v56 = vmax.bf16 %v3183_v14, %v3347_v30 }
  0x17   : > { %v2420_v54 = vcombine.low %v3390_v50, %v3393_v51  ;;  %v3408_v57 = vld [vmem:[%s3291_s19 + $0x3c] sm:$0xf]  ;;  %v515_v58 = vmax.bf16 %v3183_v14, %v3359_v35  ;;  %v516_v59 = vmax.bf16 %v3183_v14, %v3362_v36  ;;  %v3423_v63 = vld [vmem:[%s3291_s19 + $0x40] sm:$0xf]  ;;  %v3426_v0 = vld [vmem:[%s3291_s19 + $0x44] sm:$0xf]  ;;  %v519_v17 = vmax.bf16 %v3183_v14, %v3390_v50 }
  0x18   : > { %2775 = vmatpush3.bf16.msra.mxu1 %v3087_v8  ;;  %v2421_v60 = vcombine.low %v3399_v53, %v3408_v57  ;;  %v2393_v1 = vcombine.low %v513_v55, %v514_v56  ;;  %v3102_v2 = vld [vmem:[%s3300_s24 + $0x18] sm:$0xff]   ;;  %v2422_v3 = vcombine.low %v3423_v63, %v3426_v0  ;;  %v3104_v5 = vld [vmem:[%s3300_s24 + $0x20] sm:$0xff]   ;;  %v3433_v6 = vld [vmem:[%s3291_s19 + $0x48] sm:$0xf]  ;;  %v520_v21 = vmax.bf16 %v3183_v14, %v3393_v51 }
  0x19   : > { %2871 = vmatpush3.bf16.msra.mxu0 %v3088_v9  ;;  %2776 = vmatprep.subr.bf16.mxu1 %v3089_v10  ;;  %v2394_v4 = vcombine.low %v515_v58, %v516_v59  ;;  %v3436_v7 = vld [vmem:[%s3291_s19 + $0x4c] sm:$0xf]  ;;  %v3109_v8 = vld [vmem:[%s3790_s4 + $0x18] sm:$0xff]   ;;  %v3451_v16 = vld [vmem:[%s3291_s19 + $0x50] sm:$0xf]  ;;  %v521_v56 = vmax.bf16 %v3183_v14, %v3399_v53  ;;  %v522_v58 = vmax.bf16 %v3183_v14, %v3408_v57 }
  0x1a   : > { %2872 = vmatprep.subr.bf16.mxu0 %v3090_v11  ;;  %v2423_v9 = vcombine.low %v3433_v6, %v3436_v7  ;;  %v3111_v15 = vld [vmem:[%s3792_s6 + $0x58] sm:$0xff]   ;;  %v3106_v33 = vld [vmem:[%s3300_s24 + $0x28] sm:$0xff]   ;;  %v3113_v34 = vld [vmem:[%s3790_s4 + $0x20] sm:$0xff]  }
  0x1b   : > { %v3108_v39 = vld [vmem:[%s3300_s24 + $0x30] sm:$0xff]   ;;  %v3500_v59 = vld [vmem:[%s3291_s19 + $0x6c] sm:$0xf]  ;;  %v3142_v18 = vld [vmem:[%s3543_s23 + $0x38] sm:$0xff]  }
  0x1c   : > { %2777 = vmatpush3.bf16.msra.mxu1 %v3089_v10  ;;  %v517_v10 = vmax.bf16 %v3183_v14, %v3372_v40  ;;  %v3138_v12 = vld [vmem:[%s3543_s23 + $0x28] sm:$0xff]   ;;  %v3140_v13 = vld [vmem:[%s3543_s23 + $0x30] sm:$0xff]   ;;  %v3150_v25 = vld [vmem:[%s3543_s23 + $0x58] sm:$0xff]  }
  0x1d   : > { %2873 = vmatpush3.bf16.msra.mxu0 %v3090_v11  ;;  %2778 = vmatprep.subr.bf16.mxu1 %v3091_v23  ;;  %v518_v11 = vmax.bf16 %v3183_v14, %v3375_v41  ;;  %v3146_v20 = vld [vmem:[%s3543_s23 + $0x48] sm:$0xff]   ;;  %v3152_v26 = vld [vmem:[%s3543_s23 + $0x60] sm:$0xff]   ;;  %v3156_v29 = vld [vmem:[%s3543_s23 + $0x70] sm:$0xff]  }
  0x1e   : > { %2874 = vmatprep.subr.bf16.mxu0 %v3092_v24  ;;  %v3158_v30 = vld [vmem:[%s3543_s23 + $0x78] sm:$0xff]   ;;  %v3647_v40 = vld [vmem:[%s447_s28] ss:$0 sm:$0xff] }
  0x1f   : > { %v2395_v38 = vcombine.low %v517_v10, %v518_v11  ;;  %v2397_v10 = vcombine.low %v521_v56, %v522_v58  ;;  %v3123_v11 = vld [vmem:[%s3792_s6 + $0x70] sm:$0xff]   ;;  %v526_v56 = vmax.bf16 %v3183_v14, %v3436_v7  ;;  %v3127_v58 = vld [vmem:[%s3792_s6 + $0x78] sm:$0xff]   ;;  %v3652_v51 = vld [vmem:[%s3793_s7] ss:$0 sm:$0xff] }
  0x20   : > { %2779 = vmatpush3.bf16.msra.mxu1 %v3091_v23  ;;  %v3458_v23 = vld [vmem:[%s3291_s19 + $0x54] sm:$0xf] }
  0x21   : > { %2875 = vmatpush3.bf16.msra.mxu0 %v3092_v24  ;;  %2780 = vmatprep.subr.bf16.mxu1 %v3093_v28  ;;  %v3461_v24 = vld [vmem:[%s3291_s19 + $0x58] sm:$0xf] }
  0x22   : > { %2876 = vmatprep.subr.bf16.mxu0 %v3094_v31 }
  0x24   : > { %2781 = vmatpush3.bf16.msra.mxu1 %v3093_v28  ;;  %v3464_v28 = vld [vmem:[%s3291_s19 + $0x5c] sm:$0xf] }
  0x25   : > { %2877 = vmatpush3.bf16.msra.mxu0 %v3094_v31  ;;  %2814 = vmatprep.subr.bf16.mxu1 %v3097_v37  ;;  %v2424_v31 = vcombine.low %v3451_v16, %v3458_v23 }
  0x26   : > { %2910 = vmatprep.subr.bf16.mxu0 %v3099_v43 }
  0x27   : > { %2783 = vmatmul.mubr.bf16.vlgmr.msra.gmra.mrb[0].mxu1 %v2391_v45  ;;  %v2396_v45 = vcombine.low %v519_v17, %v520_v21  ;;  %v3524_v21 = vld [vmem:[%s3291_s19 + $0x78] sm:$0xf] }
  0x28   : > { %2879 = vmatmul.mubr.bf16.vlgmr.msra.gmra.mrb[0].mxu0 %v3098_v46  ;;  %2815 = vmatpush3.bf16.msra.mxu1 %v3097_v37  ;;  %v2425_v37 = vcombine.low %v3461_v24, %v3464_v28  ;;  %v3117_v46 = vld [vmem:[%s3790_s4 + $0x28] sm:$0xff]  }
  0x29   : > { %2911 = vmatpush3.bf16.msra.mxu0 %v3099_v43  ;;  %2786 = vmatprep.mubr.bf16.mxu1 %v2392_v49  ;;  %v3115_v43 = vld [vmem:[%s3792_s6 + $0x60] sm:$0xff]   ;;  %v3119_v49 = vld [vmem:[%s3792_s6 + $0x68] sm:$0xff]  }
  0x2a   : > { %2882 = vmatprep.mubr.bf16.mxu0 %v3100_v47  ;;  %2816 = vmatprep.subr.bf16.mxu1 %v3101_v48  ;;  %v3482_v47 = vld [vmem:[%s3291_s19 + $0x60] sm:$0xf] }
  0x2b   : > { %2912 = vmatprep.subr.bf16.mxu0 %v3103_v52 }
  0x2c   : > { %2817 = vmatpush3.bf16.msra.mxu1 %v3101_v48  ;;  %v3485_v48 = vld [vmem:[%s3291_s19 + $0x64] sm:$0xf] }
  0x2d   : > { %2913 = vmatpush3.bf16.msra.mxu0 %v3103_v52  ;;  %2818 = vmatprep.subr.bf16.mxu1 %v3105_v61  ;;  %v3491_v52 = vld [vmem:[%s3291_s19 + $0x68] sm:$0xf]  ;;  %v2426_v55 = vcombine.low %v3482_v47, %v3485_v48 }
  0x2e   : > { %2914 = vmatprep.subr.bf16.mxu0 %v3107_v62 }
  0x2f   : > { %2787 = vmatmul.mubr.bf16.gmra.mrb[4].mxu1 %v2393_v1  ;;  %v2427_v1 = vcombine.low %v3491_v52, %v3500_v59 }
  0x30   : > { %2883 = vmatmul.mubr.bf16.gmra.mrb[4].mxu0 %v3102_v2  ;;  %2790 = vmatprep.mubr.bf16.mxu1 %v2394_v4  ;;  %v3110_v2 = vld [vmem:[%s3300_s24 + $0x38] sm:$0xff]   ;;  %v3121_v4 = vld [vmem:[%s3790_s4 + $0x30] sm:$0xff]  }
  0x31   : > { %2886 = vmatprep.mubr.bf16.mxu0 %v3104_v5  ;;  %2819 = vmatpush3.bf16.msra.mxu1 %v3105_v61  ;;  %v523_v61 = vmax.bf16 %v3183_v14, %v3423_v63  ;;  %v3513_v5 = vld [vmem:[%s3291_s19 + $0x70] sm:$0xf] }
  0x32   : > { %2915 = vmatpush3.bf16.msra.mxu0 %v3107_v62  ;;  %2820 = vmatprep.subr.bf16.mxu1 %v3109_v8  ;;  %v524_v62 = vmax.bf16 %v3183_v14, %v3426_v0 }
  0x33   : > { %2916 = vmatprep.subr.bf16.mxu0 %v3111_v15 }
  0x34   : > { %v2398_v17 = vcombine.low %v523_v61, %v524_v62  ;;  %v527_v61 = vmax.bf16 %v3183_v14, %v3451_v16  ;;  %v528_v62 = vmax.bf16 %v3183_v14, %v3458_v23 }
  0x35   : > { %2821 = vmatpush3.bf16.msra.mxu1 %v3109_v8  ;;  %v3516_v8 = vld [vmem:[%s3291_s19 + $0x74] sm:$0xf] }
  0x36   : > { %2917 = vmatpush3.bf16.msra.mxu0 %v3111_v15  ;;  %2822 = vmatprep.subr.bf16.mxu1 %v3113_v34  ;;  %v2428_v15 = vcombine.low %v3513_v5, %v3516_v8 }
  0x37   : > { %2791 = vmatmul.mubr.bf16.gmra.mrb[8].mxu1 %v2395_v38  ;;  %2918 = vmatprep.subr.bf16.mxu0 %v3115_v43  ;;  %v537_v38 = vmax.bf16 %v3183_v14, %v3524_v21 }
  0x38   : > { %2887 = vmatmul.mubr.bf16.gmra.mrb[8].mxu0 %v3106_v33  ;;  %2794 = vmatprep.mubr.bf16.mxu1 %v2396_v45  ;;  %v3527_v33 = vld [vmem:[%s3291_s19 + $0x7c] sm:$0xf] }
  0x39   : > { %2890 = vmatprep.mubr.bf16.mxu0 %v3108_v39  ;;  %2823 = vmatpush3.bf16.msra.mxu1 %v3113_v34  ;;  %v3112_v34 = vld [vmem:[%s3300_s24 + $0x40] sm:$0xff]   ;;  %v538_v39 = vmax.bf16 %v3183_v14, %v3527_v33  ;;  %v3125_v45 = vld [vmem:[%s3790_s4 + $0x38] sm:$0xff]  }
  0x3a   : > { %2919 = vmatpush3.bf16.msra.mxu0 %v3115_v43  ;;  %2824 = vmatprep.subr.bf16.mxu1 %v3117_v46  ;;  %v3116_v43 = vld [vmem:[%s3300_s24 + $0x50] sm:$0xff]  }
  0x3b   : > { %2920 = vmatprep.subr.bf16.mxu0 %v3119_v49 }
  0x3d   : > { %2825 = vmatpush3.bf16.msra.mxu1 %v3117_v46  ;;  %v525_v46 = vmax.bf16 %v3183_v14, %v3433_v6 }
  0x3e   : > { %2921 = vmatpush3.bf16.msra.mxu0 %v3119_v49  ;;  %2826 = vmatprep.subr.bf16.mxu1 %v3121_v4  ;;  %v2405_v49 = vcombine.low %v537_v38, %v538_v39  ;;  %v3114_v38 = vld [vmem:[%s3300_s24 + $0x48] sm:$0xff]   ;;  %v2400_v39 = vcombine.low %v527_v61, %v528_v62  ;;  %v534_v61 = vmax.bf16 %v3183_v14, %v3500_v59 }
  0x3f   : > { %2795 = vmatmul.mubr.bf16.gmra.mrb[12].mxu1 %v2397_v10  ;;  %2922 = vmatprep.subr.bf16.mxu0 %v3123_v11  ;;  %v2399_v10 = vcombine.low %v525_v46, %v526_v56  ;;  %v3120_v56 = vld [vmem:[%s3300_s24 + $0x60] sm:$0xff]   ;;  %v535_v62 = vmax.bf16 %v3183_v14, %v3513_v5 }
  0x40   : > { %2891 = vmatmul.mubr.bf16.gmra.mrb[12].mxu0 %v3110_v2  ;;  %2798 = vmatprep.mubr.bf16.mxu1 %v2398_v17  ;;  %v529_v2 = vmax.bf16 %v3183_v14, %v3461_v24  ;;  %v530_v17 = vmax.bf16 %v3183_v14, %v3464_v28 }
  0x41   : > { %2894 = vmatprep.mubr.bf16.mxu0 %v3112_v34  ;;  %2827 = vmatpush3.bf16.msra.mxu1 %v3121_v4  ;;  %v531_v4 = vmax.bf16 %v3183_v14, %v3482_v47 }
  0x42   : > { %2923 = vmatpush3.bf16.msra.mxu0 %v3123_v11  ;;  %2828 = vmatprep.subr.bf16.mxu1 %v3125_v45  ;;  %v532_v11 = vmax.bf16 %v3183_v14, %v3485_v48  ;;  %v2401_v34 = vcombine.low %v529_v2, %v530_v17  ;;  %v3124_v2 = vld [vmem:[%s3300_s24 + $0x70] sm:$0xff]   ;;  %v3126_v17 = vld [vmem:[%s3300_s24 + $0x78] sm:$0xff]  }
  0x43   : > { %2924 = vmatprep.subr.bf16.mxu0 %v3127_v58 }
  0x44   : > { %v2402_v46 = vcombine.low %v531_v4, %v532_v11  ;;  %v3129_v4 = vld [vmem:[%s3543_s23] sm:$0xff]   ;;  %v3132_v11 = vld [vmem:[%s3543_s23 + $0x10] sm:$0xff]  }
  0x45   : > { %2829 = vmatpush3.bf16.msra.mxu1 %v3125_v45  ;;  %v3118_v45 = vld [vmem:[%s3300_s24 + $0x58] sm:$0xff]  }
  0x46   : > { %2925 = vmatpush3.bf16.msra.mxu0 %v3127_v58  ;;  %v533_v58 = vmax.bf16 %v3183_v14, %v3491_v52 }
  0x47   : > { %2799 = vmatmul.mubr.bf16.gmra.mrb[16].mxu1 %v2399_v10 }
  0x48   : > { %2895 = vmatmul.mubr.bf16.gmra.mrb[16].mxu0 %v3114_v38  ;;  %2802 = vmatprep.mubr.bf16.mxu1 %v2400_v39  ;;  %v2403_v10 = vcombine.low %v533_v58, %v534_v61  ;;  %v3122_v38 = vld [vmem:[%s3300_s24 + $0x68] sm:$0xff]  }
  0x49   : > { %2898 = vmatprep.mubr.bf16.mxu0 %v3116_v43  ;;  %v536_v43 = vmax.bf16 %v3183_v14, %v3516_v8  ;;  %v3130_v14 = vld [vmem:[%s3543_s23 + $0x8] sm:$0xff]  }
  0x4b   : > { %v2404_v39 = vcombine.low %v535_v62, %v536_v43 }
  0x4f   : > { %2803 = vmatmul.mubr.bf16.gmra.mrb[20].mxu1 %v2401_v34  ;;  %v3136_v34 = vld [vmem:[%s3543_s23 + $0x20] sm:$0xff]  }
  0x50   : > { %2899 = vmatmul.mubr.bf16.gmra.mrb[20].mxu0 %v3118_v45  ;;  %2806 = vmatprep.mubr.bf16.mxu1 %v2402_v46 }
  0x51   : > { %2902 = vmatprep.mubr.bf16.mxu0 %v3120_v56 }
  0x57   : > { %2807 = vmatmul.mubr.bf16.gmra.mrb[24].mxu1 %v2403_v10 }
  0x58   : > { %2903 = vmatmul.mubr.bf16.gmra.mrb[24].mxu0 %v3122_v38  ;;  %2810 = vmatprep.mubr.bf16.mxu1 %v2404_v39 }
  0x59   : > { %2906 = vmatprep.mubr.bf16.mxu0 %v3124_v2 }
  0x5f   : > { %2811 = vmatmul.mubr.bf16.gmra.mrb[28].mxu1 %v2405_v49  ;;  %v3134_v49 = vld [vmem:[%s3543_s23 + $0x18] sm:$0xff]  }
  0x60   : > { %2907 = vmatmul.mubr.bf16.gmra.mrb[28].mxu0 %v3126_v17  ;;  %2830 = vmatprep.mubr.bf16.mxu1 %v2414_v19  ;;  %v3144_v19 = vld [vmem:[%s3543_s23 + $0x40] sm:$0xff]  }
  0x61   : > { %2926 = vmatprep.mubr.bf16.mxu0 %v3129_v4 }
  0x67   : > { %2831 = vmatmul.mubr.bf16.vlgmr.msra.gmra.mrb[0].mxu1 %v2415_v22  ;;  %v3148_v22 = vld [vmem:[%s3543_s23 + $0x50] sm:$0xff]  }
  0x68   : > { %2927 = vmatmul.mubr.bf16.vlgmr.msra.gmra.mrb[0].mxu0 %v3130_v14  ;;  %2834 = vmatprep.mubr.bf16.mxu1 %v2416_v27  ;;  %v3154_v27 = vld [vmem:[%s3543_s23 + $0x68] sm:$0xff]  }
  0x69   : > { %2930 = vmatprep.mubr.bf16.mxu0 %v3132_v11 }
  0x6f   : > { %2835 = vmatmul.mubr.bf16.gmra.mrb[4].mxu1 %v2417_v32  ;;  %v3796_v32 = vcombine.low %v3524_v21, %v3527_v33 }
  0x70   : > { %2931 = vmatmul.mubr.bf16.gmra.mrb[4].mxu0 %v3134_v49  ;;  %2838 = vmatprep.mubr.bf16.mxu1 %v2418_v42 }
  0x71   : > { %2934 = vmatprep.mubr.bf16.mxu0 %v3136_v34 }
  0x77   : > { %2839 = vmatmul.mubr.bf16.gmra.mrb[8].mxu1 %v2419_v44 }
  0x78   : > { %2935 = vmatmul.mubr.bf16.gmra.mrb[8].mxu0 %v3138_v12  ;;  %2842 = vmatprep.mubr.bf16.mxu1 %v2420_v54 }
  0x79   : > { %2938 = vmatprep.mubr.bf16.mxu0 %v3140_v13 }
  0x7f   : > { %2843 = vmatmul.mubr.bf16.gmra.mrb[12].mxu1 %v2421_v60 }
  0x80   : > { %2939 = vmatmul.mubr.bf16.gmra.mrb[12].mxu0 %v3142_v18  ;;  %2846 = vmatprep.mubr.bf16.mxu1 %v2422_v3  ;;  %v3658_v3 = vld [vmem:[%s3794_s8] ss:$0 sm:$0xff] }
  0x81   : > { %2942 = vmatprep.mubr.bf16.mxu0 %v3144_v19 }
  0x87   : > { %2847 = vmatmul.mubr.bf16.gmra.mrb[16].mxu1 %v2423_v9 }
  0x88   : > { %2943 = vmatmul.mubr.bf16.gmra.mrb[16].mxu0 %v3146_v20  ;;  %2850 = vmatprep.mubr.bf16.mxu1 %v2424_v31 }
  0x89   : > { %2946 = vmatprep.mubr.bf16.mxu0 %v3148_v22 }
  0x8f   : > { %2851 = vmatmul.mubr.bf16.gmra.mrb[20].mxu1 %v2425_v37 }
  0x90   : > { %2947 = vmatmul.mubr.bf16.gmra.mrb[20].mxu0 %v3150_v25  ;;  %2854 = vmatprep.mubr.bf16.mxu1 %v2426_v55 }
  0x91   : > { %2950 = vmatprep.mubr.bf16.mxu0 %v3152_v26 }
  0x97   : > { %2855 = vmatmul.mubr.bf16.gmra.mrb[24].mxu1 %v2427_v1 }
  0x98   : > { %2951 = vmatmul.mubr.bf16.gmra.mrb[24].mxu0 %v3154_v27  ;;  %2858 = vmatprep.mubr.bf16.mxu1 %v2428_v15 }
  0x99   : > { %2954 = vmatprep.mubr.bf16.mxu0 %v3156_v29 }
  0x9f   : > { %2859 = vmatmul.mubr.bf16.gmra.mrb[28].mxu1 %v3796_v32 }
  0xa0   : > { %2955 = vmatmul.mubr.bf16.gmra.mrb[28].mxu0 %v3158_v30 }
 0x13a   : > { %v2832_v35 = vpop.f32.mrb[0].mxu1 }
 0x13b   : > { %v2928_v36 = vpop.f32.mrb[0].mxu0  ;;  %v1038_v41 = vpop.f32.mrb[1].mxu1 }
 0x13c   : > { %v2958_v42 = vadd.f32 %v2928_v36, %v2832_v35  ;;  %v1777_v44 = vpop.f32.mrb[1].mxu0  ;;  %v2833_v50 = vpop.f32.mrb[2].mxu1 }
 0x13d   : > { %v2959_v53 = vadd.f32 %v1777_v44, %v1038_v41  ;;  %v2929_v54 = vpop.f32.mrb[2].mxu0  ;;  %v1041_v57 = vpop.f32.mrb[3].mxu1 }
 0x13e   : > { %v1945_v60 = vadd.f32 %v2958_v42, %v3647_v40  ;;  %v2960_v63 = vadd.f32 %v2929_v54, %v2833_v50  ;;  %v1780_v0 = vpop.f32.mrb[3].mxu0 }
 0x13f   : > { %v1943_v6 = vadd.f32 %v2959_v53, %v3647_v40  ;;  %v2961_v7 = vadd.f32 %v1780_v0, %v1041_v57 }
 0x140   : > { %v1984_v9 = vmul.f32 %v3652_v51, %v1945_v60  ;;  %v1946_v16 = vadd.f32 %v2960_v63, %v3647_v40 }
 0x141   : > { %v1982_v23 = vmul.f32 %v3652_v51, %v1943_v6  ;;  %v1944_v24 = vadd.f32 %v2961_v7, %v3647_v40 }
 0x142   : > { %v2023_v28 = vadd.f32 %v3658_v3, %v1984_v9  ;;  %v1985_v31 = vmul.f32 %v3652_v51, %v1946_v16  ;;  %v2836_v37 = vpop.f32.mrb[4].mxu1 }
 0x143   : > { %v2021_v47 = vadd.f32 %v3658_v3, %v1982_v23  ;;  %v1983_v48 = vmul.f32 %v3652_v51, %v1944_v24  ;;  %v2932_v52 = vpop.f32.mrb[4].mxu0  ;;  %v1054_v55 = vpop.f32.mrb[5].mxu1 }
 0x144   : > { %v2024_v59 = vadd.f32 %v3658_v3, %v1985_v31  ;;  %v2962_v1 = vadd.f32 %v2932_v52, %v2836_v37  ;;  %v1793_v5 = vpop.f32.mrb[5].mxu0  ;;  %v2837_v8 = vpop.f32.mrb[6].mxu1  ;;  %v2055_v46 = vmax.f32 %v2023_v28, 0.0 }
 0x145   : > { %v2022_v15 = vadd.f32 %v3658_v3, %v1983_v48  ;;  %v2963_v21 = vadd.f32 %v1793_v5, %v1054_v55  ;;  %v2933_v33 = vpop.f32.mrb[6].mxu0  ;;  %v1057_v45 = vpop.f32.mrb[7].mxu1  ;;  %v2053_v43 = vmax.f32 %v2021_v47, 0.0 }
 0x146   : > { %v2056_v56 = vmax.f32 %v2024_v59, 0.0  ;;  %v1949_v58 = vadd.f32 %v2962_v1, %v3647_v40  ;;  %v2964_v61 = vadd.f32 %v2933_v33, %v2837_v8  ;;  %v1796_v62 = vpop.f32.mrb[7].mxu0 }
 0x147   : > { %v2054_v10 = vmax.f32 %v2022_v15, 0.0  ;;  %v1947_v38 = vadd.f32 %v2963_v21, %v3647_v40  ;;  %v2965_v39 = vadd.f32 %v1796_v62, %v1057_v45 }
 0x148   : > { %v2583_v2 = vpack.c.bf16 %v2056_v56, %v2055_v46  ;;  %v1988_v17 = vmul.f32 %v3652_v51, %v1949_v58  ;;  %v1950_v4 = vadd.f32 %v2964_v61, %v3647_v40 }
 0x149   : > { %v2578_v14 = vpack.c.bf16 %v2054_v10, %v2053_v43  ;;  %v1986_v11 = vmul.f32 %v3652_v51, %v1947_v38  ;;  %v1948_v49 = vadd.f32 %v2965_v39, %v3647_v40 }
 0x14a   : > { %2655 = vst [vmem:[%s3676_s18 + $0x8] sm:$0xff] %v2583_v2   ;;  %v2027_v34 = vadd.f32 %v3658_v3, %v1988_v17  ;;  %v1989_v12 = vmul.f32 %v3652_v51, %v1950_v4  ;;  %v2840_v13 = vpop.f32.mrb[8].mxu1 }
 0x14b   : > { %2579 = vst [vmem:[%s3676_s18] sm:$0xff] %v2578_v14   ;;  %v2025_v18 = vadd.f32 %v3658_v3, %v1986_v11  ;;  %v1987_v19 = vmul.f32 %v3652_v51, %v1948_v49  ;;  %v2936_v20 = vpop.f32.mrb[8].mxu0  ;;  %v1070_v22 = vpop.f32.mrb[9].mxu1 }
 0x14c   : > { %v2028_v25 = vadd.f32 %v3658_v3, %v1989_v12  ;;  %v2966_v26 = vadd.f32 %v2936_v20, %v2840_v13  ;;  %v1809_v27 = vpop.f32.mrb[9].mxu0  ;;  %v2841_v29 = vpop.f32.mrb[10].mxu1  ;;  %v2059_v41 = vmax.f32 %v2027_v34, 0.0 }
 0x14d   : > { %v2026_v30 = vadd.f32 %v3658_v3, %v1987_v19  ;;  %v2967_v32 = vadd.f32 %v1809_v27, %v1070_v22  ;;  %v2937_v35 = vpop.f32.mrb[10].mxu0  ;;  %v1073_v36 = vpop.f32.mrb[11].mxu1  ;;  %v2057_v54 = vmax.f32 %v2025_v18, 0.0 }
 0x14e   : > { %v2060_v42 = vmax.f32 %v2028_v25, 0.0  ;;  %v1953_v44 = vadd.f32 %v2966_v26, %v3647_v40  ;;  %v2968_v50 = vadd.f32 %v2937_v35, %v2841_v29  ;;  %v1812_v53 = vpop.f32.mrb[11].mxu0 }
 0x14f   : > { %v2058_v57 = vmax.f32 %v2026_v30, 0.0  ;;  %v1951_v60 = vadd.f32 %v2967_v32, %v3647_v40  ;;  %v2969_v63 = vadd.f32 %v1812_v53, %v1073_v36 }
 0x150   : > { %v2593_v0 = vpack.c.bf16 %v2060_v42, %v2059_v41  ;;  %v1992_v6 = vmul.f32 %v3652_v51, %v1953_v44  ;;  %v1954_v7 = vadd.f32 %v2968_v50, %v3647_v40 }
 0x151   : > { %v2588_v9 = vpack.c.bf16 %v2058_v57, %v2057_v54  ;;  %v1990_v16 = vmul.f32 %v3652_v51, %v1951_v60  ;;  %v1952_v23 = vadd.f32 %v2969_v63, %v3647_v40 }
 0x152   : > { %2657 = vst [vmem:[%s3676_s18 + $0x18] sm:$0xff] %v2593_v0   ;;  %v2031_v24 = vadd.f32 %v3658_v3, %v1992_v6  ;;  %v1993_v28 = vmul.f32 %v3652_v51, %v1954_v7  ;;  %v2844_v31 = vpop.f32.mrb[12].mxu1 }
 0x153   : > { %2656 = vst [vmem:[%s3676_s18 + $0x10] sm:$0xff] %v2588_v9   ;;  %v2029_v37 = vadd.f32 %v3658_v3, %v1990_v16  ;;  %v1991_v47 = vmul.f32 %v3652_v51, %v1952_v23  ;;  %v2940_v48 = vpop.f32.mrb[12].mxu0  ;;  %v1086_v52 = vpop.f32.mrb[13].mxu1 }
 0x154   : > { %v2032_v55 = vadd.f32 %v3658_v3, %v1993_v28  ;;  %v2970_v59 = vadd.f32 %v2940_v48, %v2844_v31  ;;  %v1825_v1 = vpop.f32.mrb[13].mxu0  ;;  %v2845_v5 = vpop.f32.mrb[14].mxu1  ;;  %v2063_v45 = vmax.f32 %v2031_v24, 0.0 }
 0x155   : > { %v2030_v8 = vadd.f32 %v3658_v3, %v1991_v47  ;;  %v2971_v15 = vadd.f32 %v1825_v1, %v1086_v52  ;;  %v2941_v21 = vpop.f32.mrb[14].mxu0  ;;  %v1089_v33 = vpop.f32.mrb[15].mxu1  ;;  %v2061_v62 = vmax.f32 %v2029_v37, 0.0 }
 0x156   : > { %v2064_v46 = vmax.f32 %v2032_v55, 0.0  ;;  %v1957_v56 = vadd.f32 %v2970_v59, %v3647_v40  ;;  %v2972_v58 = vadd.f32 %v2941_v21, %v2845_v5  ;;  %v1828_v61 = vpop.f32.mrb[15].mxu0 }
 0x157   : > { %v2062_v43 = vmax.f32 %v2030_v8, 0.0  ;;  %v1955_v10 = vadd.f32 %v2971_v15, %v3647_v40  ;;  %v2973_v38 = vadd.f32 %v1828_v61, %v1089_v33 }
 0x158   : > { %v2603_v39 = vpack.c.bf16 %v2064_v46, %v2063_v45  ;;  %v1996_v2 = vmul.f32 %v3652_v51, %v1957_v56  ;;  %v1958_v17 = vadd.f32 %v2972_v58, %v3647_v40 }
 0x159   : > { %v2598_v4 = vpack.c.bf16 %v2062_v43, %v2061_v62  ;;  %v1994_v14 = vmul.f32 %v3652_v51, %v1955_v10  ;;  %v1956_v11 = vadd.f32 %v2973_v38, %v3647_v40 }
 0x15a   : > { %2659 = vst [vmem:[%s3676_s18 + $0x28] sm:$0xff] %v2603_v39   ;;  %v2035_v49 = vadd.f32 %v3658_v3, %v1996_v2  ;;  %v1997_v34 = vmul.f32 %v3652_v51, %v1958_v17  ;;  %v2848_v12 = vpop.f32.mrb[16].mxu1 }
 0x15b   : > { %2658 = vst [vmem:[%s3676_s18 + $0x20] sm:$0xff] %v2598_v4   ;;  %v2033_v13 = vadd.f32 %v3658_v3, %v1994_v14  ;;  %v1995_v18 = vmul.f32 %v3652_v51, %v1956_v11  ;;  %v2944_v19 = vpop.f32.mrb[16].mxu0  ;;  %v1102_v20 = vpop.f32.mrb[17].mxu1 }
 0x15c   : > { %v2036_v22 = vadd.f32 %v3658_v3, %v1997_v34  ;;  %v2974_v25 = vadd.f32 %v2944_v19, %v2848_v12  ;;  %v1841_v26 = vpop.f32.mrb[17].mxu0  ;;  %v2849_v27 = vpop.f32.mrb[18].mxu1  ;;  %v2067_v36 = vmax.f32 %v2035_v49, 0.0 }
 0x15d   : > { %v2034_v29 = vadd.f32 %v3658_v3, %v1995_v18  ;;  %v2975_v30 = vadd.f32 %v1841_v26, %v1102_v20  ;;  %v2945_v32 = vpop.f32.mrb[18].mxu0  ;;  %v1105_v35 = vpop.f32.mrb[19].mxu1  ;;  %v2065_v53 = vmax.f32 %v2033_v13, 0.0 }
 0x15e   : > { %v2068_v41 = vmax.f32 %v2036_v22, 0.0  ;;  %v1961_v42 = vadd.f32 %v2974_v25, %v3647_v40  ;;  %v2976_v44 = vadd.f32 %v2945_v32, %v2849_v27  ;;  %v1844_v50 = vpop.f32.mrb[19].mxu0 }
 0x15f   : > { %v2066_v54 = vmax.f32 %v2034_v29, 0.0  ;;  %v1959_v57 = vadd.f32 %v2975_v30, %v3647_v40  ;;  %v2977_v60 = vadd.f32 %v1844_v50, %v1105_v35 }
 0x160   : > { %v2613_v63 = vpack.c.bf16 %v2068_v41, %v2067_v36  ;;  %v2000_v0 = vmul.f32 %v3652_v51, %v1961_v42  ;;  %v1962_v6 = vadd.f32 %v2976_v44, %v3647_v40 }
 0x161   : > { %v2608_v7 = vpack.c.bf16 %v2066_v54, %v2065_v53  ;;  %v1998_v9 = vmul.f32 %v3652_v51, %v1959_v57  ;;  %v1960_v16 = vadd.f32 %v2977_v60, %v3647_v40 }
 0x162   : > { %2661 = vst [vmem:[%s3676_s18 + $0x38] sm:$0xff] %v2613_v63   ;;  %v2039_v23 = vadd.f32 %v3658_v3, %v2000_v0  ;;  %v2001_v24 = vmul.f32 %v3652_v51, %v1962_v6  ;;  %v2852_v28 = vpop.f32.mrb[20].mxu1 }
 0x163   : > { %2660 = vst [vmem:[%s3676_s18 + $0x30] sm:$0xff] %v2608_v7   ;;  %v2037_v31 = vadd.f32 %v3658_v3, %v1998_v9  ;;  %v1999_v37 = vmul.f32 %v3652_v51, %v1960_v16  ;;  %v2948_v47 = vpop.f32.mrb[20].mxu0  ;;  %v1118_v48 = vpop.f32.mrb[21].mxu1 }
 0x164   : > { %v2040_v52 = vadd.f32 %v3658_v3, %v2001_v24  ;;  %v2978_v55 = vadd.f32 %v2948_v47, %v2852_v28  ;;  %v1857_v59 = vpop.f32.mrb[21].mxu0  ;;  %v2853_v1 = vpop.f32.mrb[22].mxu1  ;;  %v2071_v33 = vmax.f32 %v2039_v23, 0.0 }
 0x165   : > { %v2038_v5 = vadd.f32 %v3658_v3, %v1999_v37  ;;  %v2979_v8 = vadd.f32 %v1857_v59, %v1118_v48  ;;  %v2949_v15 = vpop.f32.mrb[22].mxu0  ;;  %v1121_v21 = vpop.f32.mrb[23].mxu1  ;;  %v2069_v61 = vmax.f32 %v2037_v31, 0.0 }
 0x166   : > { %v2072_v45 = vmax.f32 %v2040_v52, 0.0  ;;  %v1965_v46 = vadd.f32 %v2978_v55, %v3647_v40  ;;  %v2980_v56 = vadd.f32 %v2949_v15, %v2853_v1  ;;  %v1860_v58 = vpop.f32.mrb[23].mxu0 }
 0x167   : > { %v2070_v62 = vmax.f32 %v2038_v5, 0.0  ;;  %v1963_v43 = vadd.f32 %v2979_v8, %v3647_v40  ;;  %v2981_v10 = vadd.f32 %v1860_v58, %v1121_v21 }
 0x168   : > { %v2623_v38 = vpack.c.bf16 %v2072_v45, %v2071_v33  ;;  %v2004_v39 = vmul.f32 %v3652_v51, %v1965_v46  ;;  %v1966_v2 = vadd.f32 %v2980_v56, %v3647_v40 }
 0x169   : > { %v2618_v17 = vpack.c.bf16 %v2070_v62, %v2069_v61  ;;  %v2002_v4 = vmul.f32 %v3652_v51, %v1963_v43  ;;  %v1964_v14 = vadd.f32 %v2981_v10, %v3647_v40 }
 0x16a   : > { %2663 = vst [vmem:[%s3676_s18 + $0x48] sm:$0xff] %v2623_v38   ;;  %v2043_v11 = vadd.f32 %v3658_v3, %v2004_v39  ;;  %v2005_v49 = vmul.f32 %v3652_v51, %v1966_v2  ;;  %v2856_v34 = vpop.f32.mrb[24].mxu1 }
 0x16b   : > { %2662 = vst [vmem:[%s3676_s18 + $0x40] sm:$0xff] %v2618_v17   ;;  %v2041_v12 = vadd.f32 %v3658_v3, %v2002_v4  ;;  %v2003_v13 = vmul.f32 %v3652_v51, %v1964_v14  ;;  %v2952_v18 = vpop.f32.mrb[24].mxu0  ;;  %v1134_v19 = vpop.f32.mrb[25].mxu1 }
 0x16c   : > { %v2044_v20 = vadd.f32 %v3658_v3, %v2005_v49  ;;  %v2982_v22 = vadd.f32 %v2952_v18, %v2856_v34  ;;  %v1873_v25 = vpop.f32.mrb[25].mxu0  ;;  %v2857_v26 = vpop.f32.mrb[26].mxu1  ;;  %v2075_v35 = vmax.f32 %v2043_v11, 0.0 }
 0x16d   : > { %v2042_v27 = vadd.f32 %v3658_v3, %v2003_v13  ;;  %v2983_v29 = vadd.f32 %v1873_v25, %v1134_v19  ;;  %v2953_v30 = vpop.f32.mrb[26].mxu0  ;;  %v1137_v32 = vpop.f32.mrb[27].mxu1  ;;  %v2073_v50 = vmax.f32 %v2041_v12, 0.0 }
 0x16e   : > { %v2076_v36 = vmax.f32 %v2044_v20, 0.0  ;;  %v1969_v41 = vadd.f32 %v2982_v22, %v3647_v40  ;;  %v2984_v42 = vadd.f32 %v2953_v30, %v2857_v26  ;;  %v1876_v44 = vpop.f32.mrb[27].mxu0 }
 0x16f   : > { %v2074_v53 = vmax.f32 %v2042_v27, 0.0  ;;  %v1967_v54 = vadd.f32 %v2983_v29, %v3647_v40  ;;  %v2985_v57 = vadd.f32 %v1876_v44, %v1137_v32 }
 0x170   : > { %v2633_v60 = vpack.c.bf16 %v2076_v36, %v2075_v35  ;;  %v2008_v63 = vmul.f32 %v3652_v51, %v1969_v41  ;;  %v1970_v0 = vadd.f32 %v2984_v42, %v3647_v40 }
 0x171   : > { %v2628_v6 = vpack.c.bf16 %v2074_v53, %v2073_v50  ;;  %v2006_v7 = vmul.f32 %v3652_v51, %v1967_v54  ;;  %v1968_v9 = vadd.f32 %v2985_v57, %v3647_v40 }
 0x172   : > { %2665 = vst [vmem:[%s3676_s18 + $0x58] sm:$0xff] %v2633_v60   ;;  %v2047_v16 = vadd.f32 %v3658_v3, %v2008_v63  ;;  %v2009_v23 = vmul.f32 %v3652_v51, %v1970_v0  ;;  %v2860_v24 = vpop.f32.mrb[28].mxu1 }
 0x173   : > { %2664 = vst [vmem:[%s3676_s18 + $0x50] sm:$0xff] %v2628_v6   ;;  %v2045_v28 = vadd.f32 %v3658_v3, %v2006_v7  ;;  %v2007_v31 = vmul.f32 %v3652_v51, %v1968_v9  ;;  %v2956_v37 = vpop.f32.mrb[28].mxu0  ;;  %v1150_v47 = vpop.f32.mrb[29].mxu1 }
 0x174   : > { %v2048_v48 = vadd.f32 %v3658_v3, %v2009_v23  ;;  %v2986_v52 = vadd.f32 %v2956_v37, %v2860_v24  ;;  %v1889_v55 = vpop.f32.mrb[29].mxu0  ;;  %v2861_v59 = vpop.f32.mrb[30].mxu1  ;;  %v2079_v21 = vmax.f32 %v2047_v16, 0.0 }
 0x175   : > { %v2046_v1 = vadd.f32 %v3658_v3, %v2007_v31  ;;  %v2987_v5 = vadd.f32 %v1889_v55, %v1150_v47  ;;  %v2957_v8 = vpop.f32.mrb[30].mxu0  ;;  %v1153_v15 = vpop.f32.mrb[31].mxu1  ;;  %v2077_v58 = vmax.f32 %v2045_v28, 0.0 }
 0x176   : > { %v2080_v33 = vmax.f32 %v2048_v48, 0.0  ;;  %v1973_v45 = vadd.f32 %v2986_v52, %v3647_v40  ;;  %v2988_v46 = vadd.f32 %v2957_v8, %v2861_v59  ;;  %v1892_v56 = vpop.f32.mrb[31].mxu0 }
 0x177   : > { %v2078_v61 = vmax.f32 %v2046_v1, 0.0  ;;  %v1971_v62 = vadd.f32 %v2987_v5, %v3647_v40  ;;  %v2989_v43 = vadd.f32 %v1892_v56, %v1153_v15 }
 0x178   : > { %v2643_v10 = vpack.c.bf16 %v2080_v33, %v2079_v21  ;;  %v2012_v38 = vmul.f32 %v3652_v51, %v1973_v45  ;;  %v1974_v39 = vadd.f32 %v2988_v46, %v3647_v40 }
 0x179   : > { %v2638_v2 = vpack.c.bf16 %v2078_v61, %v2077_v58  ;;  %v2010_v17 = vmul.f32 %v3652_v51, %v1971_v62  ;;  %v1972_v4 = vadd.f32 %v2989_v43, %v3647_v40 }
 0x17a   : > { %2667 = vst [vmem:[%s3676_s18 + $0x68] sm:$0xff] %v2643_v10   ;;  %v2051_v14 = vadd.f32 %v3658_v3, %v2012_v38  ;;  %v2013_v11 = vmul.f32 %v3652_v51, %v1974_v39 }
 0x17b   : > { %2666 = vst [vmem:[%s3676_s18 + $0x60] sm:$0xff] %v2638_v2   ;;  %v2049_v49 = vadd.f32 %v3658_v3, %v2010_v17  ;;  %v2011_v34 = vmul.f32 %v3652_v51, %v1972_v4 }
 0x17c   : > { %v2052_v12 = vadd.f32 %v3658_v3, %v2013_v11  ;;  %v2083_v18 = vmax.f32 %v2051_v14, 0.0 }
 0x17d   : > { %v2050_v13 = vadd.f32 %v3658_v3, %v2011_v34  ;;  %v2081_v20 = vmax.f32 %v2049_v49, 0.0 }
 0x17e   : > { %v2084_v19 = vmax.f32 %v2052_v12, 0.0 }
 0x17f   : > { %v2082_v22 = vmax.f32 %v2050_v13, 0.0 }
 0x180   : > { %v2653_v40 = vpack.c.bf16 %v2084_v19, %v2083_v18 }
 0x181   : > { %v2648_v25 = vpack.c.bf16 %v2082_v22, %v2081_v20 }
 0x182   : > { %2669 = vst [vmem:[%s3676_s18 + $0x78] sm:$0xff] %v2653_v40  }
 0x183   : > { %2668 = vst [vmem:[%s3676_s18 + $0x70] sm:$0xff] %v2648_v25  }
 0x184 PF: > { %s19_s11 = sadd.s32 1, %s3181_s11   ;;  %s3797_s30 = smov %s3177_s10 }
 0x185   : > { %p16_p5 = scmp.ge.s32.totalorder %s19_s11, 4   ;;  %s3798_s10 = smov %s3800_s12 }
 0x187   :  { %18 = sbr.rel (!%p16_p5) target bundleno = 2 (0x2), region = 96 }

</bundles_post_ra>
